<compile_context>
chip_gen: v6e
topology: v6e:2x2x1
jax: 0.10.0
libtpu: 0.0.40
codegen_flags: <defaults>
</compile_context>

<pallas_src>
import functools

import jax
import jax.numpy as jnp
from jax.experimental import pallas as pl
from jax.experimental.pallas import tpu as pltpu

MXU_DTYPE = jnp.bfloat16          # matmul-operand / activation-storage dtype
LN_EPS = 1e-5
_ROW_TILE = 512                   # target rows per grid step for rowwise kernels
_VMEM_LIMIT = 32 * 1024 * 1024    # scoped VMEM; safe on v5e/v6e/v7x


# ----------------------------------------------------------------------------- kernels

def _attn_core(q, k, v):
    # q: (Lq, dh) f32, k/v: (Lk, dh) f32. Softmax in f32; matmul operands bf16.
    s = jax.lax.dot_general(q.astype(MXU_DTYPE), k.astype(MXU_DTYPE),
                            (((1,), (1,)), ((), ())),
                            preferred_element_type=jnp.float32)       # (Lq, Lk)
    s = s - jnp.max(s, axis=-1, keepdims=True)
    p = jnp.exp(s)
    p = p * pl.reciprocal(jnp.sum(p, axis=-1, keepdims=True), approx=True)
    return jnp.dot(p.astype(MXU_DTYPE), v.astype(MXU_DTYPE),
                   preferred_element_type=jnp.float32)                # (Lq, dh)


def _self_attn_kernel(x_ref, pos_ref, wq_ref, bq_ref, wk_ref, bk_ref,
                      wv_ref, bv_ref, o_ref):
    # One (batch, head) grid step. x/pos: (1, L, D) bf16; wq/wk/wv: (1, D, dh) bf16
    # (head selected by index_map); bq/bk/bv: (1, 1, dh) f32; out: (1, 1, L, dh) bf16.
    # Q/K/V projections are folded in; softmax scale is pre-folded into wq/bq.
    x = x_ref[0]                           # (L, D) bf16
    xp = x + pos_ref[0]                    # q/k source = x + pos
    q = jnp.dot(xp, wq_ref[0], preferred_element_type=jnp.float32) + bq_ref[0]
    k = jnp.dot(xp, wk_ref[0], preferred_element_type=jnp.float32) + bk_ref[0]
    v = jnp.dot(x, wv_ref[0], preferred_element_type=jnp.float32) + bv_ref[0]
    o_ref[0, 0] = _attn_core(q, k, v).astype(o_ref.dtype)


def _cross_attn_kernel(t_ref, qpos_ref, m_ref, mpos_ref,
                       wq_ref, bq_ref, wk_ref, bk_ref, wv_ref, bv_ref, o_ref):
    # q = (tgt + query_pos) @ Wq_h, k = (memory + pos) @ Wk_h, v = memory @ Wv_h
    tq = t_ref[0] + qpos_ref[0]            # (Lq, D) bf16
    mk = m_ref[0] + mpos_ref[0]            # (Lk, D) bf16
    q = jnp.dot(tq, wq_ref[0], preferred_element_type=jnp.float32) + bq_ref[0]
    k = jnp.dot(mk, wk_ref[0], preferred_element_type=jnp.float32) + bk_ref[0]
    v = jnp.dot(m_ref[0], wv_ref[0], preferred_element_type=jnp.float32) + bv_ref[0]
    o_ref[0, 0] = _attn_core(q, k, v).astype(o_ref.dtype)


def _proj_add_ln_kernel(a_ref, r_ref, wo_ref, bo_ref, g_ref, b_ref, o_ref, *,
                        nhead, eps):
    # out = LayerNorm(sum_h attn_h @ Wo_h + bo + residual)
    # a: (1, H, lt, dh) bf16 head-major; wo: (H, dh, D) bf16; leading-dim head
    # indexing only (no lane slicing).
    y = jnp.dot(a_ref[0, 0], wo_ref[0], preferred_element_type=jnp.float32)
    for h in range(1, nhead):
        y = y + jnp.dot(a_ref[0, h], wo_ref[h], preferred_element_type=jnp.float32)
    y = y + bo_ref[...] + r_ref[0].astype(jnp.float32)
    mu = jnp.mean(y, axis=-1, keepdims=True)
    var = jnp.mean((y - mu) ** 2, axis=-1, keepdims=True)
    yn = (y - mu) * jax.lax.rsqrt(var + eps)
    o_ref[0] = (yn * g_ref[...] + b_ref[...]).astype(o_ref.dtype)


def _ffn_add_ln_kernel(x_ref, w1_ref, b1_ref, w2_ref, b2_ref, g_ref, b_ref, o_ref, *,
                       eps):
    # out = LayerNorm(relu(x @ W1 + b1) @ W2 + b2 + x); intermediate stays in VMEM.
    x = x_ref[...]                                                   # (bm, D) bf16
    hdn = jnp.dot(x, w1_ref[...], preferred_element_type=jnp.float32) + b1_ref[...]
    hdn = jnp.maximum(hdn, 0.0)
    y = jnp.dot(hdn.astype(MXU_DTYPE), w2_ref[...],
                preferred_element_type=jnp.float32) + b2_ref[...]
    y = y + x.astype(jnp.float32)
    mu = jnp.mean(y, axis=-1, keepdims=True)
    var = jnp.mean((y - mu) ** 2, axis=-1, keepdims=True)
    yn = (y - mu) * jax.lax.rsqrt(var + eps)
    o_ref[...] = (yn * g_ref[...] + b_ref[...]).astype(o_ref.dtype)


def _ffn_add_ln_dual_kernel(x_ref, w1_ref, b1_ref, w2_ref, b2_ref, g_ref, b_ref,
                            ng_ref, nb_ref, o_ref, on_ref, *, eps):
    # Decoder variant: also emits dec_norm(layer_output) as a second output.
    x = x_ref[...]
    hdn = jnp.dot(x, w1_ref[...], preferred_element_type=jnp.float32) + b1_ref[...]
    hdn = jnp.maximum(hdn, 0.0)
    y = jnp.dot(hdn.astype(MXU_DTYPE), w2_ref[...],
                preferred_element_type=jnp.float32) + b2_ref[...]
    y = y + x.astype(jnp.float32)
    mu = jnp.mean(y, axis=-1, keepdims=True)
    var = jnp.mean((y - mu) ** 2, axis=-1, keepdims=True)
    z = (y - mu) * jax.lax.rsqrt(var + eps) * g_ref[...] + b_ref[...]   # layer output
    o_ref[...] = z.astype(o_ref.dtype)
    mu2 = jnp.mean(z, axis=-1, keepdims=True)
    var2 = jnp.mean((z - mu2) ** 2, axis=-1, keepdims=True)
    on_ref[...] = ((z - mu2) * jax.lax.rsqrt(var2 + eps) * ng_ref[...]
                   + nb_ref[...]).astype(on_ref.dtype)


# ----------------------------------------------------------------------------- wrappers

def _pick_rows(n, target=_ROW_TILE):
    """Largest row tile <= target that is a multiple of 8, divides n, and leaves at
    least 2 grid steps (megacore) when n is large enough; else n itself."""
    if n < 16:
        return n
    cap = min(target, n // 2)
    t = (cap // 8) * 8
    while t >= 8:
        if n % t == 0:
            return t
        t -= 8
    return n


def _rowwise_call(kernel, n, row_args, full_args, out_dims, out_dtypes):
    """Row-tiled pallas_call: `row_args` (n, k_i) tile over rows; `full_args`
    (2-D weights / biases / LN params) ride whole every grid step."""
    bm = _pick_rows(n)
    in_specs = ([pl.BlockSpec((bm, a.shape[1]), lambda i: (i, 0)) for a in row_args]
                + [pl.BlockSpec(a.shape, lambda i: (0, 0)) for a in full_args])
    out_specs = [pl.BlockSpec((bm, d), lambda i: (i, 0)) for d in out_dims]
    out_shape = [jax.ShapeDtypeStruct((n, d), dt) for d, dt in zip(out_dims, out_dtypes)]
    single = len(out_dims) == 1
    return pl.pallas_call(
        kernel,
        out_shape=out_shape[0] if single else tuple(out_shape),
        grid=(n // bm,),
        in_specs=in_specs,
        out_specs=out_specs[0] if single else tuple(out_specs),
        compiler_params=pltpu.CompilerParams(
            dimension_semantics=("parallel",), vmem_limit_bytes=_VMEM_LIMIT),
    )(*row_args, *full_args)


def ffn_add_ln(x, w1, b1, w2, b2, g, b):
    kern = functools.partial(_ffn_add_ln_kernel, eps=LN_EPS)
    return _rowwise_call(kern, x.shape[0], [x], [w1, b1, w2, b2, g, b],
                         [w2.shape[1]], [MXU_DTYPE])


def ffn_add_ln_dual(x, w1, b1, w2, b2, g, b, ng, nb):
    kern = functools.partial(_ffn_add_ln_dual_kernel, eps=LN_EPS)
    return _rowwise_call(kern, x.shape[0], [x], [w1, b1, w2, b2, g, b, ng, nb],
                         [w2.shape[1], w2.shape[1]], [MXU_DTYPE, jnp.float32])


def self_attention(x, pos, wq, bq, wk, bk, wv, bv):
    """x/pos: (B, L, D) bf16; weights head-major (H, D, dh). Returns (B, H, L, dh) bf16."""
    B, L, D = x.shape
    H, _, dh = wq.shape
    seq_spec = pl.BlockSpec((1, L, D), lambda b, h: (b, 0, 0))
    w_spec = pl.BlockSpec((1, D, dh), lambda b, h: (h, 0, 0))
    bias_spec = pl.BlockSpec((1, 1, dh), lambda b, h: (h, 0, 0))
    return pl.pallas_call(
        _self_attn_kernel,
        out_shape=jax.ShapeDtypeStruct((B, H, L, dh), MXU_DTYPE),
        grid=(B, H),
        in_specs=[seq_spec, seq_spec, w_spec, bias_spec, w_spec, bias_spec,
                  w_spec, bias_spec],
        out_specs=pl.BlockSpec((1, 1, L, dh), lambda b, h: (b, h, 0, 0)),
        compiler_params=pltpu.CompilerParams(
            dimension_semantics=("parallel", "parallel"),
            vmem_limit_bytes=_VMEM_LIMIT),
    )(x, pos, wq, bq, wk, bk, wv, bv)


def cross_attention(tgt, qpos, mem, mpos, wq, bq, wk, bk, wv, bv):
    """tgt/qpos: (B, Lq, D); mem/mpos: (B, Lk, D). Returns (B, H, Lq, dh) bf16."""
    B, Lq, D = tgt.shape
    Lk = mem.shape[1]
    H, _, dh = wq.shape
    q_spec = pl.BlockSpec((1, Lq, D), lambda b, h: (b, 0, 0))
    k_spec = pl.BlockSpec((1, Lk, D), lambda b, h: (b, 0, 0))
    w_spec = pl.BlockSpec((1, D, dh), lambda b, h: (h, 0, 0))
    bias_spec = pl.BlockSpec((1, 1, dh), lambda b, h: (h, 0, 0))
    return pl.pallas_call(
        _cross_attn_kernel,
        out_shape=jax.ShapeDtypeStruct((B, H, Lq, dh), MXU_DTYPE),
        grid=(B, H),
        in_specs=[q_spec, q_spec, k_spec, k_spec, w_spec, bias_spec, w_spec, bias_spec,
                  w_spec, bias_spec],
        out_specs=pl.BlockSpec((1, 1, Lq, dh), lambda b, h: (b, h, 0, 0)),
        compiler_params=pltpu.CompilerParams(
            dimension_semantics=("parallel", "parallel"),
            vmem_limit_bytes=_VMEM_LIMIT),
    )(tgt, qpos, mem, mpos, wq, bq, wk, bk, wv, bv)


def proj_add_ln(attn, resid, wo, bo, g, b):
    """attn: (B, H, L, dh) head-major bf16; resid: (B, L, D) bf16. Returns (B, L, D) bf16."""
    B, H, L, dh = attn.shape
    D = resid.shape[-1]
    lt = _pick_rows(L)
    kern = functools.partial(_proj_add_ln_kernel, nhead=H, eps=LN_EPS)
    return pl.pallas_call(
        kern,
        out_shape=jax.ShapeDtypeStruct((B, L, D), MXU_DTYPE),
        grid=(B, L // lt),
        in_specs=[
            pl.BlockSpec((1, H, lt, dh), lambda bb, i: (bb, 0, i, 0)),
            pl.BlockSpec((1, lt, D), lambda bb, i: (bb, i, 0)),
            pl.BlockSpec((H, dh, D), lambda bb, i: (0, 0, 0)),
            pl.BlockSpec((1, D), lambda bb, i: (0, 0)),
            pl.BlockSpec((1, D), lambda bb, i: (0, 0)),
            pl.BlockSpec((1, D), lambda bb, i: (0, 0)),
        ],
        out_specs=pl.BlockSpec((1, lt, D), lambda bb, i: (bb, i, 0)),
        compiler_params=pltpu.CompilerParams(
            dimension_semantics=("parallel", "parallel"),
            vmem_limit_bytes=_VMEM_LIMIT),
    )(attn, resid, wo, bo, g, b)


# ----------------------------------------------------------------------------- layers

def encoder_layer_fwd(src, pos, p):
    # post-norm (normalize_before=False); layout (B, S, D), bf16 activations
    B, S, D = src.shape
    attn = self_attention(src, pos, p["sa_Wq"], p["sa_bq"], p["sa_Wk"], p["sa_bk"],
                          p["sa_Wv"], p["sa_bv"])
    x = proj_add_ln(attn, src, p["sa_Wo"], p["sa_bo"], p["ln1_g"], p["ln1_b"])
    y = ffn_add_ln(x.reshape(B * S, D), p["W1"], p["b1"], p["W2"], p["b2"],
                   p["ln2_g"], p["ln2_b"])
    return y.reshape(B, S, D)


def decoder_layer_fwd(tgt, memory, pos, qpos, p, dec_norm_g, dec_norm_b):
    # post-norm; returns (layer_output, dec_norm(layer_output))
    B, Q, D = tgt.shape
    # self-attention block
    attn = self_attention(tgt, qpos, p["sa_Wq"], p["sa_bq"], p["sa_Wk"], p["sa_bk"],
                          p["sa_Wv"], p["sa_bv"])
    t = proj_add_ln(attn, tgt, p["sa_Wo"], p["sa_bo"], p["ln1_g"], p["ln1_b"])
    # cross-attention block (Q projection folded into the kernel)
    attn = cross_attention(t, qpos, memory, pos, p["ca_Wq"], p["ca_bq"],
                           p["ca_Wk"], p["ca_bk"], p["ca_Wv"], p["ca_bv"])
    t = proj_add_ln(attn, t, p["ca_Wo"], p["ca_bo"], p["ln2_g"], p["ln2_b"])
    # FFN block + fused decoder-norm intermediate
    y, inter = ffn_add_ln_dual(t.reshape(B * Q, D), p["W1"], p["b1"], p["W2"], p["b2"],
                               p["ln3_g"], p["ln3_b"], dec_norm_g, dec_norm_b)
    return y.reshape(B, Q, D), inter.reshape(B, Q, D)


def transformer_forward(params, src, mask, query_embed, pos_embed, nhead):
    """Matches Transformer.forward:
    src: (bs, c, h, w); mask: (bs, h, w); query_embed: (Q, c); pos_embed: (bs, c, h, w).
    Returns (hs.transpose(1,2), memory reshaped to (bs, c, h, w))."""
    del nhead  # head count baked into the head-major weights
    bs, c, h, w = src.shape
    s = h * w
    nq = query_embed.shape[0]
    # batch-first (B, L, D) bf16 layout; permutation-equivalent to the (L, B, D) reference
    src_b = src.reshape(bs, c, s).transpose(0, 2, 1).astype(MXU_DTYPE)
    pos_b = pos_embed.reshape(bs, c, s).transpose(0, 2, 1).astype(MXU_DTYPE)
    qpos_b = jnp.tile(query_embed[None, :, :].astype(MXU_DTYPE), (bs, 1, 1))
    del mask  # all-ones float key_padding_mask is softmax-invariant (see TODO at top)

    memory = src_b
    for lp in params["enc"]:
        memory = encoder_layer_fwd(memory, pos_b, lp)

    out = jnp.zeros((bs, nq, c), MXU_DTYPE)            # tgt = zeros_like(query_embed)
    intermediates = []
    for lp in params["dec"]:
        out, inter = decoder_layer_fwd(out, memory, pos_b, qpos_b, lp,
                                       params["dec_norm_g"], params["dec_norm_b"])
        intermediates.append(inter)

    hs = jnp.stack(intermediates)                      # (L_dec, bs, Q, c) == hs.transpose(1,2)
    mem_out = memory.astype(jnp.float32).transpose(0, 2, 1).reshape(bs, c, h, w)
    return hs, mem_out


# ----------------------------------------------------------------------------- deterministic init
# Weights are laid out for the kernels at init time: (Din, Dout) transposed, head-major
# (H, D, dh) / (H, dh, D) attention slabs, softmax scale folded into Wq/bq, bf16 storage.

def _xavier(key, din, dout):
    limit = (6.0 / (din + dout)) ** 0.5
    return jax.random.uniform(key, (din, dout), jnp.float32, -limit, limit)


def _bias(key, din, dout):
    limit = 1.0 / (din ** 0.5)
    return jax.random.uniform(key, (dout,), jnp.float32, -limit, limit)


def _init_mha(key, d, nhead, prefix, p):
    dh = d // nhead
    scale = 1.0 / (dh ** 0.5)
    ks = jax.random.split(key, 8)
    wq = _xavier(ks[0], d, d) * scale                  # fold softmax scale into q proj
    bq = _bias(ks[1], d, d) * scale
    wk, bk = _xavier(ks[2], d, d), _bias(ks[3], d, d)
    wv, bv = _xavier(ks[4], d, d), _bias(ks[5], d, d)
    wo, bo = _xavier(ks[6], d, d), _bias(ks[7], d, d)

    def head_w(wm):                                    # (D, D) -> (H, D, dh)
        return jnp.transpose(wm.reshape(d, nhead, dh), (1, 0, 2)).astype(MXU_DTYPE)

    def head_b(bv_):                                   # (D,) -> (H, 1, dh) f32
        return bv_.reshape(nhead, 1, dh)

    p[prefix + "_Wq"], p[prefix + "_bq"] = head_w(wq), head_b(bq)
    p[prefix + "_Wk"], p[prefix + "_bk"] = head_w(wk), head_b(bk)
    p[prefix + "_Wv"], p[prefix + "_bv"] = head_w(wv), head_b(bv)
    p[prefix + "_Wo"] = wo.reshape(nhead, dh, d).astype(MXU_DTYPE)   # (H, dh, D)
    p[prefix + "_bo"] = bo.reshape(1, d)


def _ln_params(d):
    return jnp.ones((1, d), jnp.float32), jnp.zeros((1, d), jnp.float32)


def _init_ffn(key, d, dff, p):
    ks = jax.random.split(key, 4)
    p["W1"] = _xavier(ks[0], d, dff).astype(MXU_DTYPE)
    p["b1"] = _bias(ks[1], d, dff).reshape(1, dff)
    p["W2"] = _xavier(ks[2], dff, d).astype(MXU_DTYPE)
    p["b2"] = _bias(ks[3], dff, d).reshape(1, d)


def _init_enc_layer(key, d, nhead, dff):
    ks = jax.random.split(key, 2)
    p = {}
    _init_mha(ks[0], d, nhead, "sa", p)
    _init_ffn(ks[1], d, dff, p)
    p["ln1_g"], p["ln1_b"] = _ln_params(d)
    p["ln2_g"], p["ln2_b"] = _ln_params(d)
    return p


def _init_dec_layer(key, d, nhead, dff):
    ks = jax.random.split(key, 3)
    p = {}
    _init_mha(ks[0], d, nhead, "sa", p)
    _init_mha(ks[1], d, nhead, "ca", p)
    _init_ffn(ks[2], d, dff, p)
    p["ln1_g"], p["ln1_b"] = _ln_params(d)
    p["ln2_g"], p["ln2_b"] = _ln_params(d)
    p["ln3_g"], p["ln3_b"] = _ln_params(d)
    return p


def init_transformer(key, d, nhead, dff, n_enc, n_dec):
    ks = jax.random.split(key, n_enc + n_dec)
    g, b = _ln_params(d)
    return {
        "enc": [_init_enc_layer(ks[i], d, nhead, dff) for i in range(n_enc)],
        "dec": [_init_dec_layer(ks[n_enc + i], d, nhead, dff) for i in range(n_dec)],
        "dec_norm_g": g,
        "dec_norm_b": b,
    }


# ----------------------------------------------------------------------------- main

if __name__ == "__main__":
    # Small shapes consistent with Transformer.forward
    d_model, nhead, dim_ff = 32, 4, 64
    num_enc_layers, num_dec_layers = 2, 2
    bs, h, w, num_queries = 2, 4, 4, 8

    key = jax.random.PRNGKey(0)
    k_par, k_src, k_pos, k_qe = jax.random.split(key, 4)

    params = init_transformer(k_par, d_model, nhead, dim_ff, num_enc_layers, num_dec_layers)

    src = jax.random.normal(k_src, (bs, d_model, h, w), jnp.float32)   # NCHW features
    mask = jnp.ones((bs, h, w), jnp.float32)                           # float all-ones (as in DETRhead)
    pos_embed = jax.random.normal(k_pos, (bs, d_model, h, w), jnp.float32)
    query_embed = jax.random.normal(k_qe, (num_queries, d_model), jnp.float32)

    fwd = jax.jit(functools.partial(transformer_forward, nhead=nhead))
    hs, memory = fwd(params, src, mask, query_embed, pos_embed)
    jax.block_until_ready((hs, memory))

    assert hs.shape == (num_dec_layers, bs, num_queries, d_model), hs.shape
    assert memory.shape == (bs, d_model, h, w), memory.shape
    print("KERNEL_OK")
</pallas_src>

<mosaic_0001>
module attributes {stable_mosaic.version = 11 : i64} {
  func.func @_proj_add_ln_kernel(%arg0: i32, %arg1: i32, %arg2: memref<1x4x8x8xbf16, #tpu.memory_space<vmem>>, %arg3: memref<1x8x32xbf16, #tpu.memory_space<vmem>>, %arg4: memref<4x8x32xbf16, #tpu.memory_space<vmem>>, %arg5: memref<1x32xf32, #tpu.memory_space<vmem>>, %arg6: memref<1x32xf32, #tpu.memory_space<vmem>>, %arg7: memref<1x32xf32, #tpu.memory_space<vmem>>, %arg8: memref<1x8x32xbf16, #tpu.memory_space<vmem>>) attributes {dimension_semantics = [#tpu.dimension_semantics<parallel>, #tpu.dimension_semantics<parallel>], iteration_bounds = array<i64: 2, 2>, scalar_prefetch = 0 : i64, scratch_operands = 0 : i64, tpu.core_type = #tpu.core_type<tc>, window_params = [{transform_indices = @transform_0, window_bounds = array<i64: 1, 4, 8, 8>}, {transform_indices = @transform_1, window_bounds = array<i64: 1, 8, 32>}, {pipeline_mode = #tpu.pipeline_mode<synchronous>, transform_indices = @transform_2, window_bounds = array<i64: 4, 8, 32>}, {pipeline_mode = #tpu.pipeline_mode<synchronous>, transform_indices = @transform_3, window_bounds = array<i64: 1, 32>}, {pipeline_mode = #tpu.pipeline_mode<synchronous>, transform_indices = @transform_4, window_bounds = array<i64: 1, 32>}, {pipeline_mode = #tpu.pipeline_mode<synchronous>, transform_indices = @transform_5, window_bounds = array<i64: 1, 32>}, {transform_indices = @transform_6, window_bounds = array<i64: 1, 8, 32>}]} {
    %c0 = arith.constant 0 : index
    %c0_0 = arith.constant 0 : index
    %c0_1 = arith.constant 0 : index
    %c0_2 = arith.constant 0 : index
    %0 = vector.load %arg2[%c0, %c0_0, %c0_1, %c0_2] : memref<1x4x8x8xbf16, #tpu.memory_space<vmem>>, vector<1x1x8x8xbf16>
    %1 = vector.shape_cast %0 : vector<1x1x8x8xbf16> to vector<8x8xbf16>
    %c0_3 = arith.constant 0 : index
    %c0_4 = arith.constant 0 : index
    %c0_5 = arith.constant 0 : index
    %2 = vector.load %arg4[%c0_3, %c0_4, %c0_5] : memref<4x8x32xbf16, #tpu.memory_space<vmem>>, vector<1x8x32xbf16>
    %3 = vector.shape_cast %2 : vector<1x8x32xbf16> to vector<8x32xbf16>
    %cst = arith.constant dense<0.000000e+00> : vector<8x32xf32>
    %4 = tpu.matmul %1, %3, %cst {dimension_numbers = #tpu.dot_dimension_numbers<[1], [0], [0], [1], [0, 0, 1, 1], [], []>} : vector<8x8xbf16>, vector<8x32xbf16>, vector<8x32xf32> -> vector<8x32xf32>
    %c0_6 = arith.constant 0 : index
    %c1 = arith.constant 1 : index
    %c0_7 = arith.constant 0 : index
    %c0_8 = arith.constant 0 : index
    %5 = vector.load %arg2[%c0_6, %c1, %c0_7, %c0_8] : memref<1x4x8x8xbf16, #tpu.memory_space<vmem>>, vector<1x1x8x8xbf16>
    %6 = vector.shape_cast %5 : vector<1x1x8x8xbf16> to vector<8x8xbf16>
    %c1_9 = arith.constant 1 : index
    %c0_10 = arith.constant 0 : index
    %c0_11 = arith.constant 0 : index
    %7 = vector.load %arg4[%c1_9, %c0_10, %c0_11] : memref<4x8x32xbf16, #tpu.memory_space<vmem>>, vector<1x8x32xbf16>
    %8 = vector.shape_cast %7 : vector<1x8x32xbf16> to vector<8x32xbf16>
    %cst_12 = arith.constant dense<0.000000e+00> : vector<8x32xf32>
    %9 = tpu.matmul %6, %8, %cst_12 {dimension_numbers = #tpu.dot_dimension_numbers<[1], [0], [0], [1], [0, 0, 1, 1], [], []>} : vector<8x8xbf16>, vector<8x32xbf16>, vector<8x32xf32> -> vector<8x32xf32>
    %10 = arith.addf %4, %9 : vector<8x32xf32>
    %c0_13 = arith.constant 0 : index
    %c2 = arith.constant 2 : index
    %c0_14 = arith.constant 0 : index
    %c0_15 = arith.constant 0 : index
    %11 = vector.load %arg2[%c0_13, %c2, %c0_14, %c0_15] : memref<1x4x8x8xbf16, #tpu.memory_space<vmem>>, vector<1x1x8x8xbf16>
    %12 = vector.shape_cast %11 : vector<1x1x8x8xbf16> to vector<8x8xbf16>
    %c2_16 = arith.constant 2 : index
    %c0_17 = arith.constant 0 : index
    %c0_18 = arith.constant 0 : index
    %13 = vector.load %arg4[%c2_16, %c0_17, %c0_18] : memref<4x8x32xbf16, #tpu.memory_space<vmem>>, vector<1x8x32xbf16>
    %14 = vector.shape_cast %13 : vector<1x8x32xbf16> to vector<8x32xbf16>
    %cst_19 = arith.constant dense<0.000000e+00> : vector<8x32xf32>
    %15 = tpu.matmul %12, %14, %cst_19 {dimension_numbers = #tpu.dot_dimension_numbers<[1], [0], [0], [1], [0, 0, 1, 1], [], []>} : vector<8x8xbf16>, vector<8x32xbf16>, vector<8x32xf32> -> vector<8x32xf32>
    %16 = arith.addf %10, %15 : vector<8x32xf32>
    %c0_20 = arith.constant 0 : index
    %c3 = arith.constant 3 : index
    %c0_21 = arith.constant 0 : index
    %c0_22 = arith.constant 0 : index
    %17 = vector.load %arg2[%c0_20, %c3, %c0_21, %c0_22] : memref<1x4x8x8xbf16, #tpu.memory_space<vmem>>, vector<1x1x8x8xbf16>
    %18 = vector.shape_cast %17 : vector<1x1x8x8xbf16> to vector<8x8xbf16>
    %c3_23 = arith.constant 3 : index
    %c0_24 = arith.constant 0 : index
    %c0_25 = arith.constant 0 : index
    %19 = vector.load %arg4[%c3_23, %c0_24, %c0_25] : memref<4x8x32xbf16, #tpu.memory_space<vmem>>, vector<1x8x32xbf16>
    %20 = vector.shape_cast %19 : vector<1x8x32xbf16> to vector<8x32xbf16>
    %cst_26 = arith.constant dense<0.000000e+00> : vector<8x32xf32>
    %21 = tpu.matmul %18, %20, %cst_26 {dimension_numbers = #tpu.dot_dimension_numbers<[1], [0], [0], [1], [0, 0, 1, 1], [], []>} : vector<8x8xbf16>, vector<8x32xbf16>, vector<8x32xf32> -> vector<8x32xf32>
    %22 = arith.addf %16, %21 : vector<8x32xf32>
    %c0_27 = arith.constant 0 : index
    %c0_28 = arith.constant 0 : index
    %23 = vector.load %arg5[%c0_27, %c0_28] : memref<1x32xf32, #tpu.memory_space<vmem>>, vector<1x32xf32>
    %24 = vector.broadcast %23 : vector<1x32xf32> to vector<8x32xf32>
    %25 = arith.addf %22, %24 : vector<8x32xf32>
    %c0_29 = arith.constant 0 : index
    %c0_30 = arith.constant 0 : index
    %c0_31 = arith.constant 0 : index
    %26 = vector.load %arg3[%c0_29, %c0_30, %c0_31] : memref<1x8x32xbf16, #tpu.memory_space<vmem>>, vector<1x8x32xbf16>
    %27 = vector.shape_cast %26 : vector<1x8x32xbf16> to vector<8x32xbf16>
    %28 = arith.extf %27 : vector<8x32xbf16> to vector<8x32xf32>
    %29 = arith.addf %25, %28 : vector<8x32xf32>
    %cst_32 = arith.constant dense<0.000000e+00> : vector<8xf32>
    %30 = vector.multi_reduction <add>, %29, %cst_32 [1] : vector<8x32xf32> to vector<8xf32>
    %31 = vector.shape_cast %30 : vector<8xf32> to vector<8x1xf32>
    %cst_33 = arith.constant 3.200000e+01 : f32
    %32 = vector.broadcast %cst_33 : f32 to vector<8x1xf32>
    %33 = arith.divf %31, %32 : vector<8x1xf32>
    %34 = vector.broadcast %33 : vector<8x1xf32> to vector<8x32xf32>
    %35 = arith.subf %29, %34 : vector<8x32xf32>
    %36 = arith.mulf %35, %35 : vector<8x32xf32>
    %cst_34 = arith.constant dense<0.000000e+00> : vector<8xf32>
    %37 = vector.multi_reduction <add>, %36, %cst_34 [1] : vector<8x32xf32> to vector<8xf32>
    %38 = vector.shape_cast %37 : vector<8xf32> to vector<8x1xf32>
    %cst_35 = arith.constant 3.200000e+01 : f32
    %39 = vector.broadcast %cst_35 : f32 to vector<8x1xf32>
    %40 = arith.divf %38, %39 : vector<8x1xf32>
    %41 = vector.broadcast %33 : vector<8x1xf32> to vector<8x32xf32>
    %42 = arith.subf %29, %41 : vector<8x32xf32>
    %cst_36 = arith.constant 9.99999974E-6 : f32
    %43 = vector.broadcast %cst_36 : f32 to vector<8x1xf32>
    %44 = arith.addf %40, %43 : vector<8x1xf32>
    %45 = math.rsqrt %44 : vector<8x1xf32>
    %46 = vector.broadcast %45 : vector<8x1xf32> to vector<8x32xf32>
    %47 = arith.mulf %42, %46 : vector<8x32xf32>
    %c0_37 = arith.constant 0 : index
    %c0_38 = arith.constant 0 : index
    %48 = vector.load %arg6[%c0_37, %c0_38] : memref<1x32xf32, #tpu.memory_space<vmem>>, vector<1x32xf32>
    %49 = vector.broadcast %48 : vector<1x32xf32> to vector<8x32xf32>
    %50 = arith.mulf %47, %49 : vector<8x32xf32>
    %c0_39 = arith.constant 0 : index
    %c0_40 = arith.constant 0 : index
    %51 = vector.load %arg7[%c0_39, %c0_40] : memref<1x32xf32, #tpu.memory_space<vmem>>, vector<1x32xf32>
    %52 = vector.broadcast %51 : vector<1x32xf32> to vector<8x32xf32>
    %53 = arith.addf %50, %52 : vector<8x32xf32>
    %54 = arith.truncf %53 : vector<8x32xf32> to vector<8x32xbf16>
    %c0_41 = arith.constant 0 : index
    %c0_42 = arith.constant 0 : index
    %c0_43 = arith.constant 0 : index
    %55 = vector.load %arg8[%c0_41, %c0_42, %c0_43] : memref<1x8x32xbf16, #tpu.memory_space<vmem>>, vector<1x8x32xbf16>
    %56 = vector.shape_cast %55 : vector<1x8x32xbf16> to vector<8x32xbf16>
    %57 = vector.shape_cast %54 : vector<8x32xbf16> to vector<1x8x32xbf16>
    tpu.vector_store %arg8[%c0_41, %c0_42, %c0_43], %57 {strides = array<i32>} : memref<1x8x32xbf16, #tpu.memory_space<vmem>>, vector<1x8x32xbf16>,
    return
  }
  func.func @transform_0(%arg0: i32, %arg1: i32) -> (i32, i32, i32, i32) {
    %c0_i32 = arith.constant 0 : i32
    %c0_i32_0 = arith.constant 0 : i32
    %c0_i32_1 = arith.constant 0 : i32
    return %arg0, %c0_i32, %arg1, %c0_i32_0 : i32, i32, i32, i32
  }
  func.func @transform_1(%arg0: i32, %arg1: i32) -> (i32, i32, i32) {
    %c0_i32 = arith.constant 0 : i32
    %c0_i32_0 = arith.constant 0 : i32
    return %arg0, %arg1, %c0_i32 : i32, i32, i32
  }
  func.func @transform_2(%arg0: i32, %arg1: i32) -> (i32, i32, i32) {
    %c0_i32 = arith.constant 0 : i32
    %c0_i32_0 = arith.constant 0 : i32
    %c0_i32_1 = arith.constant 0 : i32
    %c0_i32_2 = arith.constant 0 : i32
    return %c0_i32, %c0_i32_0, %c0_i32_1 : i32, i32, i32
  }
  func.func @transform_3(%arg0: i32, %arg1: i32) -> (i32, i32) {
    %c0_i32 = arith.constant 0 : i32
    %c0_i32_0 = arith.constant 0 : i32
    %c0_i32_1 = arith.constant 0 : i32
    return %c0_i32, %c0_i32_0 : i32, i32
  }
  func.func @transform_4(%arg0: i32, %arg1: i32) -> (i32, i32) {
    %c0_i32 = arith.constant 0 : i32
    %c0_i32_0 = arith.constant 0 : i32
    %c0_i32_1 = arith.constant 0 : i32
    return %c0_i32, %c0_i32_0 : i32, i32
  }
  func.func @transform_5(%arg0: i32, %arg1: i32) -> (i32, i32) {
    %c0_i32 = arith.constant 0 : i32
    %c0_i32_0 = arith.constant 0 : i32
    %c0_i32_1 = arith.constant 0 : i32
    return %c0_i32, %c0_i32_0 : i32, i32
  }
  func.func @transform_6(%arg0: i32, %arg1: i32) -> (i32, i32, i32) {
    %c0_i32 = arith.constant 0 : i32
    %c0_i32_0 = arith.constant 0 : i32
    return %arg0, %arg1, %c0_i32 : i32, i32, i32
  }
}

module attributes {stable_mosaic.version = 11 : i64} {
  func.func @_self_attn_kernel(%arg0: i32, %arg1: i32, %arg2: memref<1x16x32xbf16, #tpu.memory_space<vmem>>, %arg3: memref<1x16x32xbf16, #tpu.memory_space<vmem>>, %arg4: memref<1x32x8xbf16, #tpu.memory_space<vmem>>, %arg5: memref<1x1x8xf32, #tpu.memory_space<vmem>>, %arg6: memref<1x32x8xbf16, #tpu.memory_space<vmem>>, %arg7: memref<1x1x8xf32, #tpu.memory_space<vmem>>, %arg8: memref<1x32x8xbf16, #tpu.memory_space<vmem>>, %arg9: memref<1x1x8xf32, #tpu.memory_space<vmem>>, %arg10: memref<1x1x16x8xbf16, #tpu.memory_space<vmem>>) attributes {dimension_semantics = [#tpu.dimension_semantics<parallel>, #tpu.dimension_semantics<parallel>], iteration_bounds = array<i64: 2, 4>, scalar_prefetch = 0 : i64, scratch_operands = 0 : i64, tpu.core_type = #tpu.core_type<tc>, window_params = [{transform_indices = @transform_0, window_bounds = array<i64: 1, 16, 32>}, {transform_indices = @transform_1, window_bounds = array<i64: 1, 16, 32>}, {transform_indices = @transform_2, window_bounds = array<i64: 1, 32, 8>}, {transform_indices = @transform_3, window_bounds = array<i64: 1, 1, 8>}, {transform_indices = @transform_4, window_bounds = array<i64: 1, 32, 8>}, {transform_indices = @transform_5, window_bounds = array<i64: 1, 1, 8>}, {transform_indices = @transform_6, window_bounds = array<i64: 1, 32, 8>}, {transform_indices = @transform_7, window_bounds = array<i64: 1, 1, 8>}, {transform_indices = @transform_8, window_bounds = array<i64: 1, 1, 16, 8>}]} {
    %c0 = arith.constant 0 : index
    %c0_0 = arith.constant 0 : index
    %c0_1 = arith.constant 0 : index
    %0 = vector.load %arg2[%c0, %c0_0, %c0_1] : memref<1x16x32xbf16, #tpu.memory_space<vmem>>, vector<1x16x32xbf16>
    %1 = vector.shape_cast %0 : vector<1x16x32xbf16> to vector<16x32xbf16>
    %c0_2 = arith.constant 0 : index
    %c0_3 = arith.constant 0 : index
    %c0_4 = arith.constant 0 : index
    %2 = vector.load %arg3[%c0_2, %c0_3, %c0_4] : memref<1x16x32xbf16, #tpu.memory_space<vmem>>, vector<1x16x32xbf16>
    %3 = vector.shape_cast %2 : vector<1x16x32xbf16> to vector<16x32xbf16>
    %4 = arith.addf %1, %3 : vector<16x32xbf16>
    %c0_5 = arith.constant 0 : index
    %c0_6 = arith.constant 0 : index
    %c0_7 = arith.constant 0 : index
    %5 = vector.load %arg4[%c0_5, %c0_6, %c0_7] : memref<1x32x8xbf16, #tpu.memory_space<vmem>>, vector<1x32x8xbf16>
    %6 = vector.shape_cast %5 : vector<1x32x8xbf16> to vector<32x8xbf16>
    %cst = arith.constant dense<0.000000e+00> : vector<16x8xf32>
    %7 = tpu.matmul %4, %6, %cst {dimension_numbers = #tpu.dot_dimension_numbers<[1], [0], [0], [1], [0, 0, 1, 1], [], []>} : vector<16x32xbf16>, vector<32x8xbf16>, vector<16x8xf32> -> vector<16x8xf32>
    %c0_8 = arith.constant 0 : index
    %c0_9 = arith.constant 0 : index
    %c0_10 = arith.constant 0 : index
    %8 = vector.load %arg5[%c0_8, %c0_9, %c0_10] : memref<1x1x8xf32, #tpu.memory_space<vmem>>, vector<1x1x8xf32>
    %9 = vector.shape_cast %8 : vector<1x1x8xf32> to vector<1x8xf32>
    %10 = vector.broadcast %9 : vector<1x8xf32> to vector<16x8xf32>
    %11 = arith.addf %7, %10 : vector<16x8xf32>
    %c0_11 = arith.constant 0 : index
    %c0_12 = arith.constant 0 : index
    %c0_13 = arith.constant 0 : index
    %12 = vector.load %arg6[%c0_11, %c0_12, %c0_13] : memref<1x32x8xbf16, #tpu.memory_space<vmem>>, vector<1x32x8xbf16>
    %13 = vector.shape_cast %12 : vector<1x32x8xbf16> to vector<32x8xbf16>
    %cst_14 = arith.constant dense<0.000000e+00> : vector<16x8xf32>
    %14 = tpu.matmul %4, %13, %cst_14 {dimension_numbers = #tpu.dot_dimension_numbers<[1], [0], [0], [1], [0, 0, 1, 1], [], []>} : vector<16x32xbf16>, vector<32x8xbf16>, vector<16x8xf32> -> vector<16x8xf32>
    %c0_15 = arith.constant 0 : index
    %c0_16 = arith.constant 0 : index
    %c0_17 = arith.constant 0 : index
    %15 = vector.load %arg7[%c0_15, %c0_16, %c0_17] : memref<1x1x8xf32, #tpu.memory_space<vmem>>, vector<1x1x8xf32>
    %16 = vector.shape_cast %15 : vector<1x1x8xf32> to vector<1x8xf32>
    %17 = vector.broadcast %16 : vector<1x8xf32> to vector<16x8xf32>
    %18 = arith.addf %14, %17 : vector<16x8xf32>
    %c0_18 = arith.constant 0 : index
    %c0_19 = arith.constant 0 : index
    %c0_20 = arith.constant 0 : index
    %19 = vector.load %arg8[%c0_18, %c0_19, %c0_20] : memref<1x32x8xbf16, #tpu.memory_space<vmem>>, vector<1x32x8xbf16>
    %20 = vector.shape_cast %19 : vector<1x32x8xbf16> to vector<32x8xbf16>
    %cst_21 = arith.constant dense<0.000000e+00> : vector<16x8xf32>
    %21 = tpu.matmul %1, %20, %cst_21 {dimension_numbers = #tpu.dot_dimension_numbers<[1], [0], [0], [1], [0, 0, 1, 1], [], []>} : vector<16x32xbf16>, vector<32x8xbf16>, vector<16x8xf32> -> vector<16x8xf32>
    %c0_22 = arith.constant 0 : index
    %c0_23 = arith.constant 0 : index
    %c0_24 = arith.constant 0 : index
    %22 = vector.load %arg9[%c0_22, %c0_23, %c0_24] : memref<1x1x8xf32, #tpu.memory_space<vmem>>, vector<1x1x8xf32>
    %23 = vector.shape_cast %22 : vector<1x1x8xf32> to vector<1x8xf32>
    %24 = vector.broadcast %23 : vector<1x8xf32> to vector<16x8xf32>
    %25 = arith.addf %21, %24 : vector<16x8xf32>
    %26 = arith.truncf %11 : vector<16x8xf32> to vector<16x8xbf16>
    %27 = arith.truncf %18 : vector<16x8xf32> to vector<16x8xbf16>
    %cst_25 = arith.constant dense<0.000000e+00> : vector<16x16xf32>
    %28 = tpu.matmul %26, %27, %cst_25 {dimension_numbers = #tpu.dot_dimension_numbers<[1], [1], [0], [0], [0, 0, 1, 0], [], []>} : vector<16x8xbf16>, vector<16x8xbf16>, vector<16x16xf32> -> vector<16x16xf32>
    %cst_26 = arith.constant dense<0xFF800000> : vector<16xf32>
    %29 = vector.multi_reduction <maximumf>, %28, %cst_26 [1] : vector<16x16xf32> to vector<16xf32>
    %30 = vector.shape_cast %29 : vector<16xf32> to vector<16x1xf32>
    %31 = vector.broadcast %30 : vector<16x1xf32> to vector<16x16xf32>
    %32 = arith.subf %28, %31 : vector<16x16xf32>
    %33 = math.exp %32 : vector<16x16xf32>
    %cst_27 = arith.constant dense<0.000000e+00> : vector<16xf32>
    %34 = vector.multi_reduction <add>, %33, %cst_27 [1] : vector<16x16xf32> to vector<16xf32>
    %35 = vector.shape_cast %34 : vector<16xf32> to vector<16x1xf32>
    %36 = tpu.reciprocal %35 {approx = true} : vector<16x1xf32> -> vector<16x1xf32>
    %37 = vector.broadcast %36 : vector<16x1xf32> to vector<16x16xf32>
    %38 = arith.mulf %33, %37 : vector<16x16xf32>
    %39 = arith.truncf %38 : vector<16x16xf32> to vector<16x16xbf16>
    %40 = arith.truncf %25 : vector<16x8xf32> to vector<16x8xbf16>
    %cst_28 = arith.constant dense<0.000000e+00> : vector<16x8xf32>
    %41 = tpu.matmul %39, %40, %cst_28 {dimension_numbers = #tpu.dot_dimension_numbers<[1], [0], [0], [1], [0, 0, 1, 1], [], []>} : vector<16x16xbf16>, vector<16x8xbf16>, vector<16x8xf32> -> vector<16x8xf32>
    %42 = arith.truncf %41 : vector<16x8xf32> to vector<16x8xbf16>
    %c0_29 = arith.constant 0 : index
    %c0_30 = arith.constant 0 : index
    %c0_31 = arith.constant 0 : index
    %c0_32 = arith.constant 0 : index
    %43 = vector.load %arg10[%c0_29, %c0_30, %c0_31, %c0_32] : memref<1x1x16x8xbf16, #tpu.memory_space<vmem>>, vector<1x1x16x8xbf16>
    %44 = vector.shape_cast %43 : vector<1x1x16x8xbf16> to vector<16x8xbf16>
    %45 = vector.shape_cast %42 : vector<16x8xbf16> to vector<1x1x16x8xbf16>
    tpu.vector_store %arg10[%c0_29, %c0_30, %c0_31, %c0_32], %45 {strides = array<i32>} : memref<1x1x16x8xbf16, #tpu.memory_space<vmem>>, vector<1x1x16x8xbf16>,
    return
  }
  func.func @transform_0(%arg0: i32, %arg1: i32) -> (i32, i32, i32) {
    %c0_i32 = arith.constant 0 : i32
    %c0_i32_0 = arith.constant 0 : i32
    %c0_i32_1 = arith.constant 0 : i32
    return %arg0, %c0_i32, %c0_i32_0 : i32, i32, i32
  }
  func.func @transform_1(%arg0: i32, %arg1: i32) -> (i32, i32, i32) {
    %c0_i32 = arith.constant 0 : i32
    %c0_i32_0 = arith.constant 0 : i32
    %c0_i32_1 = arith.constant 0 : i32
    return %arg0, %c0_i32, %c0_i32_0 : i32, i32, i32
  }
  func.func @transform_2(%arg0: i32, %arg1: i32) -> (i32, i32, i32) {
    %c0_i32 = arith.constant 0 : i32
    %c0_i32_0 = arith.constant 0 : i32
    %c0_i32_1 = arith.constant 0 : i32
    return %arg1, %c0_i32, %c0_i32_0 : i32, i32, i32
  }
  func.func @transform_3(%arg0: i32, %arg1: i32) -> (i32, i32, i32) {
    %c0_i32 = arith.constant 0 : i32
    %c0_i32_0 = arith.constant 0 : i32
    %c0_i32_1 = arith.constant 0 : i32
    return %arg1, %c0_i32, %c0_i32_0 : i32, i32, i32
  }
  func.func @transform_4(%arg0: i32, %arg1: i32) -> (i32, i32, i32) {
    %c0_i32 = arith.constant 0 : i32
    %c0_i32_0 = arith.constant 0 : i32
    %c0_i32_1 = arith.constant 0 : i32
    return %arg1, %c0_i32, %c0_i32_0 : i32, i32, i32
  }
  func.func @transform_5(%arg0: i32, %arg1: i32) -> (i32, i32, i32) {
    %c0_i32 = arith.constant 0 : i32
    %c0_i32_0 = arith.constant 0 : i32
    %c0_i32_1 = arith.constant 0 : i32
    return %arg1, %c0_i32, %c0_i32_0 : i32, i32, i32
  }
  func.func @transform_6(%arg0: i32, %arg1: i32) -> (i32, i32, i32) {
    %c0_i32 = arith.constant 0 : i32
    %c0_i32_0 = arith.constant 0 : i32
    %c0_i32_1 = arith.constant 0 : i32
    return %arg1, %c0_i32, %c0_i32_0 : i32, i32, i32
  }
  func.func @transform_7(%arg0: i32, %arg1: i32) -> (i32, i32, i32) {
    %c0_i32 = arith.constant 0 : i32
    %c0_i32_0 = arith.constant 0 : i32
    %c0_i32_1 = arith.constant 0 : i32
    return %arg1, %c0_i32, %c0_i32_0 : i32, i32, i32
  }
  func.func @transform_8(%arg0: i32, %arg1: i32) -> (i32, i32, i32, i32) {
    %c0_i32 = arith.constant 0 : i32
    %c0_i32_0 = arith.constant 0 : i32
    %c0_i32_1 = arith.constant 0 : i32
    return %arg0, %arg1, %c0_i32, %c0_i32_0 : i32, i32, i32, i32
  }
}

module attributes {stable_mosaic.version = 11 : i64} {
  func.func @_ffn_add_ln_kernel(%arg0: i32, %arg1: memref<16x32xbf16, #tpu.memory_space<vmem>>, %arg2: memref<32x64xbf16, #tpu.memory_space<vmem>>, %arg3: memref<1x64xf32, #tpu.memory_space<vmem>>, %arg4: memref<64x32xbf16, #tpu.memory_space<vmem>>, %arg5: memref<1x32xf32, #tpu.memory_space<vmem>>, %arg6: memref<1x32xf32, #tpu.memory_space<vmem>>, %arg7: memref<1x32xf32, #tpu.memory_space<vmem>>, %arg8: memref<16x32xbf16, #tpu.memory_space<vmem>>) attributes {dimension_semantics = [#tpu.dimension_semantics<parallel>], iteration_bounds = array<i64: 2>, scalar_prefetch = 0 : i64, scratch_operands = 0 : i64, tpu.core_type = #tpu.core_type<tc>, window_params = [{transform_indices = @transform_0, window_bounds = array<i64: 16, 32>}, {pipeline_mode = #tpu.pipeline_mode<synchronous>, transform_indices = @transform_1, window_bounds = array<i64: 32, 64>}, {pipeline_mode = #tpu.pipeline_mode<synchronous>, transform_indices = @transform_2, window_bounds = array<i64: 1, 64>}, {pipeline_mode = #tpu.pipeline_mode<synchronous>, transform_indices = @transform_3, window_bounds = array<i64: 64, 32>}, {pipeline_mode = #tpu.pipeline_mode<synchronous>, transform_indices = @transform_4, window_bounds = array<i64: 1, 32>}, {pipeline_mode = #tpu.pipeline_mode<synchronous>, transform_indices = @transform_5, window_bounds = array<i64: 1, 32>}, {pipeline_mode = #tpu.pipeline_mode<synchronous>, transform_indices = @transform_6, window_bounds = array<i64: 1, 32>}, {transform_indices = @transform_7, window_bounds = array<i64: 16, 32>}]} {
    %c0 = arith.constant 0 : index
    %c0_0 = arith.constant 0 : index
    %0 = vector.load %arg1[%c0, %c0_0] : memref<16x32xbf16, #tpu.memory_space<vmem>>, vector<16x32xbf16>
    %c0_1 = arith.constant 0 : index
    %c0_2 = arith.constant 0 : index
    %1 = vector.load %arg2[%c0_1, %c0_2] : memref<32x64xbf16, #tpu.memory_space<vmem>>, vector<32x64xbf16>
    %cst = arith.constant dense<0.000000e+00> : vector<16x64xf32>
    %2 = tpu.matmul %0, %1, %cst {dimension_numbers = #tpu.dot_dimension_numbers<[1], [0], [0], [1], [0, 0, 1, 1], [], []>} : vector<16x32xbf16>, vector<32x64xbf16>, vector<16x64xf32> -> vector<16x64xf32>
    %c0_3 = arith.constant 0 : index
    %c0_4 = arith.constant 0 : index
    %3 = vector.load %arg3[%c0_3, %c0_4] : memref<1x64xf32, #tpu.memory_space<vmem>>, vector<1x64xf32>
    %4 = vector.broadcast %3 : vector<1x64xf32> to vector<16x64xf32>
    %5 = arith.addf %2, %4 : vector<16x64xf32>
    %cst_5 = arith.constant 0.000000e+00 : f32
    %6 = vector.broadcast %cst_5 : f32 to vector<16x64xf32>
    %7 = arith.maximumf %5, %6 : vector<16x64xf32>
    %8 = arith.truncf %7 : vector<16x64xf32> to vector<16x64xbf16>
    %c0_6 = arith.constant 0 : index
    %c0_7 = arith.constant 0 : index
    %9 = vector.load %arg4[%c0_6, %c0_7] : memref<64x32xbf16, #tpu.memory_space<vmem>>, vector<64x32xbf16>
    %cst_8 = arith.constant dense<0.000000e+00> : vector<16x32xf32>
    %10 = tpu.matmul %8, %9, %cst_8 {dimension_numbers = #tpu.dot_dimension_numbers<[1], [0], [0], [1], [0, 0, 1, 1], [], []>} : vector<16x64xbf16>, vector<64x32xbf16>, vector<16x32xf32> -> vector<16x32xf32>
    %c0_9 = arith.constant 0 : index
    %c0_10 = arith.constant 0 : index
    %11 = vector.load %arg5[%c0_9, %c0_10] : memref<1x32xf32, #tpu.memory_space<vmem>>, vector<1x32xf32>
    %12 = vector.broadcast %11 : vector<1x32xf32> to vector<16x32xf32>
    %13 = arith.addf %10, %12 : vector<16x32xf32>
    %14 = arith.extf %0 : vector<16x32xbf16> to vector<16x32xf32>
    %15 = arith.addf %13, %14 : vector<16x32xf32>
    %cst_11 = arith.constant dense<0.000000e+00> : vector<16xf32>
    %16 = vector.multi_reduction <add>, %15, %cst_11 [1] : vector<16x32xf32> to vector<16xf32>
    %17 = vector.shape_cast %16 : vector<16xf32> to vector<16x1xf32>
    %cst_12 = arith.constant 3.200000e+01 : f32
    %18 = vector.broadcast %cst_12 : f32 to vector<16x1xf32>
    %19 = arith.divf %17, %18 : vector<16x1xf32>
    %20 = vector.broadcast %19 : vector<16x1xf32> to vector<16x32xf32>
    %21 = arith.subf %15, %20 : vector<16x32xf32>
    %22 = arith.mulf %21, %21 : vector<16x32xf32>
    %cst_13 = arith.constant dense<0.000000e+00> : vector<16xf32>
    %23 = vector.multi_reduction <add>, %22, %cst_13 [1] : vector<16x32xf32> to vector<16xf32>
    %24 = vector.shape_cast %23 : vector<16xf32> to vector<16x1xf32>
    %cst_14 = arith.constant 3.200000e+01 : f32
    %25 = vector.broadcast %cst_14 : f32 to vector<16x1xf32>
    %26 = arith.divf %24, %25 : vector<16x1xf32>
    %27 = vector.broadcast %19 : vector<16x1xf32> to vector<16x32xf32>
    %28 = arith.subf %15, %27 : vector<16x32xf32>
    %cst_15 = arith.constant 9.99999974E-6 : f32
    %29 = vector.broadcast %cst_15 : f32 to vector<16x1xf32>
    %30 = arith.addf %26, %29 : vector<16x1xf32>
    %31 = math.rsqrt %30 : vector<16x1xf32>
    %32 = vector.broadcast %31 : vector<16x1xf32> to vector<16x32xf32>
    %33 = arith.mulf %28, %32 : vector<16x32xf32>
    %c0_16 = arith.constant 0 : index
    %c0_17 = arith.constant 0 : index
    %34 = vector.load %arg6[%c0_16, %c0_17] : memref<1x32xf32, #tpu.memory_space<vmem>>, vector<1x32xf32>
    %35 = vector.broadcast %34 : vector<1x32xf32> to vector<16x32xf32>
    %36 = arith.mulf %33, %35 : vector<16x32xf32>
    %c0_18 = arith.constant 0 : index
    %c0_19 = arith.constant 0 : index
    %37 = vector.load %arg7[%c0_18, %c0_19] : memref<1x32xf32, #tpu.memory_space<vmem>>, vector<1x32xf32>
    %38 = vector.broadcast %37 : vector<1x32xf32> to vector<16x32xf32>
    %39 = arith.addf %36, %38 : vector<16x32xf32>
    %40 = arith.truncf %39 : vector<16x32xf32> to vector<16x32xbf16>
    %c0_20 = arith.constant 0 : index
    %c0_21 = arith.constant 0 : index
    %41 = vector.load %arg8[%c0_20, %c0_21] : memref<16x32xbf16, #tpu.memory_space<vmem>>, vector<16x32xbf16>
    tpu.vector_store %arg8[%c0_20, %c0_21], %40 {strides = array<i32>} : memref<16x32xbf16, #tpu.memory_space<vmem>>, vector<16x32xbf16>,
    return
  }
  func.func @transform_0(%arg0: i32) -> (i32, i32) {
    %c0_i32 = arith.constant 0 : i32
    %c0_i32_0 = arith.constant 0 : i32
    return %arg0, %c0_i32 : i32, i32
  }
  func.func @transform_1(%arg0: i32) -> (i32, i32) {
    %c0_i32 = arith.constant 0 : i32
    %c0_i32_0 = arith.constant 0 : i32
    %c0_i32_1 = arith.constant 0 : i32
    return %c0_i32, %c0_i32_0 : i32, i32
  }
  func.func @transform_2(%arg0: i32) -> (i32, i32) {
    %c0_i32 = arith.constant 0 : i32
    %c0_i32_0 = arith.constant 0 : i32
    %c0_i32_1 = arith.constant 0 : i32
    return %c0_i32, %c0_i32_0 : i32, i32
  }
  func.func @transform_3(%arg0: i32) -> (i32, i32) {
    %c0_i32 = arith.constant 0 : i32
    %c0_i32_0 = arith.constant 0 : i32
    %c0_i32_1 = arith.constant 0 : i32
    return %c0_i32, %c0_i32_0 : i32, i32
  }
  func.func @transform_4(%arg0: i32) -> (i32, i32) {
    %c0_i32 = arith.constant 0 : i32
    %c0_i32_0 = arith.constant 0 : i32
    %c0_i32_1 = arith.constant 0 : i32
    return %c0_i32, %c0_i32_0 : i32, i32
  }
  func.func @transform_5(%arg0: i32) -> (i32, i32) {
    %c0_i32 = arith.constant 0 : i32
    %c0_i32_0 = arith.constant 0 : i32
    %c0_i32_1 = arith.constant 0 : i32
    return %c0_i32, %c0_i32_0 : i32, i32
  }
  func.func @transform_6(%arg0: i32) -> (i32, i32) {
    %c0_i32 = arith.constant 0 : i32
    %c0_i32_0 = arith.constant 0 : i32
    %c0_i32_1 = arith.constant 0 : i32
    return %c0_i32, %c0_i32_0 : i32, i32
  }
  func.func @transform_7(%arg0: i32) -> (i32, i32) {
    %c0_i32 = arith.constant 0 : i32
    %c0_i32_0 = arith.constant 0 : i32
    return %arg0, %c0_i32 : i32, i32
  }
}

module attributes {stable_mosaic.version = 11 : i64} {
  func.func @_self_attn_kernel(%arg0: i32, %arg1: i32, %arg2: memref<1x8x32xbf16, #tpu.memory_space<vmem>>, %arg3: memref<1x8x32xbf16, #tpu.memory_space<vmem>>, %arg4: memref<1x32x8xbf16, #tpu.memory_space<vmem>>, %arg5: memref<1x1x8xf32, #tpu.memory_space<vmem>>, %arg6: memref<1x32x8xbf16, #tpu.memory_space<vmem>>, %arg7: memref<1x1x8xf32, #tpu.memory_space<vmem>>, %arg8: memref<1x32x8xbf16, #tpu.memory_space<vmem>>, %arg9: memref<1x1x8xf32, #tpu.memory_space<vmem>>, %arg10: memref<1x1x8x8xbf16, #tpu.memory_space<vmem>>) attributes {dimension_semantics = [#tpu.dimension_semantics<parallel>, #tpu.dimension_semantics<parallel>], iteration_bounds = array<i64: 2, 4>, scalar_prefetch = 0 : i64, scratch_operands = 0 : i64, tpu.core_type = #tpu.core_type<tc>, window_params = [{transform_indices = @transform_0, window_bounds = array<i64: 1, 8, 32>}, {transform_indices = @transform_1, window_bounds = array<i64: 1, 8, 32>}, {transform_indices = @transform_2, window_bounds = array<i64: 1, 32, 8>}, {transform_indices = @transform_3, window_bounds = array<i64: 1, 1, 8>}, {transform_indices = @transform_4, window_bounds = array<i64: 1, 32, 8>}, {transform_indices = @transform_5, window_bounds = array<i64: 1, 1, 8>}, {transform_indices = @transform_6, window_bounds = array<i64: 1, 32, 8>}, {transform_indices = @transform_7, window_bounds = array<i64: 1, 1, 8>}, {transform_indices = @transform_8, window_bounds = array<i64: 1, 1, 8, 8>}]} {
    %c0 = arith.constant 0 : index
    %c0_0 = arith.constant 0 : index
    %c0_1 = arith.constant 0 : index
    %0 = vector.load %arg2[%c0, %c0_0, %c0_1] : memref<1x8x32xbf16, #tpu.memory_space<vmem>>, vector<1x8x32xbf16>
    %1 = vector.shape_cast %0 : vector<1x8x32xbf16> to vector<8x32xbf16>
    %c0_2 = arith.constant 0 : index
    %c0_3 = arith.constant 0 : index
    %c0_4 = arith.constant 0 : index
    %2 = vector.load %arg3[%c0_2, %c0_3, %c0_4] : memref<1x8x32xbf16, #tpu.memory_space<vmem>>, vector<1x8x32xbf16>
    %3 = vector.shape_cast %2 : vector<1x8x32xbf16> to vector<8x32xbf16>
    %4 = arith.addf %1, %3 : vector<8x32xbf16>
    %c0_5 = arith.constant 0 : index
    %c0_6 = arith.constant 0 : index
    %c0_7 = arith.constant 0 : index
    %5 = vector.load %arg4[%c0_5, %c0_6, %c0_7] : memref<1x32x8xbf16, #tpu.memory_space<vmem>>, vector<1x32x8xbf16>
    %6 = vector.shape_cast %5 : vector<1x32x8xbf16> to vector<32x8xbf16>
    %cst = arith.constant dense<0.000000e+00> : vector<8x8xf32>
    %7 = tpu.matmul %4, %6, %cst {dimension_numbers = #tpu.dot_dimension_numbers<[1], [0], [0], [1], [0, 0, 1, 1], [], []>} : vector<8x32xbf16>, vector<32x8xbf16>, vector<8x8xf32> -> vector<8x8xf32>
    %c0_8 = arith.constant 0 : index
    %c0_9 = arith.constant 0 : index
    %c0_10 = arith.constant 0 : index
    %8 = vector.load %arg5[%c0_8, %c0_9, %c0_10] : memref<1x1x8xf32, #tpu.memory_space<vmem>>, vector<1x1x8xf32>
    %9 = vector.shape_cast %8 : vector<1x1x8xf32> to vector<1x8xf32>
    %10 = vector.broadcast %9 : vector<1x8xf32> to vector<8x8xf32>
    %11 = arith.addf %7, %10 : vector<8x8xf32>
    %c0_11 = arith.constant 0 : index
    %c0_12 = arith.constant 0 : index
    %c0_13 = arith.constant 0 : index
    %12 = vector.load %arg6[%c0_11, %c0_12, %c0_13] : memref<1x32x8xbf16, #tpu.memory_space<vmem>>, vector<1x32x8xbf16>
    %13 = vector.shape_cast %12 : vector<1x32x8xbf16> to vector<32x8xbf16>
    %cst_14 = arith.constant dense<0.000000e+00> : vector<8x8xf32>
    %14 = tpu.matmul %4, %13, %cst_14 {dimension_numbers = #tpu.dot_dimension_numbers<[1], [0], [0], [1], [0, 0, 1, 1], [], []>} : vector<8x32xbf16>, vector<32x8xbf16>, vector<8x8xf32> -> vector<8x8xf32>
    %c0_15 = arith.constant 0 : index
    %c0_16 = arith.constant 0 : index
    %c0_17 = arith.constant 0 : index
    %15 = vector.load %arg7[%c0_15, %c0_16, %c0_17] : memref<1x1x8xf32, #tpu.memory_space<vmem>>, vector<1x1x8xf32>
    %16 = vector.shape_cast %15 : vector<1x1x8xf32> to vector<1x8xf32>
    %17 = vector.broadcast %16 : vector<1x8xf32> to vector<8x8xf32>
    %18 = arith.addf %14, %17 : vector<8x8xf32>
    %c0_18 = arith.constant 0 : index
    %c0_19 = arith.constant 0 : index
    %c0_20 = arith.constant 0 : index
    %19 = vector.load %arg8[%c0_18, %c0_19, %c0_20] : memref<1x32x8xbf16, #tpu.memory_space<vmem>>, vector<1x32x8xbf16>
    %20 = vector.shape_cast %19 : vector<1x32x8xbf16> to vector<32x8xbf16>
    %cst_21 = arith.constant dense<0.000000e+00> : vector<8x8xf32>
    %21 = tpu.matmul %1, %20, %cst_21 {dimension_numbers = #tpu.dot_dimension_numbers<[1], [0], [0], [1], [0, 0, 1, 1], [], []>} : vector<8x32xbf16>, vector<32x8xbf16>, vector<8x8xf32> -> vector<8x8xf32>
    %c0_22 = arith.constant 0 : index
    %c0_23 = arith.constant 0 : index
    %c0_24 = arith.constant 0 : index
    %22 = vector.load %arg9[%c0_22, %c0_23, %c0_24] : memref<1x1x8xf32, #tpu.memory_space<vmem>>, vector<1x1x8xf32>
    %23 = vector.shape_cast %22 : vector<1x1x8xf32> to vector<1x8xf32>
    %24 = vector.broadcast %23 : vector<1x8xf32> to vector<8x8xf32>
    %25 = arith.addf %21, %24 : vector<8x8xf32>
    %26 = arith.truncf %11 : vector<8x8xf32> to vector<8x8xbf16>
    %27 = arith.truncf %18 : vector<8x8xf32> to vector<8x8xbf16>
    %cst_25 = arith.constant dense<0.000000e+00> : vector<8x8xf32>
    %28 = tpu.matmul %26, %27, %cst_25 {dimension_numbers = #tpu.dot_dimension_numbers<[1], [1], [0], [0], [0, 0, 1, 0], [], []>} : vector<8x8xbf16>, vector<8x8xbf16>, vector<8x8xf32> -> vector<8x8xf32>
    %cst_26 = arith.constant dense<0xFF800000> : vector<8xf32>
    %29 = vector.multi_reduction <maximumf>, %28, %cst_26 [1] : vector<8x8xf32> to vector<8xf32>
    %30 = vector.shape_cast %29 : vector<8xf32> to vector<8x1xf32>
    %31 = vector.broadcast %30 : vector<8x1xf32> to vector<8x8xf32>
    %32 = arith.subf %28, %31 : vector<8x8xf32>
    %33 = math.exp %32 : vector<8x8xf32>
    %cst_27 = arith.constant dense<0.000000e+00> : vector<8xf32>
    %34 = vector.multi_reduction <add>, %33, %cst_27 [1] : vector<8x8xf32> to vector<8xf32>
    %35 = vector.shape_cast %34 : vector<8xf32> to vector<8x1xf32>
    %36 = tpu.reciprocal %35 {approx = true} : vector<8x1xf32> -> vector<8x1xf32>
    %37 = vector.broadcast %36 : vector<8x1xf32> to vector<8x8xf32>
    %38 = arith.mulf %33, %37 : vector<8x8xf32>
    %39 = arith.truncf %38 : vector<8x8xf32> to vector<8x8xbf16>
    %40 = arith.truncf %25 : vector<8x8xf32> to vector<8x8xbf16>
    %cst_28 = arith.constant dense<0.000000e+00> : vector<8x8xf32>
    %41 = tpu.matmul %39, %40, %cst_28 {dimension_numbers = #tpu.dot_dimension_numbers<[1], [0], [0], [1], [0, 0, 1, 1], [], []>} : vector<8x8xbf16>, vector<8x8xbf16>, vector<8x8xf32> -> vector<8x8xf32>
    %42 = arith.truncf %41 : vector<8x8xf32> to vector<8x8xbf16>
    %c0_29 = arith.constant 0 : index
    %c0_30 = arith.constant 0 : index
    %c0_31 = arith.constant 0 : index
    %c0_32 = arith.constant 0 : index
    %43 = vector.load %arg10[%c0_29, %c0_30, %c0_31, %c0_32] : memref<1x1x8x8xbf16, #tpu.memory_space<vmem>>, vector<1x1x8x8xbf16>
    %44 = vector.shape_cast %43 : vector<1x1x8x8xbf16> to vector<8x8xbf16>
    %45 = vector.shape_cast %42 : vector<8x8xbf16> to vector<1x1x8x8xbf16>
    tpu.vector_store %arg10[%c0_29, %c0_30, %c0_31, %c0_32], %45 {strides = array<i32>} : memref<1x1x8x8xbf16, #tpu.memory_space<vmem>>, vector<1x1x8x8xbf16>,
    return
  }
  func.func @transform_0(%arg0: i32, %arg1: i32) -> (i32, i32, i32) {
    %c0_i32 = arith.constant 0 : i32
    %c0_i32_0 = arith.constant 0 : i32
    %c0_i32_1 = arith.constant 0 : i32
    return %arg0, %c0_i32, %c0_i32_0 : i32, i32, i32
  }
  func.func @transform_1(%arg0: i32, %arg1: i32) -> (i32, i32, i32) {
    %c0_i32 = arith.constant 0 : i32
    %c0_i32_0 = arith.constant 0 : i32
    %c0_i32_1 = arith.constant 0 : i32
    return %arg0, %c0_i32, %c0_i32_0 : i32, i32, i32
  }
  func.func @transform_2(%arg0: i32, %arg1: i32) -> (i32, i32, i32) {
    %c0_i32 = arith.constant 0 : i32
    %c0_i32_0 = arith.constant 0 : i32
    %c0_i32_1 = arith.constant 0 : i32
    return %arg1, %c0_i32, %c0_i32_0 : i32, i32, i32
  }
  func.func @transform_3(%arg0: i32, %arg1: i32) -> (i32, i32, i32) {
    %c0_i32 = arith.constant 0 : i32
    %c0_i32_0 = arith.constant 0 : i32
    %c0_i32_1 = arith.constant 0 : i32
    return %arg1, %c0_i32, %c0_i32_0 : i32, i32, i32
  }
  func.func @transform_4(%arg0: i32, %arg1: i32) -> (i32, i32, i32) {
    %c0_i32 = arith.constant 0 : i32
    %c0_i32_0 = arith.constant 0 : i32
    %c0_i32_1 = arith.constant 0 : i32
    return %arg1, %c0_i32, %c0_i32_0 : i32, i32, i32
  }
  func.func @transform_5(%arg0: i32, %arg1: i32) -> (i32, i32, i32) {
    %c0_i32 = arith.constant 0 : i32
    %c0_i32_0 = arith.constant 0 : i32
    %c0_i32_1 = arith.constant 0 : i32
    return %arg1, %c0_i32, %c0_i32_0 : i32, i32, i32
  }
  func.func @transform_6(%arg0: i32, %arg1: i32) -> (i32, i32, i32) {
    %c0_i32 = arith.constant 0 : i32
    %c0_i32_0 = arith.constant 0 : i32
    %c0_i32_1 = arith.constant 0 : i32
    return %arg1, %c0_i32, %c0_i32_0 : i32, i32, i32
  }
  func.func @transform_7(%arg0: i32, %arg1: i32) -> (i32, i32, i32) {
    %c0_i32 = arith.constant 0 : i32
    %c0_i32_0 = arith.constant 0 : i32
    %c0_i32_1 = arith.constant 0 : i32
    return %arg1, %c0_i32, %c0_i32_0 : i32, i32, i32
  }
  func.func @transform_8(%arg0: i32, %arg1: i32) -> (i32, i32, i32, i32) {
    %c0_i32 = arith.constant 0 : i32
    %c0_i32_0 = arith.constant 0 : i32
    %c0_i32_1 = arith.constant 0 : i32
    return %arg0, %arg1, %c0_i32, %c0_i32_0 : i32, i32, i32, i32
  }
}

module attributes {stable_mosaic.version = 11 : i64} {
  func.func @_proj_add_ln_kernel(%arg0: i32, %arg1: i32, %arg2: memref<1x4x8x8xbf16, #tpu.memory_space<vmem>>, %arg3: memref<1x8x32xbf16, #tpu.memory_space<vmem>>, %arg4: memref<4x8x32xbf16, #tpu.memory_space<vmem>>, %arg5: memref<1x32xf32, #tpu.memory_space<vmem>>, %arg6: memref<1x32xf32, #tpu.memory_space<vmem>>, %arg7: memref<1x32xf32, #tpu.memory_space<vmem>>, %arg8: memref<1x8x32xbf16, #tpu.memory_space<vmem>>) attributes {dimension_semantics = [#tpu.dimension_semantics<parallel>, #tpu.dimension_semantics<parallel>], iteration_bounds = array<i64: 2, 1>, scalar_prefetch = 0 : i64, scratch_operands = 0 : i64, tpu.core_type = #tpu.core_type<tc>, window_params = [{transform_indices = @transform_0, window_bounds = array<i64: 1, 4, 8, 8>}, {transform_indices = @transform_1, window_bounds = array<i64: 1, 8, 32>}, {pipeline_mode = #tpu.pipeline_mode<synchronous>, transform_indices = @transform_2, window_bounds = array<i64: 4, 8, 32>}, {pipeline_mode = #tpu.pipeline_mode<synchronous>, transform_indices = @transform_3, window_bounds = array<i64: 1, 32>}, {pipeline_mode = #tpu.pipeline_mode<synchronous>, transform_indices = @transform_4, window_bounds = array<i64: 1, 32>}, {pipeline_mode = #tpu.pipeline_mode<synchronous>, transform_indices = @transform_5, window_bounds = array<i64: 1, 32>}, {transform_indices = @transform_6, window_bounds = array<i64: 1, 8, 32>}]} {
    %c0 = arith.constant 0 : index
    %c0_0 = arith.constant 0 : index
    %c0_1 = arith.constant 0 : index
    %c0_2 = arith.constant 0 : index
    %0 = vector.load %arg2[%c0, %c0_0, %c0_1, %c0_2] : memref<1x4x8x8xbf16, #tpu.memory_space<vmem>>, vector<1x1x8x8xbf16>
    %1 = vector.shape_cast %0 : vector<1x1x8x8xbf16> to vector<8x8xbf16>
    %c0_3 = arith.constant 0 : index
    %c0_4 = arith.constant 0 : index
    %c0_5 = arith.constant 0 : index
    %2 = vector.load %arg4[%c0_3, %c0_4, %c0_5] : memref<4x8x32xbf16, #tpu.memory_space<vmem>>, vector<1x8x32xbf16>
    %3 = vector.shape_cast %2 : vector<1x8x32xbf16> to vector<8x32xbf16>
    %cst = arith.constant dense<0.000000e+00> : vector<8x32xf32>
    %4 = tpu.matmul %1, %3, %cst {dimension_numbers = #tpu.dot_dimension_numbers<[1], [0], [0], [1], [0, 0, 1, 1], [], []>} : vector<8x8xbf16>, vector<8x32xbf16>, vector<8x32xf32> -> vector<8x32xf32>
    %c0_6 = arith.constant 0 : index
    %c1 = arith.constant 1 : index
    %c0_7 = arith.constant 0 : index
    %c0_8 = arith.constant 0 : index
    %5 = vector.load %arg2[%c0_6, %c1, %c0_7, %c0_8] : memref<1x4x8x8xbf16, #tpu.memory_space<vmem>>, vector<1x1x8x8xbf16>
    %6 = vector.shape_cast %5 : vector<1x1x8x8xbf16> to vector<8x8xbf16>
    %c1_9 = arith.constant 1 : index
    %c0_10 = arith.constant 0 : index
    %c0_11 = arith.constant 0 : index
    %7 = vector.load %arg4[%c1_9, %c0_10, %c0_11] : memref<4x8x32xbf16, #tpu.memory_space<vmem>>, vector<1x8x32xbf16>
    %8 = vector.shape_cast %7 : vector<1x8x32xbf16> to vector<8x32xbf16>
    %cst_12 = arith.constant dense<0.000000e+00> : vector<8x32xf32>
    %9 = tpu.matmul %6, %8, %cst_12 {dimension_numbers = #tpu.dot_dimension_numbers<[1], [0], [0], [1], [0, 0, 1, 1], [], []>} : vector<8x8xbf16>, vector<8x32xbf16>, vector<8x32xf32> -> vector<8x32xf32>
    %10 = arith.addf %4, %9 : vector<8x32xf32>
    %c0_13 = arith.constant 0 : index
    %c2 = arith.constant 2 : index
    %c0_14 = arith.constant 0 : index
    %c0_15 = arith.constant 0 : index
    %11 = vector.load %arg2[%c0_13, %c2, %c0_14, %c0_15] : memref<1x4x8x8xbf16, #tpu.memory_space<vmem>>, vector<1x1x8x8xbf16>
    %12 = vector.shape_cast %11 : vector<1x1x8x8xbf16> to vector<8x8xbf16>
    %c2_16 = arith.constant 2 : index
    %c0_17 = arith.constant 0 : index
    %c0_18 = arith.constant 0 : index
    %13 = vector.load %arg4[%c2_16, %c0_17, %c0_18] : memref<4x8x32xbf16, #tpu.memory_space<vmem>>, vector<1x8x32xbf16>
    %14 = vector.shape_cast %13 : vector<1x8x32xbf16> to vector<8x32xbf16>
    %cst_19 = arith.constant dense<0.000000e+00> : vector<8x32xf32>
    %15 = tpu.matmul %12, %14, %cst_19 {dimension_numbers = #tpu.dot_dimension_numbers<[1], [0], [0], [1], [0, 0, 1, 1], [], []>} : vector<8x8xbf16>, vector<8x32xbf16>, vector<8x32xf32> -> vector<8x32xf32>
    %16 = arith.addf %10, %15 : vector<8x32xf32>
    %c0_20 = arith.constant 0 : index
    %c3 = arith.constant 3 : index
    %c0_21 = arith.constant 0 : index
    %c0_22 = arith.constant 0 : index
    %17 = vector.load %arg2[%c0_20, %c3, %c0_21, %c0_22] : memref<1x4x8x8xbf16, #tpu.memory_space<vmem>>, vector<1x1x8x8xbf16>
    %18 = vector.shape_cast %17 : vector<1x1x8x8xbf16> to vector<8x8xbf16>
    %c3_23 = arith.constant 3 : index
    %c0_24 = arith.constant 0 : index
    %c0_25 = arith.constant 0 : index
    %19 = vector.load %arg4[%c3_23, %c0_24, %c0_25] : memref<4x8x32xbf16, #tpu.memory_space<vmem>>, vector<1x8x32xbf16>
    %20 = vector.shape_cast %19 : vector<1x8x32xbf16> to vector<8x32xbf16>
    %cst_26 = arith.constant dense<0.000000e+00> : vector<8x32xf32>
    %21 = tpu.matmul %18, %20, %cst_26 {dimension_numbers = #tpu.dot_dimension_numbers<[1], [0], [0], [1], [0, 0, 1, 1], [], []>} : vector<8x8xbf16>, vector<8x32xbf16>, vector<8x32xf32> -> vector<8x32xf32>
    %22 = arith.addf %16, %21 : vector<8x32xf32>
    %c0_27 = arith.constant 0 : index
    %c0_28 = arith.constant 0 : index
    %23 = vector.load %arg5[%c0_27, %c0_28] : memref<1x32xf32, #tpu.memory_space<vmem>>, vector<1x32xf32>
    %24 = vector.broadcast %23 : vector<1x32xf32> to vector<8x32xf32>
    %25 = arith.addf %22, %24 : vector<8x32xf32>
    %c0_29 = arith.constant 0 : index
    %c0_30 = arith.constant 0 : index
    %c0_31 = arith.constant 0 : index
    %26 = vector.load %arg3[%c0_29, %c0_30, %c0_31] : memref<1x8x32xbf16, #tpu.memory_space<vmem>>, vector<1x8x32xbf16>
    %27 = vector.shape_cast %26 : vector<1x8x32xbf16> to vector<8x32xbf16>
    %28 = arith.extf %27 : vector<8x32xbf16> to vector<8x32xf32>
    %29 = arith.addf %25, %28 : vector<8x32xf32>
    %cst_32 = arith.constant dense<0.000000e+00> : vector<8xf32>
    %30 = vector.multi_reduction <add>, %29, %cst_32 [1] : vector<8x32xf32> to vector<8xf32>
    %31 = vector.shape_cast %30 : vector<8xf32> to vector<8x1xf32>
    %cst_33 = arith.constant 3.200000e+01 : f32
    %32 = vector.broadcast %cst_33 : f32 to vector<8x1xf32>
    %33 = arith.divf %31, %32 : vector<8x1xf32>
    %34 = vector.broadcast %33 : vector<8x1xf32> to vector<8x32xf32>
    %35 = arith.subf %29, %34 : vector<8x32xf32>
    %36 = arith.mulf %35, %35 : vector<8x32xf32>
    %cst_34 = arith.constant dense<0.000000e+00> : vector<8xf32>
    %37 = vector.multi_reduction <add>, %36, %cst_34 [1] : vector<8x32xf32> to vector<8xf32>
    %38 = vector.shape_cast %37 : vector<8xf32> to vector<8x1xf32>
    %cst_35 = arith.constant 3.200000e+01 : f32
    %39 = vector.broadcast %cst_35 : f32 to vector<8x1xf32>
    %40 = arith.divf %38, %39 : vector<8x1xf32>
    %41 = vector.broadcast %33 : vector<8x1xf32> to vector<8x32xf32>
    %42 = arith.subf %29, %41 : vector<8x32xf32>
    %cst_36 = arith.constant 9.99999974E-6 : f32
    %43 = vector.broadcast %cst_36 : f32 to vector<8x1xf32>
    %44 = arith.addf %40, %43 : vector<8x1xf32>
    %45 = math.rsqrt %44 : vector<8x1xf32>
    %46 = vector.broadcast %45 : vector<8x1xf32> to vector<8x32xf32>
    %47 = arith.mulf %42, %46 : vector<8x32xf32>
    %c0_37 = arith.constant 0 : index
    %c0_38 = arith.constant 0 : index
    %48 = vector.load %arg6[%c0_37, %c0_38] : memref<1x32xf32, #tpu.memory_space<vmem>>, vector<1x32xf32>
    %49 = vector.broadcast %48 : vector<1x32xf32> to vector<8x32xf32>
    %50 = arith.mulf %47, %49 : vector<8x32xf32>
    %c0_39 = arith.constant 0 : index
    %c0_40 = arith.constant 0 : index
    %51 = vector.load %arg7[%c0_39, %c0_40] : memref<1x32xf32, #tpu.memory_space<vmem>>, vector<1x32xf32>
    %52 = vector.broadcast %51 : vector<1x32xf32> to vector<8x32xf32>
    %53 = arith.addf %50, %52 : vector<8x32xf32>
    %54 = arith.truncf %53 : vector<8x32xf32> to vector<8x32xbf16>
    %c0_41 = arith.constant 0 : index
    %c0_42 = arith.constant 0 : index
    %c0_43 = arith.constant 0 : index
    %55 = vector.load %arg8[%c0_41, %c0_42, %c0_43] : memref<1x8x32xbf16, #tpu.memory_space<vmem>>, vector<1x8x32xbf16>
    %56 = vector.shape_cast %55 : vector<1x8x32xbf16> to vector<8x32xbf16>
    %57 = vector.shape_cast %54 : vector<8x32xbf16> to vector<1x8x32xbf16>
    tpu.vector_store %arg8[%c0_41, %c0_42, %c0_43], %57 {strides = array<i32>} : memref<1x8x32xbf16, #tpu.memory_space<vmem>>, vector<1x8x32xbf16>,
    return
  }
  func.func @transform_0(%arg0: i32, %arg1: i32) -> (i32, i32, i32, i32) {
    %c0_i32 = arith.constant 0 : i32
    %c0_i32_0 = arith.constant 0 : i32
    %c0_i32_1 = arith.constant 0 : i32
    return %arg0, %c0_i32, %arg1, %c0_i32_0 : i32, i32, i32, i32
  }
  func.func @transform_1(%arg0: i32, %arg1: i32) -> (i32, i32, i32) {
    %c0_i32 = arith.constant 0 : i32
    %c0_i32_0 = arith.constant 0 : i32
    return %arg0, %arg1, %c0_i32 : i32, i32, i32
  }
  func.func @transform_2(%arg0: i32, %arg1: i32) -> (i32, i32, i32) {
    %c0_i32 = arith.constant 0 : i32
    %c0_i32_0 = arith.constant 0 : i32
    %c0_i32_1 = arith.constant 0 : i32
    %c0_i32_2 = arith.constant 0 : i32
    return %c0_i32, %c0_i32_0, %c0_i32_1 : i32, i32, i32
  }
  func.func @transform_3(%arg0: i32, %arg1: i32) -> (i32, i32) {
    %c0_i32 = arith.constant 0 : i32
    %c0_i32_0 = arith.constant 0 : i32
    %c0_i32_1 = arith.constant 0 : i32
    return %c0_i32, %c0_i32_0 : i32, i32
  }
  func.func @transform_4(%arg0: i32, %arg1: i32) -> (i32, i32) {
    %c0_i32 = arith.constant 0 : i32
    %c0_i32_0 = arith.constant 0 : i32
    %c0_i32_1 = arith.constant 0 : i32
    return %c0_i32, %c0_i32_0 : i32, i32
  }
  func.func @transform_5(%arg0: i32, %arg1: i32) -> (i32, i32) {
    %c0_i32 = arith.constant 0 : i32
    %c0_i32_0 = arith.constant 0 : i32
    %c0_i32_1 = arith.constant 0 : i32
    return %c0_i32, %c0_i32_0 : i32, i32
  }
  func.func @transform_6(%arg0: i32, %arg1: i32) -> (i32, i32, i32) {
    %c0_i32 = arith.constant 0 : i32
    %c0_i32_0 = arith.constant 0 : i32
    return %arg0, %arg1, %c0_i32 : i32, i32, i32
  }
}

module attributes {stable_mosaic.version = 11 : i64} {
  func.func @_cross_attn_kernel(%arg0: i32, %arg1: i32, %arg2: memref<1x8x32xbf16, #tpu.memory_space<vmem>>, %arg3: memref<1x8x32xbf16, #tpu.memory_space<vmem>>, %arg4: memref<1x16x32xbf16, #tpu.memory_space<vmem>>, %arg5: memref<1x16x32xbf16, #tpu.memory_space<vmem>>, %arg6: memref<1x32x8xbf16, #tpu.memory_space<vmem>>, %arg7: memref<1x1x8xf32, #tpu.memory_space<vmem>>, %arg8: memref<1x32x8xbf16, #tpu.memory_space<vmem>>, %arg9: memref<1x1x8xf32, #tpu.memory_space<vmem>>, %arg10: memref<1x32x8xbf16, #tpu.memory_space<vmem>>, %arg11: memref<1x1x8xf32, #tpu.memory_space<vmem>>, %arg12: memref<1x1x8x8xbf16, #tpu.memory_space<vmem>>) attributes {dimension_semantics = [#tpu.dimension_semantics<parallel>, #tpu.dimension_semantics<parallel>], iteration_bounds = array<i64: 2, 4>, scalar_prefetch = 0 : i64, scratch_operands = 0 : i64, tpu.core_type = #tpu.core_type<tc>, window_params = [{transform_indices = @transform_0, window_bounds = array<i64: 1, 8, 32>}, {transform_indices = @transform_1, window_bounds = array<i64: 1, 8, 32>}, {transform_indices = @transform_2, window_bounds = array<i64: 1, 16, 32>}, {transform_indices = @transform_3, window_bounds = array<i64: 1, 16, 32>}, {transform_indices = @transform_4, window_bounds = array<i64: 1, 32, 8>}, {transform_indices = @transform_5, window_bounds = array<i64: 1, 1, 8>}, {transform_indices = @transform_6, window_bounds = array<i64: 1, 32, 8>}, {transform_indices = @transform_7, window_bounds = array<i64: 1, 1, 8>}, {transform_indices = @transform_8, window_bounds = array<i64: 1, 32, 8>}, {transform_indices = @transform_9, window_bounds = array<i64: 1, 1, 8>}, {transform_indices = @transform_10, window_bounds = array<i64: 1, 1, 8, 8>}]} {
    %c0 = arith.constant 0 : index
    %c0_0 = arith.constant 0 : index
    %c0_1 = arith.constant 0 : index
    %0 = vector.load %arg2[%c0, %c0_0, %c0_1] : memref<1x8x32xbf16, #tpu.memory_space<vmem>>, vector<1x8x32xbf16>
    %1 = vector.shape_cast %0 : vector<1x8x32xbf16> to vector<8x32xbf16>
    %c0_2 = arith.constant 0 : index
    %c0_3 = arith.constant 0 : index
    %c0_4 = arith.constant 0 : index
    %2 = vector.load %arg3[%c0_2, %c0_3, %c0_4] : memref<1x8x32xbf16, #tpu.memory_space<vmem>>, vector<1x8x32xbf16>
    %3 = vector.shape_cast %2 : vector<1x8x32xbf16> to vector<8x32xbf16>
    %4 = arith.addf %1, %3 : vector<8x32xbf16>
    %c0_5 = arith.constant 0 : index
    %c0_6 = arith.constant 0 : index
    %c0_7 = arith.constant 0 : index
    %5 = vector.load %arg4[%c0_5, %c0_6, %c0_7] : memref<1x16x32xbf16, #tpu.memory_space<vmem>>, vector<1x16x32xbf16>
    %6 = vector.shape_cast %5 : vector<1x16x32xbf16> to vector<16x32xbf16>
    %c0_8 = arith.constant 0 : index
    %c0_9 = arith.constant 0 : index
    %c0_10 = arith.constant 0 : index
    %7 = vector.load %arg5[%c0_8, %c0_9, %c0_10] : memref<1x16x32xbf16, #tpu.memory_space<vmem>>, vector<1x16x32xbf16>
    %8 = vector.shape_cast %7 : vector<1x16x32xbf16> to vector<16x32xbf16>
    %9 = arith.addf %6, %8 : vector<16x32xbf16>
    %c0_11 = arith.constant 0 : index
    %c0_12 = arith.constant 0 : index
    %c0_13 = arith.constant 0 : index
    %10 = vector.load %arg6[%c0_11, %c0_12, %c0_13] : memref<1x32x8xbf16, #tpu.memory_space<vmem>>, vector<1x32x8xbf16>
    %11 = vector.shape_cast %10 : vector<1x32x8xbf16> to vector<32x8xbf16>
    %cst = arith.constant dense<0.000000e+00> : vector<8x8xf32>
    %12 = tpu.matmul %4, %11, %cst {dimension_numbers = #tpu.dot_dimension_numbers<[1], [0], [0], [1], [0, 0, 1, 1], [], []>} : vector<8x32xbf16>, vector<32x8xbf16>, vector<8x8xf32> -> vector<8x8xf32>
    %c0_14 = arith.constant 0 : index
    %c0_15 = arith.constant 0 : index
    %c0_16 = arith.constant 0 : index
    %13 = vector.load %arg7[%c0_14, %c0_15, %c0_16] : memref<1x1x8xf32, #tpu.memory_space<vmem>>, vector<1x1x8xf32>
    %14 = vector.shape_cast %13 : vector<1x1x8xf32> to vector<1x8xf32>
    %15 = vector.broadcast %14 : vector<1x8xf32> to vector<8x8xf32>
    %16 = arith.addf %12, %15 : vector<8x8xf32>
    %c0_17 = arith.constant 0 : index
    %c0_18 = arith.constant 0 : index
    %c0_19 = arith.constant 0 : index
    %17 = vector.load %arg8[%c0_17, %c0_18, %c0_19] : memref<1x32x8xbf16, #tpu.memory_space<vmem>>, vector<1x32x8xbf16>
    %18 = vector.shape_cast %17 : vector<1x32x8xbf16> to vector<32x8xbf16>
    %cst_20 = arith.constant dense<0.000000e+00> : vector<16x8xf32>
    %19 = tpu.matmul %9, %18, %cst_20 {dimension_numbers = #tpu.dot_dimension_numbers<[1], [0], [0], [1], [0, 0, 1, 1], [], []>} : vector<16x32xbf16>, vector<32x8xbf16>, vector<16x8xf32> -> vector<16x8xf32>
    %c0_21 = arith.constant 0 : index
    %c0_22 = arith.constant 0 : index
    %c0_23 = arith.constant 0 : index
    %20 = vector.load %arg9[%c0_21, %c0_22, %c0_23] : memref<1x1x8xf32, #tpu.memory_space<vmem>>, vector<1x1x8xf32>
    %21 = vector.shape_cast %20 : vector<1x1x8xf32> to vector<1x8xf32>
    %22 = vector.broadcast %21 : vector<1x8xf32> to vector<16x8xf32>
    %23 = arith.addf %19, %22 : vector<16x8xf32>
    %c0_24 = arith.constant 0 : index
    %c0_25 = arith.constant 0 : index
    %c0_26 = arith.constant 0 : index
    %24 = vector.load %arg4[%c0_24, %c0_25, %c0_26] : memref<1x16x32xbf16, #tpu.memory_space<vmem>>, vector<1x16x32xbf16>
    %25 = vector.shape_cast %24 : vector<1x16x32xbf16> to vector<16x32xbf16>
    %c0_27 = arith.constant 0 : index
    %c0_28 = arith.constant 0 : index
    %c0_29 = arith.constant 0 : index
    %26 = vector.load %arg10[%c0_27, %c0_28, %c0_29] : memref<1x32x8xbf16, #tpu.memory_space<vmem>>, vector<1x32x8xbf16>
    %27 = vector.shape_cast %26 : vector<1x32x8xbf16> to vector<32x8xbf16>
    %cst_30 = arith.constant dense<0.000000e+00> : vector<16x8xf32>
    %28 = tpu.matmul %25, %27, %cst_30 {dimension_numbers = #tpu.dot_dimension_numbers<[1], [0], [0], [1], [0, 0, 1, 1], [], []>} : vector<16x32xbf16>, vector<32x8xbf16>, vector<16x8xf32> -> vector<16x8xf32>
    %c0_31 = arith.constant 0 : index
    %c0_32 = arith.constant 0 : index
    %c0_33 = arith.constant 0 : index
    %29 = vector.load %arg11[%c0_31, %c0_32, %c0_33] : memref<1x1x8xf32, #tpu.memory_space<vmem>>, vector<1x1x8xf32>
    %30 = vector.shape_cast %29 : vector<1x1x8xf32> to vector<1x8xf32>
    %31 = vector.broadcast %30 : vector<1x8xf32> to vector<16x8xf32>
    %32 = arith.addf %28, %31 : vector<16x8xf32>
    %33 = arith.truncf %16 : vector<8x8xf32> to vector<8x8xbf16>
    %34 = arith.truncf %23 : vector<16x8xf32> to vector<16x8xbf16>
    %cst_34 = arith.constant dense<0.000000e+00> : vector<8x16xf32>
    %35 = tpu.matmul %33, %34, %cst_34 {dimension_numbers = #tpu.dot_dimension_numbers<[1], [1], [0], [0], [0, 0, 1, 0], [], []>} : vector<8x8xbf16>, vector<16x8xbf16>, vector<8x16xf32> -> vector<8x16xf32>
    %cst_35 = arith.constant dense<0xFF800000> : vector<8xf32>
    %36 = vector.multi_reduction <maximumf>, %35, %cst_35 [1] : vector<8x16xf32> to vector<8xf32>
    %37 = vector.shape_cast %36 : vector<8xf32> to vector<8x1xf32>
    %38 = vector.broadcast %37 : vector<8x1xf32> to vector<8x16xf32>
    %39 = arith.subf %35, %38 : vector<8x16xf32>
    %40 = math.exp %39 : vector<8x16xf32>
    %cst_36 = arith.constant dense<0.000000e+00> : vector<8xf32>
    %41 = vector.multi_reduction <add>, %40, %cst_36 [1] : vector<8x16xf32> to vector<8xf32>
    %42 = vector.shape_cast %41 : vector<8xf32> to vector<8x1xf32>
    %43 = tpu.reciprocal %42 {approx = true} : vector<8x1xf32> -> vector<8x1xf32>
    %44 = vector.broadcast %43 : vector<8x1xf32> to vector<8x16xf32>
    %45 = arith.mulf %40, %44 : vector<8x16xf32>
    %46 = arith.truncf %45 : vector<8x16xf32> to vector<8x16xbf16>
    %47 = arith.truncf %32 : vector<16x8xf32> to vector<16x8xbf16>
    %cst_37 = arith.constant dense<0.000000e+00> : vector<8x8xf32>
    %48 = tpu.matmul %46, %47, %cst_37 {dimension_numbers = #tpu.dot_dimension_numbers<[1], [0], [0], [1], [0, 0, 1, 1], [], []>} : vector<8x16xbf16>, vector<16x8xbf16>, vector<8x8xf32> -> vector<8x8xf32>
    %49 = arith.truncf %48 : vector<8x8xf32> to vector<8x8xbf16>
    %c0_38 = arith.constant 0 : index
    %c0_39 = arith.constant 0 : index
    %c0_40 = arith.constant 0 : index
    %c0_41 = arith.constant 0 : index
    %50 = vector.load %arg12[%c0_38, %c0_39, %c0_40, %c0_41] : memref<1x1x8x8xbf16, #tpu.memory_space<vmem>>, vector<1x1x8x8xbf16>
    %51 = vector.shape_cast %50 : vector<1x1x8x8xbf16> to vector<8x8xbf16>
    %52 = vector.shape_cast %49 : vector<8x8xbf16> to vector<1x1x8x8xbf16>
    tpu.vector_store %arg12[%c0_38, %c0_39, %c0_40, %c0_41], %52 {strides = array<i32>} : memref<1x1x8x8xbf16, #tpu.memory_space<vmem>>, vector<1x1x8x8xbf16>,
    return
  }
  func.func @transform_0(%arg0: i32, %arg1: i32) -> (i32, i32, i32) {
    %c0_i32 = arith.constant 0 : i32
    %c0_i32_0 = arith.constant 0 : i32
    %c0_i32_1 = arith.constant 0 : i32
    return %arg0, %c0_i32, %c0_i32_0 : i32, i32, i32
  }
  func.func @transform_1(%arg0: i32, %arg1: i32) -> (i32, i32, i32) {
    %c0_i32 = arith.constant 0 : i32
    %c0_i32_0 = arith.constant 0 : i32
    %c0_i32_1 = arith.constant 0 : i32
    return %arg0, %c0_i32, %c0_i32_0 : i32, i32, i32
  }
  func.func @transform_2(%arg0: i32, %arg1: i32) -> (i32, i32, i32) {
    %c0_i32 = arith.constant 0 : i32
    %c0_i32_0 = arith.constant 0 : i32
    %c0_i32_1 = arith.constant 0 : i32
    return %arg0, %c0_i32, %c0_i32_0 : i32, i32, i32
  }
  func.func @transform_3(%arg0: i32, %arg1: i32) -> (i32, i32, i32) {
    %c0_i32 = arith.constant 0 : i32
    %c0_i32_0 = arith.constant 0 : i32
    %c0_i32_1 = arith.constant 0 : i32
    return %arg0, %c0_i32, %c0_i32_0 : i32, i32, i32
  }
  func.func @transform_4(%arg0: i32, %arg1: i32) -> (i32, i32, i32) {
    %c0_i32 = arith.constant 0 : i32
    %c0_i32_0 = arith.constant 0 : i32
    %c0_i32_1 = arith.constant 0 : i32
    return %arg1, %c0_i32, %c0_i32_0 : i32, i32, i32
  }
  func.func @transform_5(%arg0: i32, %arg1: i32) -> (i32, i32, i32) {
    %c0_i32 = arith.constant 0 : i32
    %c0_i32_0 = arith.constant 0 : i32
    %c0_i32_1 = arith.constant 0 : i32
    return %arg1, %c0_i32, %c0_i32_0 : i32, i32, i32
  }
  func.func @transform_6(%arg0: i32, %arg1: i32) -> (i32, i32, i32) {
    %c0_i32 = arith.constant 0 : i32
    %c0_i32_0 = arith.constant 0 : i32
    %c0_i32_1 = arith.constant 0 : i32
    return %arg1, %c0_i32, %c0_i32_0 : i32, i32, i32
  }
  func.func @transform_7(%arg0: i32, %arg1: i32) -> (i32, i32, i32) {
    %c0_i32 = arith.constant 0 : i32
    %c0_i32_0 = arith.constant 0 : i32
    %c0_i32_1 = arith.constant 0 : i32
    return %arg1, %c0_i32, %c0_i32_0 : i32, i32, i32
  }
  func.func @transform_8(%arg0: i32, %arg1: i32) -> (i32, i32, i32) {
    %c0_i32 = arith.constant 0 : i32
    %c0_i32_0 = arith.constant 0 : i32
    %c0_i32_1 = arith.constant 0 : i32
    return %arg1, %c0_i32, %c0_i32_0 : i32, i32, i32
  }
  func.func @transform_9(%arg0: i32, %arg1: i32) -> (i32, i32, i32) {
    %c0_i32 = arith.constant 0 : i32
    %c0_i32_0 = arith.constant 0 : i32
    %c0_i32_1 = arith.constant 0 : i32
    return %arg1, %c0_i32, %c0_i32_0 : i32, i32, i32
  }
  func.func @transform_10(%arg0: i32, %arg1: i32) -> (i32, i32, i32, i32) {
    %c0_i32 = arith.constant 0 : i32
    %c0_i32_0 = arith.constant 0 : i32
    %c0_i32_1 = arith.constant 0 : i32
    return %arg0, %arg1, %c0_i32, %c0_i32_0 : i32, i32, i32, i32
  }
}

module attributes {stable_mosaic.version = 11 : i64} {
  func.func @_ffn_add_ln_dual_kernel(%arg0: i32, %arg1: memref<8x32xbf16, #tpu.memory_space<vmem>>, %arg2: memref<32x64xbf16, #tpu.memory_space<vmem>>, %arg3: memref<1x64xf32, #tpu.memory_space<vmem>>, %arg4: memref<64x32xbf16, #tpu.memory_space<vmem>>, %arg5: memref<1x32xf32, #tpu.memory_space<vmem>>, %arg6: memref<1x32xf32, #tpu.memory_space<vmem>>, %arg7: memref<1x32xf32, #tpu.memory_space<vmem>>, %arg8: memref<1x32xf32, #tpu.memory_space<vmem>>, %arg9: memref<1x32xf32, #tpu.memory_space<vmem>>, %arg10: memref<8x32xbf16, #tpu.memory_space<vmem>>, %arg11: memref<8x32xf32, #tpu.memory_space<vmem>>) attributes {dimension_semantics = [#tpu.dimension_semantics<parallel>], iteration_bounds = array<i64: 2>, scalar_prefetch = 0 : i64, scratch_operands = 0 : i64, tpu.core_type = #tpu.core_type<tc>, window_params = [{transform_indices = @transform_0, window_bounds = array<i64: 8, 32>}, {pipeline_mode = #tpu.pipeline_mode<synchronous>, transform_indices = @transform_1, window_bounds = array<i64: 32, 64>}, {pipeline_mode = #tpu.pipeline_mode<synchronous>, transform_indices = @transform_2, window_bounds = array<i64: 1, 64>}, {pipeline_mode = #tpu.pipeline_mode<synchronous>, transform_indices = @transform_3, window_bounds = array<i64: 64, 32>}, {pipeline_mode = #tpu.pipeline_mode<synchronous>, transform_indices = @transform_4, window_bounds = array<i64: 1, 32>}, {pipeline_mode = #tpu.pipeline_mode<synchronous>, transform_indices = @transform_5, window_bounds = array<i64: 1, 32>}, {pipeline_mode = #tpu.pipeline_mode<synchronous>, transform_indices = @transform_6, window_bounds = array<i64: 1, 32>}, {pipeline_mode = #tpu.pipeline_mode<synchronous>, transform_indices = @transform_7, window_bounds = array<i64: 1, 32>}, {pipeline_mode = #tpu.pipeline_mode<synchronous>, transform_indices = @transform_8, window_bounds = array<i64: 1, 32>}, {transform_indices = @transform_9, window_bounds = array<i64: 8, 32>}, {transform_indices = @transform_10, window_bounds = array<i64: 8, 32>}]} {
    %c0 = arith.constant 0 : index
    %c0_0 = arith.constant 0 : index
    %0 = vector.load %arg1[%c0, %c0_0] : memref<8x32xbf16, #tpu.memory_space<vmem>>, vector<8x32xbf16>
    %c0_1 = arith.constant 0 : index
    %c0_2 = arith.constant 0 : index
    %1 = vector.load %arg2[%c0_1, %c0_2] : memref<32x64xbf16, #tpu.memory_space<vmem>>, vector<32x64xbf16>
    %cst = arith.constant dense<0.000000e+00> : vector<8x64xf32>
    %2 = tpu.matmul %0, %1, %cst {dimension_numbers = #tpu.dot_dimension_numbers<[1], [0], [0], [1], [0, 0, 1, 1], [], []>} : vector<8x32xbf16>, vector<32x64xbf16>, vector<8x64xf32> -> vector<8x64xf32>
    %c0_3 = arith.constant 0 : index
    %c0_4 = arith.constant 0 : index
    %3 = vector.load %arg3[%c0_3, %c0_4] : memref<1x64xf32, #tpu.memory_space<vmem>>, vector<1x64xf32>
    %4 = vector.broadcast %3 : vector<1x64xf32> to vector<8x64xf32>
    %5 = arith.addf %2, %4 : vector<8x64xf32>
    %cst_5 = arith.constant 0.000000e+00 : f32
    %6 = vector.broadcast %cst_5 : f32 to vector<8x64xf32>
    %7 = arith.maximumf %5, %6 : vector<8x64xf32>
    %8 = arith.truncf %7 : vector<8x64xf32> to vector<8x64xbf16>
    %c0_6 = arith.constant 0 : index
    %c0_7 = arith.constant 0 : index
    %9 = vector.load %arg4[%c0_6, %c0_7] : memref<64x32xbf16, #tpu.memory_space<vmem>>, vector<64x32xbf16>
    %cst_8 = arith.constant dense<0.000000e+00> : vector<8x32xf32>
    %10 = tpu.matmul %8, %9, %cst_8 {dimension_numbers = #tpu.dot_dimension_numbers<[1], [0], [0], [1], [0, 0, 1, 1], [], []>} : vector<8x64xbf16>, vector<64x32xbf16>, vector<8x32xf32> -> vector<8x32xf32>
    %c0_9 = arith.constant 0 : index
    %c0_10 = arith.constant 0 : index
    %11 = vector.load %arg5[%c0_9, %c0_10] : memref<1x32xf32, #tpu.memory_space<vmem>>, vector<1x32xf32>
    %12 = vector.broadcast %11 : vector<1x32xf32> to vector<8x32xf32>
    %13 = arith.addf %10, %12 : vector<8x32xf32>
    %14 = arith.extf %0 : vector<8x32xbf16> to vector<8x32xf32>
    %15 = arith.addf %13, %14 : vector<8x32xf32>
    %cst_11 = arith.constant dense<0.000000e+00> : vector<8xf32>
    %16 = vector.multi_reduction <add>, %15, %cst_11 [1] : vector<8x32xf32> to vector<8xf32>
    %17 = vector.shape_cast %16 : vector<8xf32> to vector<8x1xf32>
    %cst_12 = arith.constant 3.200000e+01 : f32
    %18 = vector.broadcast %cst_12 : f32 to vector<8x1xf32>
    %19 = arith.divf %17, %18 : vector<8x1xf32>
    %20 = vector.broadcast %19 : vector<8x1xf32> to vector<8x32xf32>
    %21 = arith.subf %15, %20 : vector<8x32xf32>
    %22 = arith.mulf %21, %21 : vector<8x32xf32>
    %cst_13 = arith.constant dense<0.000000e+00> : vector<8xf32>
    %23 = vector.multi_reduction <add>, %22, %cst_13 [1] : vector<8x32xf32> to vector<8xf32>
    %24 = vector.shape_cast %23 : vector<8xf32> to vector<8x1xf32>
    %cst_14 = arith.constant 3.200000e+01 : f32
    %25 = vector.broadcast %cst_14 : f32 to vector<8x1xf32>
    %26 = arith.divf %24, %25 : vector<8x1xf32>
    %27 = vector.broadcast %19 : vector<8x1xf32> to vector<8x32xf32>
    %28 = arith.subf %15, %27 : vector<8x32xf32>
    %cst_15 = arith.constant 9.99999974E-6 : f32
    %29 = vector.broadcast %cst_15 : f32 to vector<8x1xf32>
    %30 = arith.addf %26, %29 : vector<8x1xf32>
    %31 = math.rsqrt %30 : vector<8x1xf32>
    %32 = vector.broadcast %31 : vector<8x1xf32> to vector<8x32xf32>
    %33 = arith.mulf %28, %32 : vector<8x32xf32>
    %c0_16 = arith.constant 0 : index
    %c0_17 = arith.constant 0 : index
    %34 = vector.load %arg6[%c0_16, %c0_17] : memref<1x32xf32, #tpu.memory_space<vmem>>, vector<1x32xf32>
    %35 = vector.broadcast %34 : vector<1x32xf32> to vector<8x32xf32>
    %36 = arith.mulf %33, %35 : vector<8x32xf32>
    %c0_18 = arith.constant 0 : index
    %c0_19 = arith.constant 0 : index
    %37 = vector.load %arg7[%c0_18, %c0_19] : memref<1x32xf32, #tpu.memory_space<vmem>>, vector<1x32xf32>
    %38 = vector.broadcast %37 : vector<1x32xf32> to vector<8x32xf32>
    %39 = arith.addf %36, %38 : vector<8x32xf32>
    %40 = arith.truncf %39 : vector<8x32xf32> to vector<8x32xbf16>
    %c0_20 = arith.constant 0 : index
    %c0_21 = arith.constant 0 : index
    %41 = vector.load %arg10[%c0_20, %c0_21] : memref<8x32xbf16, #tpu.memory_space<vmem>>, vector<8x32xbf16>
    tpu.vector_store %arg10[%c0_20, %c0_21], %40 {strides = array<i32>} : memref<8x32xbf16, #tpu.memory_space<vmem>>, vector<8x32xbf16>,
    %cst_22 = arith.constant dense<0.000000e+00> : vector<8xf32>
    %42 = vector.multi_reduction <add>, %39, %cst_22 [1] : vector<8x32xf32> to vector<8xf32>
    %43 = vector.shape_cast %42 : vector<8xf32> to vector<8x1xf32>
    %cst_23 = arith.constant 3.200000e+01 : f32
    %44 = vector.broadcast %cst_23 : f32 to vector<8x1xf32>
    %45 = arith.divf %43, %44 : vector<8x1xf32>
    %46 = vector.broadcast %45 : vector<8x1xf32> to vector<8x32xf32>
    %47 = arith.subf %39, %46 : vector<8x32xf32>
    %48 = arith.mulf %47, %47 : vector<8x32xf32>
    %cst_24 = arith.constant dense<0.000000e+00> : vector<8xf32>
    %49 = vector.multi_reduction <add>, %48, %cst_24 [1] : vector<8x32xf32> to vector<8xf32>
    %50 = vector.shape_cast %49 : vector<8xf32> to vector<8x1xf32>
    %cst_25 = arith.constant 3.200000e+01 : f32
    %51 = vector.broadcast %cst_25 : f32 to vector<8x1xf32>
    %52 = arith.divf %50, %51 : vector<8x1xf32>
    %53 = vector.broadcast %45 : vector<8x1xf32> to vector<8x32xf32>
    %54 = arith.subf %39, %53 : vector<8x32xf32>
    %cst_26 = arith.constant 9.99999974E-6 : f32
    %55 = vector.broadcast %cst_26 : f32 to vector<8x1xf32>
    %56 = arith.addf %52, %55 : vector<8x1xf32>
    %57 = math.rsqrt %56 : vector<8x1xf32>
    %58 = vector.broadcast %57 : vector<8x1xf32> to vector<8x32xf32>
    %59 = arith.mulf %54, %58 : vector<8x32xf32>
    %c0_27 = arith.constant 0 : index
    %c0_28 = arith.constant 0 : index
    %60 = vector.load %arg8[%c0_27, %c0_28] : memref<1x32xf32, #tpu.memory_space<vmem>>, vector<1x32xf32>
    %61 = vector.broadcast %60 : vector<1x32xf32> to vector<8x32xf32>
    %62 = arith.mulf %59, %61 : vector<8x32xf32>
    %c0_29 = arith.constant 0 : index
    %c0_30 = arith.constant 0 : index
    %63 = vector.load %arg9[%c0_29, %c0_30] : memref<1x32xf32, #tpu.memory_space<vmem>>, vector<1x32xf32>
    %64 = vector.broadcast %63 : vector<1x32xf32> to vector<8x32xf32>
    %65 = arith.addf %62, %64 : vector<8x32xf32>
    %c0_31 = arith.constant 0 : index
    %c0_32 = arith.constant 0 : index
    %66 = vector.load %arg11[%c0_31, %c0_32] : memref<8x32xf32, #tpu.memory_space<vmem>>, vector<8x32xf32>
    tpu.vector_store %arg11[%c0_31, %c0_32], %65 {strides = array<i32>} : memref<8x32xf32, #tpu.memory_space<vmem>>, vector<8x32xf32>,
    return
  }
  func.func @transform_0(%arg0: i32) -> (i32, i32) {
    %c0_i32 = arith.constant 0 : i32
    %c0_i32_0 = arith.constant 0 : i32
    return %arg0, %c0_i32 : i32, i32
  }
  func.func @transform_1(%arg0: i32) -> (i32, i32) {
    %c0_i32 = arith.constant 0 : i32
    %c0_i32_0 = arith.constant 0 : i32
    %c0_i32_1 = arith.constant 0 : i32
    return %c0_i32, %c0_i32_0 : i32, i32
  }
  func.func @transform_2(%arg0: i32) -> (i32, i32) {
    %c0_i32 = arith.constant 0 : i32
    %c0_i32_0 = arith.constant 0 : i32
    %c0_i32_1 = arith.constant 0 : i32
    return %c0_i32, %c0_i32_0 : i32, i32
  }
  func.func @transform_3(%arg0: i32) -> (i32, i32) {
    %c0_i32 = arith.constant 0 : i32
    %c0_i32_0 = arith.constant 0 : i32
    %c0_i32_1 = arith.constant 0 : i32
    return %c0_i32, %c0_i32_0 : i32, i32
  }
  func.func @transform_4(%arg0: i32) -> (i32, i32) {
    %c0_i32 = arith.constant 0 : i32
    %c0_i32_0 = arith.constant 0 : i32
    %c0_i32_1 = arith.constant 0 : i32
    return %c0_i32, %c0_i32_0 : i32, i32
  }
  func.func @transform_5(%arg0: i32) -> (i32, i32) {
    %c0_i32 = arith.constant 0 : i32
    %c0_i32_0 = arith.constant 0 : i32
    %c0_i32_1 = arith.constant 0 : i32
    return %c0_i32, %c0_i32_0 : i32, i32
  }
  func.func @transform_6(%arg0: i32) -> (i32, i32) {
    %c0_i32 = arith.constant 0 : i32
    %c0_i32_0 = arith.constant 0 : i32
    %c0_i32_1 = arith.constant 0 : i32
    return %c0_i32, %c0_i32_0 : i32, i32
  }
  func.func @transform_7(%arg0: i32) -> (i32, i32) {
    %c0_i32 = arith.constant 0 : i32
    %c0_i32_0 = arith.constant 0 : i32
    %c0_i32_1 = arith.constant 0 : i32
    return %c0_i32, %c0_i32_0 : i32, i32
  }
  func.func @transform_8(%arg0: i32) -> (i32, i32) {
    %c0_i32 = arith.constant 0 : i32
    %c0_i32_0 = arith.constant 0 : i32
    %c0_i32_1 = arith.constant 0 : i32
    return %c0_i32, %c0_i32_0 : i32, i32
  }
  func.func @transform_9(%arg0: i32) -> (i32, i32) {
    %c0_i32 = arith.constant 0 : i32
    %c0_i32_0 = arith.constant 0 : i32
    return %arg0, %c0_i32 : i32, i32
  }
  func.func @transform_10(%arg0: i32) -> (i32, i32) {
    %c0_i32 = arith.constant 0 : i32
    %c0_i32_0 = arith.constant 0 : i32
    return %arg0, %c0_i32 : i32, i32
  }
}

module attributes {stable_mosaic.version = 11 : i64} {
  func.func @_ffn_add_ln_dual_kernel(%arg0: i32, %arg1: memref<8x32xbf16, #tpu.memory_space<vmem>>, %arg2: memref<32x64xbf16, #tpu.memory_space<vmem>>, %arg3: memref<1x64xf32, #tpu.memory_space<vmem>>, %arg4: memref<64x32xbf16, #tpu.memory_space<vmem>>, %arg5: memref<1x32xf32, #tpu.memory_space<vmem>>, %arg6: memref<1x32xf32, #tpu.memory_space<vmem>>, %arg7: memref<1x32xf32, #tpu.memory_space<vmem>>, %arg8: memref<1x32xf32, #tpu.memory_space<vmem>>, %arg9: memref<1x32xf32, #tpu.memory_space<vmem>>, %arg10: memref<8x32xbf16, #tpu.memory_space<vmem>>, %arg11: memref<8x32xf32, #tpu.memory_space<vmem>>) attributes {dimension_semantics = [#tpu.dimension_semantics<parallel>], iteration_bounds = array<i64: 2>, scalar_prefetch = 0 : i64, scratch_operands = 0 : i64, tpu.core_type = #tpu.core_type<tc>, window_params = [{transform_indices = @transform_0, window_bounds = array<i64: 8, 32>}, {pipeline_mode = #tpu.pipeline_mode<synchronous>, transform_indices = @transform_1, window_bounds = array<i64: 32, 64>}, {pipeline_mode = #tpu.pipeline_mode<synchronous>, transform_indices = @transform_2, window_bounds = array<i64: 1, 64>}, {pipeline_mode = #tpu.pipeline_mode<synchronous>, transform_indices = @transform_3, window_bounds = array<i64: 64, 32>}, {pipeline_mode = #tpu.pipeline_mode<synchronous>, transform_indices = @transform_4, window_bounds = array<i64: 1, 32>}, {pipeline_mode = #tpu.pipeline_mode<synchronous>, transform_indices = @transform_5, window_bounds = array<i64: 1, 32>}, {pipeline_mode = #tpu.pipeline_mode<synchronous>, transform_indices = @transform_6, window_bounds = array<i64: 1, 32>}, {pipeline_mode = #tpu.pipeline_mode<synchronous>, transform_indices = @transform_7, window_bounds = array<i64: 1, 32>}, {pipeline_mode = #tpu.pipeline_mode<synchronous>, transform_indices = @transform_8, window_bounds = array<i64: 1, 32>}, {transform_indices = @transform_9, window_bounds = array<i64: 8, 32>}, {transform_indices = @transform_10, window_bounds = array<i64: 8, 32>}]} {
    %c0 = arith.constant 0 : index
    %c0_0 = arith.constant 0 : index
    %0 = vector.load %arg1[%c0, %c0_0] : memref<8x32xbf16, #tpu.memory_space<vmem>>, vector<8x32xbf16>
    %c0_1 = arith.constant 0 : index
    %c0_2 = arith.constant 0 : index
    %1 = vector.load %arg2[%c0_1, %c0_2] : memref<32x64xbf16, #tpu.memory_space<vmem>>, vector<32x64xbf16>
    %cst = arith.constant dense<0.000000e+00> : vector<8x64xf32>
    %2 = tpu.matmul %0, %1, %cst {dimension_numbers = #tpu.dot_dimension_numbers<[1], [0], [0], [1], [0, 0, 1, 1], [], []>} : vector<8x32xbf16>, vector<32x64xbf16>, vector<8x64xf32> -> vector<8x64xf32>
    %c0_3 = arith.constant 0 : index
    %c0_4 = arith.constant 0 : index
    %3 = vector.load %arg3[%c0_3, %c0_4] : memref<1x64xf32, #tpu.memory_space<vmem>>, vector<1x64xf32>
    %4 = vector.broadcast %3 : vector<1x64xf32> to vector<8x64xf32>
    %5 = arith.addf %2, %4 : vector<8x64xf32>
    %cst_5 = arith.constant 0.000000e+00 : f32
    %6 = vector.broadcast %cst_5 : f32 to vector<8x64xf32>
    %7 = arith.maximumf %5, %6 : vector<8x64xf32>
    %8 = arith.truncf %7 : vector<8x64xf32> to vector<8x64xbf16>
    %c0_6 = arith.constant 0 : index
    %c0_7 = arith.constant 0 : index
    %9 = vector.load %arg4[%c0_6, %c0_7] : memref<64x32xbf16, #tpu.memory_space<vmem>>, vector<64x32xbf16>
    %cst_8 = arith.constant dense<0.000000e+00> : vector<8x32xf32>
    %10 = tpu.matmul %8, %9, %cst_8 {dimension_numbers = #tpu.dot_dimension_numbers<[1], [0], [0], [1], [0, 0, 1, 1], [], []>} : vector<8x64xbf16>, vector<64x32xbf16>, vector<8x32xf32> -> vector<8x32xf32>
    %c0_9 = arith.constant 0 : index
    %c0_10 = arith.constant 0 : index
    %11 = vector.load %arg5[%c0_9, %c0_10] : memref<1x32xf32, #tpu.memory_space<vmem>>, vector<1x32xf32>
    %12 = vector.broadcast %11 : vector<1x32xf32> to vector<8x32xf32>
    %13 = arith.addf %10, %12 : vector<8x32xf32>
    %14 = arith.extf %0 : vector<8x32xbf16> to vector<8x32xf32>
    %15 = arith.addf %13, %14 : vector<8x32xf32>
    %cst_11 = arith.constant dense<0.000000e+00> : vector<8xf32>
    %16 = vector.multi_reduction <add>, %15, %cst_11 [1] : vector<8x32xf32> to vector<8xf32>
    %17 = vector.shape_cast %16 : vector<8xf32> to vector<8x1xf32>
    %cst_12 = arith.constant 3.200000e+01 : f32
    %18 = vector.broadcast %cst_12 : f32 to vector<8x1xf32>
    %19 = arith.divf %17, %18 : vector<8x1xf32>
    %20 = vector.broadcast %19 : vector<8x1xf32> to vector<8x32xf32>
    %21 = arith.subf %15, %20 : vector<8x32xf32>
    %22 = arith.mulf %21, %21 : vector<8x32xf32>
    %cst_13 = arith.constant dense<0.000000e+00> : vector<8xf32>
    %23 = vector.multi_reduction <add>, %22, %cst_13 [1] : vector<8x32xf32> to vector<8xf32>
    %24 = vector.shape_cast %23 : vector<8xf32> to vector<8x1xf32>
    %cst_14 = arith.constant 3.200000e+01 : f32
    %25 = vector.broadcast %cst_14 : f32 to vector<8x1xf32>
    %26 = arith.divf %24, %25 : vector<8x1xf32>
    %27 = vector.broadcast %19 : vector<8x1xf32> to vector<8x32xf32>
    %28 = arith.subf %15, %27 : vector<8x32xf32>
    %cst_15 = arith.constant 9.99999974E-6 : f32
    %29 = vector.broadcast %cst_15 : f32 to vector<8x1xf32>
    %30 = arith.addf %26, %29 : vector<8x1xf32>
    %31 = math.rsqrt %30 : vector<8x1xf32>
    %32 = vector.broadcast %31 : vector<8x1xf32> to vector<8x32xf32>
    %33 = arith.mulf %28, %32 : vector<8x32xf32>
    %c0_16 = arith.constant 0 : index
    %c0_17 = arith.constant 0 : index
    %34 = vector.load %arg6[%c0_16, %c0_17] : memref<1x32xf32, #tpu.memory_space<vmem>>, vector<1x32xf32>
    %35 = vector.broadcast %34 : vector<1x32xf32> to vector<8x32xf32>
    %36 = arith.mulf %33, %35 : vector<8x32xf32>
    %c0_18 = arith.constant 0 : index
    %c0_19 = arith.constant 0 : index
    %37 = vector.load %arg7[%c0_18, %c0_19] : memref<1x32xf32, #tpu.memory_space<vmem>>, vector<1x32xf32>
    %38 = vector.broadcast %37 : vector<1x32xf32> to vector<8x32xf32>
    %39 = arith.addf %36, %38 : vector<8x32xf32>
    %40 = arith.truncf %39 : vector<8x32xf32> to vector<8x32xbf16>
    %c0_20 = arith.constant 0 : index
    %c0_21 = arith.constant 0 : index
    %41 = vector.load %arg10[%c0_20, %c0_21] : memref<8x32xbf16, #tpu.memory_space<vmem>>, vector<8x32xbf16>
    tpu.vector_store %arg10[%c0_20, %c0_21], %40 {strides = array<i32>} : memref<8x32xbf16, #tpu.memory_space<vmem>>, vector<8x32xbf16>,
    %cst_22 = arith.constant dense<0.000000e+00> : vector<8xf32>
    %42 = vector.multi_reduction <add>, %39, %cst_22 [1] : vector<8x32xf32> to vector<8xf32>
    %43 = vector.shape_cast %42 : vector<8xf32> to vector<8x1xf32>
    %cst_23 = arith.constant 3.200000e+01 : f32
    %44 = vector.broadcast %cst_23 : f32 to vector<8x1xf32>
    %45 = arith.divf %43, %44 : vector<8x1xf32>
    %46 = vector.broadcast %45 : vector<8x1xf32> to vector<8x32xf32>
    %47 = arith.subf %39, %46 : vector<8x32xf32>
    %48 = arith.mulf %47, %47 : vector<8x32xf32>
    %cst_24 = arith.constant dense<0.000000e+00> : vector<8xf32>
    %49 = vector.multi_reduction <add>, %48, %cst_24 [1] : vector<8x32xf32> to vector<8xf32>
    %50 = vector.shape_cast %49 : vector<8xf32> to vector<8x1xf32>
    %cst_25 = arith.constant 3.200000e+01 : f32
    %51 = vector.broadcast %cst_25 : f32 to vector<8x1xf32>
    %52 = arith.divf %50, %51 : vector<8x1xf32>
    %53 = vector.broadcast %45 : vector<8x1xf32> to vector<8x32xf32>
    %54 = arith.subf %39, %53 : vector<8x32xf32>
    %cst_26 = arith.constant 9.99999974E-6 : f32
    %55 = vector.broadcast %cst_26 : f32 to vector<8x1xf32>
    %56 = arith.addf %52, %55 : vector<8x1xf32>
    %57 = math.rsqrt %56 : vector<8x1xf32>
    %58 = vector.broadcast %57 : vector<8x1xf32> to vector<8x32xf32>
    %59 = arith.mulf %54, %58 : vector<8x32xf32>
    %c0_27 = arith.constant 0 : index
    %c0_28 = arith.constant 0 : index
    %60 = vector.load %arg8[%c0_27, %c0_28] : memref<1x32xf32, #tpu.memory_space<vmem>>, vector<1x32xf32>
    %61 = vector.broadcast %60 : vector<1x32xf32> to vector<8x32xf32>
    %62 = arith.mulf %59, %61 : vector<8x32xf32>
    %c0_29 = arith.constant 0 : index
    %c0_30 = arith.constant 0 : index
    %63 = vector.load %arg9[%c0_29, %c0_30] : memref<1x32xf32, #tpu.memory_space<vmem>>, vector<1x32xf32>
    %64 = vector.broadcast %63 : vector<1x32xf32> to vector<8x32xf32>
    %65 = arith.addf %62, %64 : vector<8x32xf32>
    %c0_31 = arith.constant 0 : index
    %c0_32 = arith.constant 0 : index
    %66 = vector.load %arg11[%c0_31, %c0_32] : memref<8x32xf32, #tpu.memory_space<vmem>>, vector<8x32xf32>
    tpu.vector_store %arg11[%c0_31, %c0_32], %65 {strides = array<i32>} : memref<8x32xf32, #tpu.memory_space<vmem>>, vector<8x32xf32>,
    return
  }
  func.func @transform_0(%arg0: i32) -> (i32, i32) {
    %c0_i32 = arith.constant 0 : i32
    %c0_i32_0 = arith.constant 0 : i32
    return %arg0, %c0_i32 : i32, i32
  }
  func.func @transform_1(%arg0: i32) -> (i32, i32) {
    %c0_i32 = arith.constant 0 : i32
    %c0_i32_0 = arith.constant 0 : i32
    %c0_i32_1 = arith.constant 0 : i32
    return %c0_i32, %c0_i32_0 : i32, i32
  }
  func.func @transform_2(%arg0: i32) -> (i32, i32) {
    %c0_i32 = arith.constant 0 : i32
    %c0_i32_0 = arith.constant 0 : i32
    %c0_i32_1 = arith.constant 0 : i32
    return %c0_i32, %c0_i32_0 : i32, i32
  }
  func.func @transform_3(%arg0: i32) -> (i32, i32) {
    %c0_i32 = arith.constant 0 : i32
    %c0_i32_0 = arith.constant 0 : i32
    %c0_i32_1 = arith.constant 0 : i32
    return %c0_i32, %c0_i32_0 : i32, i32
  }
  func.func @transform_4(%arg0: i32) -> (i32, i32) {
    %c0_i32 = arith.constant 0 : i32
    %c0_i32_0 = arith.constant 0 : i32
    %c0_i32_1 = arith.constant 0 : i32
    return %c0_i32, %c0_i32_0 : i32, i32
  }
  func.func @transform_5(%arg0: i32) -> (i32, i32) {
    %c0_i32 = arith.constant 0 : i32
    %c0_i32_0 = arith.constant 0 : i32
    %c0_i32_1 = arith.constant 0 : i32
    return %c0_i32, %c0_i32_0 : i32, i32
  }
  func.func @transform_6(%arg0: i32) -> (i32, i32) {
    %c0_i32 = arith.constant 0 : i32
    %c0_i32_0 = arith.constant 0 : i32
    %c0_i32_1 = arith.constant 0 : i32
    return %c0_i32, %c0_i32_0 : i32, i32
  }
  func.func @transform_7(%arg0: i32) -> (i32, i32) {
    %c0_i32 = arith.constant 0 : i32
    %c0_i32_0 = arith.constant 0 : i32
    %c0_i32_1 = arith.constant 0 : i32
    return %c0_i32, %c0_i32_0 : i32, i32
  }
  func.func @transform_8(%arg0: i32) -> (i32, i32) {
    %c0_i32 = arith.constant 0 : i32
    %c0_i32_0 = arith.constant 0 : i32
    %c0_i32_1 = arith.constant 0 : i32
    return %c0_i32, %c0_i32_0 : i32, i32
  }
  func.func @transform_9(%arg0: i32) -> (i32, i32) {
    %c0_i32 = arith.constant 0 : i32
    %c0_i32_0 = arith.constant 0 : i32
    return %arg0, %c0_i32 : i32, i32
  }
  func.func @transform_10(%arg0: i32) -> (i32, i32) {
    %c0_i32 = arith.constant 0 : i32
    %c0_i32_0 = arith.constant 0 : i32
    return %arg0, %c0_i32 : i32, i32
  }
}

</mosaic_0001>

<bundles_post_ra>
// kernel: transformer_forward.17
= control target key start
LH: loop header
LB: loop body
LE: loop exit
PB: predicated region body
PF: predicated region fallthrough
CT: control target
= control target key end

     0   :  { %s929_s21 = smov 0   ;;  %s931_s22 = smov 0   ;;  %s1059_s0 = inlined_call_operand.vmem [shape: bf16[2,4,16,8], index: 0, kind: input, shape index: {}]   ;;  %s1060_s1 = inlined_call_operand.vmem [shape: bf16[2,16,32], index: 1, kind: input, shape index: {}]   ;;  %s1061_s2 = inlined_call_operand.vmem [shape: bf16[4,8,32], index: 2, kind: input, shape index: {}]   ;;  %s1062_s3 = inlined_call_operand.vmem [shape: f32[1,32], index: 3, kind: input, shape index: {}]   ;;  %s1063_s4 = inlined_call_operand.vmem [shape: f32[1,32], index: 4, kind: input, shape index: {}]   ;;  %s1064_s5 = inlined_call_operand.vmem [shape: f32[1,32], index: 5, kind: input, shape index: {}]   ;;  %s1065_s6 = inlined_call_operand.vmem [shape: bf16[2,16,32], index: 6, kind: output, shape index: {}]  }
   0x1   :  { %s933_s23 = smov 0   ;;  %s935_s24 = smov 0  }
   0x2   :  { %s937_s25 = smov 0   ;;  %s939_s26 = smov 0  }
   0x3   :  { %s941_s27 = smov 0  }
   0x4 LB: > { %s25_s28 = sadd.s32 1, %s882_s25  ;;  %s28_s29 = sadd.s32 1, %s886_s26  ;;  %s890_s27 = sphi %s941_s27, %s16_s27   ;;  %s886_s26 = sphi %s939_s26, %s1071_s26   ;;  %s882_s25 = sphi %s937_s25, %s1070_s25   ;;  %s878_s24 = sphi %s935_s24, %s1069_s24   ;;  %s874_s23 = sphi %s933_s23, %s1068_s23   ;;  %s870_s22 = sphi %s931_s22, %s1067_s22   ;;  %s866_s21 = sphi %s929_s21, %s1066_s21  }
   0x5   : > { %p26_p0 = scmp.ge.s32.totalorder %s25_s28, 2  ;;  %p44_p1 = scmp.ne.s32.totalorder %s870_s22, %s866_s21 }
   0x6   : > { %p45_p2 = scmp.eq.s32.totalorder %s890_s27, 0  ;;  %s37_s9 = sadd.s32 1, %s870_s22 }
   0x7   : > { %s1073_s28 = smov (%p26_p0, %s25_s28), 0  ;;  %s1075_s29 = smov (!%p26_p0, %s28_s29), %s886_s26 }
   0x8   : > { %p46_p3 = por %p45_p2, %p44_p1  ;;  %p30_p4 = scmp.ge.s32.totalorder %s1075_s29, 2 }
   0x9   : > { %s33_s30 = ssub.s32 %s882_s25, %s1073_s28  ;;  %p719_p6 = scmp.ge.s32.totalorder %s890_s27, 4 }
   0xa   : > { %s1077_s29 = smov (%p30_p4, %s1075_s29), 0 }
   0xb   : > { %s32_s7 = ssub.s32 %s886_s26, %s1077_s29  ;;  %222 = sbr.rel (%p719_p6) target bundleno = 24 (0x18), region = 32 }
   0xc   : > { %s34_s8 = sor.u32 %s33_s30, %s32_s7 }
   0xd   : > { %p35_p5 = scmp.eq.s32.totalorder %s34_s8, 0 }
   0xf   : > { %s980_s10 = scalar_select %p35_p5, %s870_s22, %s37_s9  }
  0x10   : > { %225 = sbr.rel (!%p46_p3) target bundleno = 24 (0x18), region = 36  ;;  %s227_s11 = sand.u32 (%p46_p3), 1, %s870_s22  }
  0x11   : > { %s721_s12 = sshll.u32 (%p46_p3), %s886_s26, 3  ;;  %s720_s13 = sshll.u32 (%p46_p3), %s227_s11, 4 }
  0x12   : > { %s231_s14 = sadd.s32 (%p46_p3), %s882_s25, %s721_s12  ;;  %s229_s19 = scalar_lea.vmem (%p46_p3), [#allocation2], %s720_s13 }
  0x13   : > { %s722_s15 = sshll.u32 (%p46_p3), %s231_s14, 2 }
  0x14   : > { %s233_s18 = scalar_lea.vmem (%p46_p3), %s1059_s0, %s722_s15 }
  0x15   : > { %v250_v0 = vld [vmem:[%s233_s18] sm:$0xf]  ;;  %v252_v1 = vld [vmem:[%s233_s18 + $0x8] sm:$0xf]  ;;  %v254_v2 = vld [vmem:[%s233_s18 + $0x10] sm:$0xf] }
  0x16   : > { %251 = vst [vmem:[%s229_s19] sm:$0xf] %v250_v0  ;;  %253 = vst [vmem:[%s229_s19 + $0x4] sm:$0xf] %v252_v1  ;;  %v256_v3 = vld [vmem:[%s233_s18 + $0x18] sm:$0xf] }
  0x17   : > { %255 = vst [vmem:[%s229_s19 + $0x8] sm:$0xf] %v254_v2  ;;  %257 = vst [vmem:[%s229_s19 + $0xc] sm:$0xf] %v256_v3 }
  0x18 PF: > { %p723_p7 = scmp.ge.s32.totalorder %s890_s27, 1  ;;  %p299_p8 = scmp.lt.s32.totalorder %s890_s27, 5 }
  0x1a   : > { %p300_p9 = pnand %p723_p7, %p299_p8 }
  0x1b   : > { %s306_s9 = sand.u32 (!%p300_p9), 1, %s866_s21   ;;  %p346_p10 = scmp.lt.s32.totalorder (!%p300_p9), %s878_s24, 1 }
  0x1c   : > { %303 = sbr.rel (%p300_p9) target bundleno = 558 (0x22e), region = 81  ;;  %s724_s11 = sshll.u32 (!%p300_p9), %s306_s9, 4 }
  0x1d   : > { %s308_s21 = scalar_lea.vmem (!%p300_p9), [#allocation2], %s724_s11  ;;  %p348_p11 = scmp.lt.s32.totalorder (!%p300_p9), %s874_s23, 1 }
  0x21   : > { %v730_v4 = vld [vmem:[%s1061_s2 + $0x4] sm:$0xf]  ;;  %vm373_vm0 = vcmask 1043456   ;;  %v364_v5 = vld [vmem:[%s1061_s2] sm:$0xf]  ;;  %v892_v6 = vmov 0.0  }
  0x22   : > { %752 = vmatprep.subr.bf16.mxu0 %v892_v6  ;;  %758 = vmatprep.subr.bf16.mxu1 %v892_v6  ;;  %v375_v7 = vsel %vm373_vm0, %v730_v4, 0  ;;  %v421_v8 = vsel %vm373_vm0, %v364_v5, 0  ;;  %vm369_vm1 = vcmask 64512   ;;  %v734_v9 = vld [vmem:[%s1061_s2 + $0x8] sm:$0xf]  ;;  %vm893_vm2 = vmmov 0  }
  0x23   : > { %753 = vmatpush3.bf16.msra.mxu0 %v375_v7  ;;  %759 = vmatpush3.bf16.msra.mxu1 %v421_v8  ;;  %v737_v10 = vld [vmem:[%s1061_s2 + $0xc] sm:$0xf]  ;;  %v471_v11 = vsel %vm373_vm0, %v734_v9, 0  ;;  %v729_v13 = vld [vmem:[%s308_s21 + $0x4] sm:$0xf]  ;;  %s1079_s24 = smov (!%p346_p10, %s878_s24), 1 }
  0x24   : > { %754 = vmatprep.mubr.msk.bf16.mxu0 %vm893_vm2, %v892_v6  ;;  %760 = vmatprep.mubr.msk.bf16.mxu1 %vm893_vm2, %v892_v6  ;;  %v522_v12 = vsel %vm373_vm0, %v737_v10, 0  ;;  %v363_v14 = vld [vmem:[%s308_s21] sm:$0xf]  ;;  %v733_v15 = vld [vmem:[%s308_s21 + $0x8] sm:$0xf]  ;;  %s1081_s23 = smov (!%p348_p11, %s874_s23), 1 }
  0x25   : > { %764 = vmatprep.subr.bf16.mxu0 %v892_v6  ;;  %770 = vmatprep.subr.bf16.mxu1 %v892_v6  ;;  %v736_v16 = vld [vmem:[%s308_s21 + $0xc] sm:$0xf]  ;;  %s725_s16 = sshll.u32 %s1079_s24, 1  ;;  %v739_v30 = vld [vmem:[%s1062_s3] ss:$0 sm:$0xff]  ;;  %vm576_vm3 = vcmask 261120  }
  0x26   : > { %755 = vmatmul.mubr.msk.bf16.vlgmr.msra.gmra.mxu0 %vm369_vm1, %v729_v13  ;;  %761 = vmatmul.mubr.msk.bf16.vlgmr.msra.gmra.mxu1 %vm369_vm1, %v363_v14  ;;  %s1016_s17 = sadd.s32 %s725_s16, %s1081_s23  ;;  %v740_v51 = vld [vmem:[%s1063_s4] ss:$0 sm:$0xff]  ;;  %vm608_vm4 = vcmask 257024  }
  0x27   : > { %765 = vmatpush3.bf16.msra.mxu0 %v471_v11  ;;  %771 = vmatpush3.bf16.msra.mxu1 %v522_v12  ;;  %s726_s18 = sshll.u32 %s1016_s17, 2  ;;  %v741_v53 = vld [vmem:[%s1064_s5] ss:$0 sm:$0xff] }
  0x28   : > { %766 = vmatprep.mubr.msk.bf16.mxu0 %vm893_vm2, %v892_v6  ;;  %772 = vmatprep.mubr.msk.bf16.mxu1 %vm893_vm2, %v892_v6  ;;  %s353_s30 = scalar_lea.vmem %s1060_s1, %s726_s18  ;;  %s361_s14 = scalar_lea.vmem %s1065_s6, %s726_s18 }
  0x29   : > { %v573_v28 = vld [vmem:[%s353_s30] sm:$0xf] }
  0x2a   : > { %v574_v34 = vunpack.c.l.bf16 %v573_v28 }
  0x2e   : > { %767 = vmatmul.mubr.msk.bf16.vlgmr.msra.gmra.mxu0 %vm369_vm1, %v733_v15  ;;  %773 = vmatmul.mubr.msk.bf16.vlgmr.msra.gmra.mxu1 %vm369_vm1, %v736_v16 }
  0xe6   : > { %v411_v17 = vpop.f32.mrf.mxu0  ;;  %v457_v18 = vpop.f32.mrf.mxu1 }
  0xe7   : > { %v458_v25 = vadd.f32 %v457_v18, %v411_v17 }
  0xe8   : > { %v756_v19 = vpop.f32.mrf.mxu0  ;;  %v762_v20 = vpop.f32.mrf.mxu1 }
  0xea   : > { %v414_v21 = vpop.f32.mrf.mxu0  ;;  %v460_v22 = vpop.f32.mrf.mxu1 }
  0xec   : > { %v757_v23 = vpop.f32.mrf.mxu0  ;;  %v763_v24 = vpop.f32.mrf.mxu1 }
  0xee   : > { %v507_v26 = vpop.f32.mrf.mxu0  ;;  %v558_v27 = vpop.f32.mrf.mxu1 }
  0xef   : > { %v513_v29 = vadd.f32 %v507_v26, %v458_v25 }
  0xf0   : > { %v768_v31 = vpop.f32.mrf.mxu0  ;;  %v774_v32 = vpop.f32.mrf.mxu1 }
  0xf1   : > { %v564_v33 = vadd.f32 %v558_v27, %v513_v29 }
  0xf2   : > { %v510_v35 = vpop.f32.mrf.mxu0  ;;  %v561_v36 = vpop.f32.mrf.mxu1 }
  0xf3   : > { %v572_v37 = vadd.f32 %v739_v30, %v564_v33 }
  0xf4   : > { %v769_v38 = vpop.f32.mrf.mxu0  ;;  %v775_v39 = vpop.f32.mrf.mxu1 }
  0xf5   : > { %v575_v40 = vadd.f32 %v574_v34, %v572_v37 }
  0xf7   : > { %v577_v41 = vsel %vm576_vm3, %v575_v40, 0.0 }
  0xf8   : > { %578 = vadd.xlane.f32.xlu0 %v577_v41 }
 0x181   : > { %v579_v42 = vpop.xlane.xlu0 %578 }
 0x182   : > { %v581_v43 = vmul.f32 0.03125, %v579_v42 }
 0x184   : > { %v582_v44 = vsub.f32 %v575_v40, %v581_v43 }
 0x186   : > { %v583_v45 = vmul.f32 %v582_v44, %v582_v44 }
 0x188   : > { %v584_v46 = vsel %vm576_vm3, %v583_v45, 0.0 }
 0x189   : > { %585 = vadd.xlane.f32.xlu0 %v584_v46 }
 0x212   : > { %v586_v47 = vpop.xlane.xlu0 %585 }
 0x213   : > { %v587_v48 = vmul.f32 0.03125, %v586_v47 }
 0x215   : > { %v588_v49 = vadd.f32 1e-05, %v587_v48 }
 0x217   : > { %834 = vrsqrt.f32 %v588_v49 }
 0x224   : > { %v835_v50 = vpop.eup %834 }
 0x225   : > { %v590_v52 = vmul.f32 %v835_v50, %v582_v44 }
 0x227   : > { %v598_v54 = vmul.f32 %v740_v51, %v590_v52 }
 0x229   : > { %v606_v55 = vadd.f32 %v741_v53, %v598_v54 }
 0x22b   : > { %v607_v56 = vpack.c.bf16 %v606_v55, %v606_v55 }
 0x22d   : > { %609 = vst.msk [vmem:[%s361_s14] sm:$0xf] %vm608_vm4, %v607_v56 }
 0x22e PF: > { %s16_s27 = sadd.s32 1, %s890_s27   ;;  %s1066_s21 = smov %s870_s22 }
 0x22f   : > { %p13_p12 = scmp.ge.s32.totalorder %s16_s27, 6   ;;  %s1067_s22 = smov %s980_s10 }
 0x230   : > { %s1068_s23 = smov %s882_s25  ;;  %s1069_s24 = smov %s886_s26 }
 0x231   : > { %s1070_s25 = smov %s1073_s28  ;;  %s1071_s26 = smov %s1077_s29 }
 0x232   :  { %15 = sbr.rel (!%p13_p12) target bundleno = 4 (0x4), region = 129 }

// kernel: transformer_forward.16
= control target key start
LH: loop header
LB: loop body
LE: loop exit
PB: predicated region body
PF: predicated region fallthrough
CT: control target
= control target key end

     0   :  { %s1195_s27 = smov 0   ;;  %s1197_s28 = smov 0   ;;  %s1309_s0 = inlined_call_operand.vmem [shape: bf16[2,16,32], index: 0, kind: input, shape index: {}]   ;;  %s1310_s1 = inlined_call_operand.vmem [shape: bf16[2,16,32], index: 1, kind: input, shape index: {}]   ;;  %s1311_s2 = inlined_call_operand.vmem [shape: bf16[4,32,8], index: 2, kind: input, shape index: {}]   ;;  %s1312_s3 = inlined_call_operand.vmem [shape: f32[4,1,8], index: 3, kind: input, shape index: {}]   ;;  %s1313_s4 = inlined_call_operand.vmem [shape: bf16[4,32,8], index: 4, kind: input, shape index: {}]   ;;  %s1314_s5 = inlined_call_operand.vmem [shape: f32[4,1,8], index: 5, kind: input, shape index: {}]   ;;  %s1315_s6 = inlined_call_operand.vmem [shape: bf16[4,32,8], index: 6, kind: input, shape index: {}]   ;;  %s1316_s7 = inlined_call_operand.vmem [shape: f32[4,1,8], index: 7, kind: input, shape index: {}]   ;;  %s1317_s8 = inlined_call_operand.vmem [shape: bf16[2,4,16,8], index: 8, kind: output, shape index: {}]  }
   0x1   :  { %s1199_s29 = smov 0   ;;  %s1201_s30 = smov 0  }
   0x2   :  { %s1203_s9 = smov 0  }
   0x3 LB: > { %s27_s10 = sadd.s32 1, %s1138_s29  ;;  %s30_s11 = sadd.s32 1, %s1142_s30  ;;  %s1146_s9 = sphi %s1203_s9, %s18_s9   ;;  %s1142_s30 = sphi %s1201_s30, %s1321_s30   ;;  %s1138_s29 = sphi %s1199_s29, %s1320_s29   ;;  %s1134_s28 = sphi %s1197_s28, %s1319_s28   ;;  %s1130_s27 = sphi %s1195_s27, %s1318_s27  }
   0x4   : > { %p28_p0 = scmp.ge.s32.totalorder %s27_s10, 4  ;;  %p961_p1 = scmp.ge.s32.totalorder %s1146_s9, 1 }
   0x5   : > { %p340_p2 = scmp.lt.s32.totalorder %s1146_s9, 9 }
   0x6   : > { %s1323_s10 = smov (%p28_p0, %s27_s10), 0  ;;  %s1325_s11 = smov (!%p28_p0, %s30_s11), %s1142_s30 }
   0x7   : > { %p341_p3 = pnand %p961_p1, %p340_p2  ;;  %p32_p4 = scmp.ge.s32.totalorder %s1325_s11, 2 }
   0x8   : > { %p417_p5 = scmp.lt.s32.totalorder (!%p341_p3), %s1130_s27, 3  ;;  %p407_p6 = scmp.lt.s32.totalorder (!%p341_p3), %s1134_s28, 1 }
   0x9   : > { %s1327_s11 = smov (%p32_p4, %s1325_s11), 0  ;;  %344 = sbr.rel (%p341_p3) target bundleno = 945 (0x3b1), region = 52 }
   0xe   : > { %v1148_v0 = vmov 0.0   ;;  %s1329_s27 = smov (!%p417_p5, %s1130_s27), 3  ;;  %vm1149_vm0 = vmmov 0   ;;  %s1331_s28 = smov (!%p407_p6, %s1134_s28), 1  ;;  %vm485_vm1 = vcmask 261120   ;;  %vm668_vm2 = vcmask 64512  }
   0xf   : > { %1023 = vmatprep.subr.bf16.mxu1 %v1148_v0  ;;  %1015 = vmatprep.subr.bf16.mxu0 %v1148_v0  ;;  %s997_s12 = sshll.u32 %s1329_s27, 4  ;;  %s1240_s19 = sshll.u32 %s1331_s28, 3  ;;  %vm716_vm3 = vcmask 130048   ;;  %vm793_vm4 = vcmask 60416  }
  0x10   : > { %1027 = vmatprep.mubr.msk.bf16.mxu1 %vm1149_vm0, %v1148_v0  ;;  %1019 = vmatprep.mubr.msk.bf16.mxu0 %vm1149_vm0, %v1148_v0  ;;  %s429_s15 = scalar_lea.vmem %s1313_s4, %s997_s12  ;;  %s421_s18 = scalar_lea.vmem %s1311_s2, %s997_s12 }
  0x11   : > { %v1093_v1 = vld [vmem:[%s429_s15 + $0x8] sm:$0xff]   ;;  %s411_s22 = scalar_lea.vmem %s1309_s0, %s1240_s19  ;;  %s416_s25 = scalar_lea.vmem %s1310_s1, %s1240_s19  ;;  %v1095_v3 = vld [vmem:[%s429_s15] sm:$0xff]  }
  0x12   : > { %v1094_v2 = vld [vmem:[%s421_s18 + $0x8] sm:$0xff]   ;;  %1024 = vmatpush3.bf16.msra.mxu1 %v1093_v1  ;;  %v1096_v4 = vld [vmem:[%s421_s18] sm:$0xff]   ;;  %s1254_s13 = scalar_lea.vmem %s1315_s6, %s997_s12  ;;  %s432_s15 = scalar_lea.vmem %s1314_s5, %s1329_s27 }
  0x13   : > { %1016 = vmatpush3.bf16.msra.mxu0 %v1094_v2  ;;  %1025 = vmatprep.subr.bf16.mxu1 %v1148_v0  ;;  %v451_v5 = vld [vmem:[%s411_s22] sm:$0xf]  ;;  %v452_v6 = vld [vmem:[%s411_s22 + $0x4] sm:$0xf]  ;;  %s424_s18 = scalar_lea.vmem %s1312_s3, %s1329_s27  ;;  %v1098_v30 = vld [vmem:[%s1254_s13 + $0x8] sm:$0xff]   ;;  %s440_s22 = scalar_lea.vmem %s1316_s7, %s1329_s27 }
  0x14   : > { %1017 = vmatprep.subr.bf16.mxu0 %v1148_v0  ;;  %v453_v7 = vld [vmem:[%s416_s25] sm:$0xf]  ;;  %v454_v8 = vld [vmem:[%s416_s25 + $0x4] sm:$0xf]  ;;  %v985_v10 = vcombine.low %v451_v5, %v452_v6  ;;  %s972_s23 = sshll.u32 %s1329_s27, 1 }
  0x15   : > { %v455_v9 = vadd.bf16 %v453_v7, %v451_v5  ;;  %v456_v11 = vadd.bf16 %v454_v8, %v452_v6  ;;  %v980_v15 = vld [vmem:[%s432_s15] ss:$0 sm:$0xff]  ;;  %s447_s24 = sadd.s32 %s1240_s19, %s972_s23 }
  0x16   : > { %1026 = vmatpush3.bf16.msra.mxu1 %v1095_v3  ;;  %v975_v25 = vld [vmem:[%s424_s18] ss:$0 sm:$0xff]  ;;  %s974_s25 = sshll.u32 %s447_s24, 2 }
  0x17   : > { %1018 = vmatpush3.bf16.msra.mxu0 %v1096_v4  ;;  %1039 = vmatprep.subr.bf16.mxu1 %v1148_v0  ;;  %v976_v12 = vcombine.low %v455_v9, %v456_v11  ;;  %v1099_v31 = vld [vmem:[%s1254_s13] sm:$0xff]   ;;  %s449_s13 = scalar_lea.vmem %s1317_s8, %s974_s25 }
  0x18   : > { %1031 = vmatprep.subr.bf16.mxu0 %v1148_v0  ;;  %v984_v50 = vld [vmem:[%s440_s22] ss:$0 sm:$0xff] }
  0x19   : > { %1028 = vmatmul.mubr.msk.bf16.vlgmr.msra.gmra.mxu1 %vm485_vm1, %v976_v12 }
  0x1a   : > { %1020 = vmatmul.mubr.msk.bf16.vlgmr.msra.gmra.mxu0 %vm485_vm1, %v976_v12  ;;  %1041 = vmatprep.mubr.msk.bf16.mxu1 %vm1149_vm0, %v1148_v0 }
  0x1b   : > { %1035 = vmatprep.mubr.msk.bf16.mxu0 %vm1149_vm0, %v1148_v0  ;;  %1032 = vmatpush3.bf16.msra.mxu0 %v1098_v30 }
  0x1c   : > { %1033 = vmatprep.subr.bf16.mxu0 %v1148_v0 }
  0x1f   : > { %1034 = vmatpush3.bf16.msra.mxu0 %v1099_v31 }
  0x20   : > { %1045 = vmatprep.subr.bf16.mxu0 %v1148_v0 }
  0x22   : > { %1036 = vmatmul.mubr.msk.bf16.vlgmr.msra.gmra.mxu0 %vm485_vm1, %v985_v10 }
  0x23   : > { %1047 = vmatprep.mubr.msk.bf16.mxu0 %vm1149_vm0, %v1148_v0 }
  0xd9   : > { %v587_v13 = vpop.f32.mrf.mxu1 }
  0xda   : > { %v523_v14 = vpop.f32.mrf.mxu0  ;;  %v588_v20 = vadd.f32 %v980_v15, %v587_v13 }
  0xdb   : > { %v1029_v16 = vpop.f32.mrf.mxu1  ;;  %v524_v27 = vadd.f32 %v975_v25, %v523_v14 }
  0xdc   : > { %v1021_v17 = vpop.f32.mrf.mxu0 }
  0xdd   : > { %v590_v18 = vpop.f32.mrf.mxu1 }
  0xde   : > { %v526_v19 = vpop.f32.mrf.mxu0  ;;  %v591_v21 = vadd.f32 %v980_v15, %v590_v18 }
  0xdf   : > { %v1030_v22 = vpop.f32.mrf.mxu1  ;;  %v527_v28 = vadd.f32 %v975_v25, %v526_v19 }
  0xe0   : > { %v1022_v23 = vpop.f32.mrf.mxu0  ;;  %v667_v24 = vpack.c.bf16 %v591_v21, %v588_v20 }
  0xe1   : > { %v666_v29 = vpack.c.bf16 %v527_v28, %v524_v27 }
  0xe2   : > { %v673_v26 = vsel %vm668_vm2, %v667_v24, 0  ;;  %v659_v48 = vpop.f32.mrf.mxu0 }
  0xe3   : > { %1040 = vmatpush3.bf16.xpose.msra.mxu1 %v673_v26  ;;  %v660_v52 = vadd.f32 %v984_v50, %v659_v48 }
  0xe4   : > { %v1037_v49 = vpop.f32.mrf.mxu0 }
  0xe6   : > { %v662_v51 = vpop.f32.mrf.mxu0 }
  0xe7   : > { %v663_v54 = vadd.f32 %v984_v50, %v662_v51 }
  0xe8   : > { %v1038_v53 = vpop.f32.mrf.mxu0 }
  0xe9   : > { %v740_v55 = vpack.c.bf16 %v663_v54, %v660_v52 }
  0xea   : > { %1042 = vmatmul.mubr.msk.bf16.vlgmr.msra.gmra.mxu1 %vm668_vm2, %v666_v29 }
  0xeb   : > { %1046 = vmatpush3.bf16.msra.mxu0 %v740_v55 }
 0x1aa   : > { %v709_v32 = vpop.f32.mrf.mxu1 }
 0x1ab   : > { %v717_v33 = vsel %vm716_vm3, %v709_v32, -inf }
 0x1ac   : > { %718 = vmax.xlane.f32.xlu0 %v717_v33  ;;  %v1043_v34 = vpop.f32.mrf.mxu1 }
 0x1ae   : > { %v712_v35 = vpop.f32.mrf.mxu1 }
 0x1af   : > { %v720_v36 = vsel %vm716_vm3, %v712_v35, -inf }
 0x1b0   : > { %721 = vmax.xlane.f32.xlu0 %v720_v36  ;;  %v1044_v37 = vpop.f32.mrf.mxu1 }
 0x235   : > { %v719_v38 = vpop.xlane.xlu0 %718 }
 0x236   : > { %v723_v39 = vsub.f32 %v709_v32, %v719_v38 }
 0x238   : > { %v725_v40 = vmul.f32 1.442695, %v723_v39 }
 0x239   : > { %v722_v41 = vpop.xlane.xlu0 %721 }
 0x23a   : > { %1100 = vpow2.f32 %v725_v40  ;;  %v724_v42 = vsub.f32 %v712_v35, %v722_v41 }
 0x23c   : > { %v727_v43 = vmul.f32 1.442695, %v724_v42 }
 0x23e   : > { %1102 = vpow2.f32 %v727_v43 }
 0x247   : > { %v1101_v44 = vpop.eup %1100 }
 0x248   : > { %v729_v45 = vsel %vm716_vm3, %v1101_v44, 0.0 }
 0x249   : > { %730 = vadd.xlane.f32.xlu1 %v729_v45 }
 0x24b   : > { %v1103_v46 = vpop.eup %1102 }
 0x24c   : > { %v732_v47 = vsel %vm716_vm3, %v1103_v46, 0.0 }
 0x24d   : > { %733 = vadd.xlane.f32.xlu1 %v732_v47 }
 0x2d2   : > { %v731_v56 = vpop.xlane.xlu1 %730 }
 0x2d3   : > { %1104 = vrcp.f32 %v731_v56 }
 0x2d6   : > { %v734_v57 = vpop.xlane.xlu1 %733 }
 0x2d7   : > { %1106 = vrcp.f32 %v734_v57 }
 0x2e0   : > { %v1105_v58 = vpop.eup %1104 }
 0x2e1   : > { %v737_v61 = vmul.f32 %v1105_v58, %v1101_v44 }
 0x2e4   : > { %v1107_v59 = vpop.eup %1106 }
 0x2e5   : > { %v738_v60 = vmul.f32 %v1107_v59, %v1103_v46 }
 0x2e7   : > { %v739_v62 = vpack.c.bf16 %v738_v60, %v737_v61 }
 0x2e9   : > { %1048 = vmatmul.mubr.msk.bf16.vlgmr.msra.gmra.mxu0 %vm716_vm3, %v739_v62 }
 0x3a9   : > { %v778_v63 = vpop.f32.mrf.mxu0 }
 0x3aa   : > { %v1000_v0 = vpack.c.bf16 %v778_v63, %v778_v63 }
 0x3ab   : > { %v1049_v1 = vpop.f32.mrf.mxu0 }
 0x3ac   : > { %794 = vst.msk [vmem:[%s449_s13] sm:$0xf] %vm793_vm4, %v1000_v0 }
 0x3ad   : > { %v781_v2 = vpop.f32.mrf.mxu0 }
 0x3ae   : > { %v1001_v3 = vpack.c.bf16 %v781_v2, %v781_v2 }
 0x3af   : > { %v1050_v4 = vpop.f32.mrf.mxu0 }
 0x3b0   : > { %795 = vst.msk [vmem:[%s449_s13 + $0x4] sm:$0xf] %vm793_vm4, %v1001_v3 }
 0x3b1 PF: > { %s18_s9 = sadd.s32 1, %s1146_s9   ;;  %s1318_s27 = smov %s1138_s29 }
 0x3b2   : > { %p15_p7 = scmp.ge.s32.totalorder %s18_s9, 10   ;;  %s1319_s28 = smov %s1142_s30 }
 0x3b3   : > { %s1320_s29 = smov %s1323_s10  ;;  %s1321_s30 = smov %s1327_s11 }
 0x3b4   :  { %17 = sbr.rel (!%p15_p7) target bundleno = 3 (0x3), region = 103 }

// kernel: transformer_forward.18
= control target key start
LH: loop header
LB: loop body
LE: loop exit
PB: predicated region body
PF: predicated region fallthrough
CT: control target
= control target key end

     0   :  { %s689_s24 = smov 0   ;;  %s748_s0 = inlined_call_operand.vmem [shape: bf16[32,32], index: 0, kind: input, shape index: {}]   ;;  %s749_s1 = inlined_call_operand.vmem [shape: bf16[32,64], index: 1, kind: input, shape index: {}]   ;;  %s750_s2 = inlined_call_operand.vmem [shape: f32[1,64], index: 2, kind: input, shape index: {}]   ;;  %s751_s3 = inlined_call_operand.vmem [shape: bf16[64,32], index: 3, kind: input, shape index: {}]   ;;  %s752_s4 = inlined_call_operand.vmem [shape: f32[1,32], index: 4, kind: input, shape index: {}]   ;;  %s753_s5 = inlined_call_operand.vmem [shape: f32[1,32], index: 5, kind: input, shape index: {}]   ;;  %s754_s6 = inlined_call_operand.vmem [shape: f32[1,32], index: 6, kind: input, shape index: {}]   ;;  %s755_s7 = inlined_call_operand.vmem [shape: bf16[32,32], index: 7, kind: output, shape index: {}]  }
   0x1 LB: > { %s561_s25 = sadd.s32 4294967295, %s645_s24   ;;  %p565_p0 = scmp.ge.s32.totalorder %s645_s24, 1  ;;  %s645_s24 = sphi %s689_s24, %s17_s24  }
   0x2   : > { %p238_p1 = scmp.lt.s32.totalorder %s645_s24, 3 }
   0x4   : > { %p239_p2 = pnand %p565_p0, %p238_p1 }
   0x5   : > { %s566_s30 = sshll.u32 (!%p239_p2), %s561_s25, 1 }
   0x6   : > { %242 = sbr.rel (%p239_p2) target bundleno = 735 (0x2df), region = 48  ;;  %p271_p3 = scmp.lt.s32.totalorder (!%p239_p2), %s566_s30, 3 }
   0xb   : > { %v627_v0 = vld [vmem:[%s749_s1 + $0x8] sm:$0xff]   ;;  %v647_v1 = vmov 0.0   ;;  %v628_v2 = vld [vmem:[%s749_s1] sm:$0xff]   ;;  %vm648_vm0 = vmmov 0   ;;  %v630_v3 = vld [vmem:[%s751_s3 + $0x18] sm:$0xff]   ;;  %s757_s30 = smov (!%p271_p3, %s566_s30), 3 }
   0xc   : > { %597 = vmatprep.subr.bf16.mxu0 %v647_v1  ;;  %605 = vmatprep.subr.bf16.mxu1 %v647_v1  ;;  %s567_s10 = sshll.u32 %s757_s30, 2  ;;  %vm313_vm1 = vcmask 261120   ;;  %v631_v5 = vld [vmem:[%s751_s3 + $0x10] sm:$0xff]   ;;  %v632_v6 = vld [vmem:[%s751_s3 + $0x8] sm:$0xff]   ;;  %v633_v7 = vld [vmem:[%s751_s3] sm:$0xff]   ;;  %vm400_vm2 = vcmask 523264  }
   0xd   : > { %598 = vmatpush3.bf16.msra.mxu0 %v627_v0  ;;  %601 = vmatprep.mubr.msk.bf16.mxu0 %vm648_vm0, %v647_v1  ;;  %s274_s13 = scalar_lea.vmem %s748_s0, %s567_s10  ;;  %v570_v8 = vld [vmem:[%s750_s2] ss:$0 sm:$0xff]  ;;  %s280_s9 = scalar_lea.vmem %s755_s7, %s567_s10  ;;  %vm502_vm3 = vcmask 257024  }
   0xe   : > { %599 = vmatprep.subr.bf16.mxu0 %v647_v1  ;;  %613 = vmatprep.mubr.msk.bf16.mxu1 %vm648_vm0, %v647_v1  ;;  %v283_v4 = vld [vmem:[%s274_s13] sm:$0xff]  }
   0xf   : > { %606 = vmatpush3.bf16.msra.mxu1 %v630_v3  ;;  %v575_v18 = vld [vmem:[%s752_s4] ss:$0 sm:$0xff]  ;;  %v445_v19 = vunpack.c.l.bf16 %v283_v4  ;;  %v446_v24 = vunpack.c.h.bf16 %v283_v4 }
  0x10   : > { %607 = vmatprep.subr.bf16.mxu1 %v647_v1  ;;  %v581_v48 = vld [vmem:[%s753_s5] ss:$0 sm:$0xff] }
  0x11   : > { %600 = vmatpush3.bf16.msra.mxu0 %v628_v2  ;;  %v582_v50 = vld [vmem:[%s754_s6] ss:$0 sm:$0xff] }
  0x13   : > { %608 = vmatpush3.bf16.msra.mxu1 %v631_v5 }
  0x14   : > { %602 = vmatmul.mubr.msk.bf16.vlgmr.msra.gmra.mxu0 %vm313_vm1, %v283_v4  ;;  %609 = vmatprep.subr.bf16.mxu1 %v647_v1 }
  0x17   : > { %610 = vmatpush3.bf16.msra.mxu1 %v632_v6 }
  0x18   : > { %611 = vmatprep.subr.bf16.mxu1 %v647_v1 }
  0x1b   : > { %612 = vmatpush3.bf16.msra.mxu1 %v633_v7 }
  0xd4   : > { %v351_v9 = vpop.f32.mrf.mxu0 }
  0xd5   : > { %v352_v11 = vadd.f32 %v570_v8, %v351_v9 }
  0xd6   : > { %v603_v10 = vpop.f32.mrf.mxu0 }
  0xd7   : > { %v358_v15 = vmax.f32 %v352_v11, 0.0 }
  0xd8   : > { %v354_v12 = vpop.f32.mrf.mxu0 }
  0xd9   : > { %v355_v13 = vadd.f32 %v570_v8, %v354_v12 }
  0xda   : > { %v604_v14 = vpop.f32.mrf.mxu0 }
  0xdb   : > { %v359_v16 = vmax.f32 %v355_v13, 0.0 }
  0xdd   : > { %v360_v17 = vpack.c.bf16 %v359_v16, %v358_v15 }
  0xdf   : > { %614 = vmatmul.mubr.msk.bf16.vlgmr.msra.gmra.mxu1 %vm400_vm2, %v360_v17 }
 0x19f   : > { %v438_v20 = vpop.f32.mrf.mxu1 }
 0x1a0   : > { %v439_v21 = vadd.f32 %v575_v18, %v438_v20 }
 0x1a1   : > { %v615_v22 = vpop.f32.mrf.mxu1 }
 0x1a2   : > { %v447_v23 = vadd.f32 %v445_v19, %v439_v21 }
 0x1a3   : > { %v441_v25 = vpop.f32.mrf.mxu1 }
 0x1a4   : > { %v442_v26 = vadd.f32 %v575_v18, %v441_v25  ;;  %v449_v27 = vsel %vm313_vm1, %v447_v23, 0.0 }
 0x1a5   : > { %450 = vadd.xlane.f32.xlu0 %v449_v27  ;;  %v616_v28 = vpop.f32.mrf.mxu1 }
 0x1a6   : > { %v448_v29 = vadd.f32 %v446_v24, %v442_v26 }
 0x1a8   : > { %v452_v30 = vsel %vm313_vm1, %v448_v29, 0.0 }
 0x1a9   : > { %453 = vadd.xlane.f32.xlu0 %v452_v30 }
 0x22e   : > { %v451_v31 = vpop.xlane.xlu0 %450 }
 0x22f   : > { %v456_v32 = vmul.f32 0.03125, %v451_v31 }
 0x231   : > { %v458_v33 = vsub.f32 %v447_v23, %v456_v32 }
 0x232   : > { %v454_v34 = vpop.xlane.xlu0 %453 }
 0x233   : > { %v457_v35 = vmul.f32 0.03125, %v454_v34  ;;  %v460_v36 = vmul.f32 %v458_v33, %v458_v33 }
 0x235   : > { %v459_v37 = vsub.f32 %v448_v29, %v457_v35  ;;  %v462_v38 = vsel %vm313_vm1, %v460_v36, 0.0 }
 0x236   : > { %463 = vadd.xlane.f32.xlu1 %v462_v38 }
 0x237   : > { %v461_v39 = vmul.f32 %v459_v37, %v459_v37 }
 0x239   : > { %v465_v40 = vsel %vm313_vm1, %v461_v39, 0.0 }
 0x23a   : > { %466 = vadd.xlane.f32.xlu1 %v465_v40 }
 0x2bf   : > { %v464_v41 = vpop.xlane.xlu1 %463 }
 0x2c0   : > { %v468_v42 = vmul.f32 0.03125, %v464_v41 }
 0x2c2   : > { %v470_v43 = vadd.f32 1e-05, %v468_v42 }
 0x2c3   : > { %v467_v44 = vpop.xlane.xlu1 %466 }
 0x2c4   : > { %635 = vrsqrt.f32 %v470_v43  ;;  %v469_v45 = vmul.f32 0.03125, %v467_v44 }
 0x2c6   : > { %v471_v46 = vadd.f32 1e-05, %v469_v45 }
 0x2c8   : > { %637 = vrsqrt.f32 %v471_v46 }
 0x2d1   : > { %v636_v47 = vpop.eup %635 }
 0x2d2   : > { %v474_v49 = vmul.f32 %v636_v47, %v458_v33 }
 0x2d4   : > { %v483_v51 = vmul.f32 %v581_v48, %v474_v49 }
 0x2d5   : > { %v638_v52 = vpop.eup %637 }
 0x2d6   : > { %v492_v53 = vadd.f32 %v582_v50, %v483_v51  ;;  %v475_v54 = vmul.f32 %v638_v52, %v459_v37 }
 0x2d8   : > { %v587_v55 = vpack.c.bf16 %v492_v53, %v492_v53  ;;  %v484_v56 = vmul.f32 %v581_v48, %v475_v54 }
 0x2da   : > { %503 = vst.msk [vmem:[%s280_s9] sm:$0xf] %vm502_vm3, %v587_v55  ;;  %v493_v57 = vadd.f32 %v582_v50, %v484_v56 }
 0x2dc   : > { %v588_v58 = vpack.c.bf16 %v493_v57, %v493_v57 }
 0x2de   : > { %504 = vst.msk [vmem:[%s280_s9 + $0x4] sm:$0xf] %vm502_vm3, %v588_v58 }
 0x2df PF: > { %s17_s24 = sadd.s32 1, %s645_s24  }
 0x2e0   : > { %p14_p4 = scmp.ge.s32.totalorder %s17_s24, 4  }
 0x2e2   :  { %16 = sbr.rel (!%p14_p4) target bundleno = 1 (0x1), region = 78 }

// kernel: transformer_forward.22
= control target key start
LH: loop header
LB: loop body
LE: loop exit
PB: predicated region body
PF: predicated region fallthrough
CT: control target
= control target key end

     0   :  { %s1131_s27 = smov 0   ;;  %s1133_s28 = smov 0   ;;  %s1232_s0 = inlined_call_operand.vmem [shape: bf16[2,8,32], index: 0, kind: input, shape index: {}]   ;;  %s1233_s1 = inlined_call_operand.vmem [shape: bf16[2,8,32], index: 1, kind: input, shape index: {}]   ;;  %s1234_s2 = inlined_call_operand.vmem [shape: bf16[4,32,8], index: 2, kind: input, shape index: {}]   ;;  %s1235_s3 = inlined_call_operand.vmem [shape: f32[4,1,8], index: 3, kind: input, shape index: {}]   ;;  %s1236_s4 = inlined_call_operand.vmem [shape: bf16[4,32,8], index: 4, kind: input, shape index: {}]   ;;  %s1237_s5 = inlined_call_operand.vmem [shape: f32[4,1,8], index: 5, kind: input, shape index: {}]   ;;  %s1238_s6 = inlined_call_operand.vmem [shape: bf16[4,32,8], index: 6, kind: input, shape index: {}]   ;;  %s1239_s7 = inlined_call_operand.vmem [shape: f32[4,1,8], index: 7, kind: input, shape index: {}]   ;;  %s1240_s8 = inlined_call_operand.vmem [shape: bf16[2,4,8,8], index: 8, kind: output, shape index: {}]  }
   0x1   :  { %s1135_s29 = smov 0   ;;  %s1137_s30 = smov 0  }
   0x2   :  { %s1139_s9 = smov 0  }
   0x3 LB: > { %s27_s10 = sadd.s32 1, %s1074_s29  ;;  %s30_s11 = sadd.s32 1, %s1078_s30  ;;  %s1082_s9 = sphi %s1139_s9, %s18_s9   ;;  %s1078_s30 = sphi %s1137_s30, %s1244_s30   ;;  %s1074_s29 = sphi %s1135_s29, %s1243_s29   ;;  %s1070_s28 = sphi %s1133_s28, %s1242_s28   ;;  %s1066_s27 = sphi %s1131_s27, %s1241_s27  }
   0x4   : > { %p28_p0 = scmp.ge.s32.totalorder %s27_s10, 4  ;;  %p913_p1 = scmp.ge.s32.totalorder %s1082_s9, 1 }
   0x5   : > { %p338_p2 = scmp.lt.s32.totalorder %s1082_s9, 9 }
   0x6   : > { %s1246_s10 = smov (%p28_p0, %s27_s10), 0  ;;  %s1248_s11 = smov (!%p28_p0, %s30_s11), %s1078_s30 }
   0x7   : > { %p339_p3 = pnand %p913_p1, %p338_p2  ;;  %p32_p4 = scmp.ge.s32.totalorder %s1248_s11, 2 }
   0x8   : > { %p410_p5 = scmp.lt.s32.totalorder (!%p339_p3), %s1066_s27, 3  ;;  %p402_p6 = scmp.lt.s32.totalorder (!%p339_p3), %s1070_s28, 1 }
   0x9   : > { %s1250_s11 = smov (%p32_p4, %s1248_s11), 0  ;;  %342 = sbr.rel (%p339_p3) target bundleno = 936 (0x3a8), region = 52 }
   0xe   : > { %v1084_v0 = vmov 0.0   ;;  %s1252_s27 = smov (!%p410_p5, %s1066_s27), 3  ;;  %vm1085_vm0 = vmmov 0   ;;  %s1254_s28 = smov (!%p402_p6, %s1070_s28), 1  ;;  %vm469_vm1 = vcmask 261120   ;;  %vm644_vm2 = vcmask 64512  }
   0xf   : > { %964 = vmatprep.subr.bf16.mxu1 %v1084_v0  ;;  %956 = vmatprep.subr.bf16.mxu0 %v1084_v0  ;;  %s940_s12 = sshll.u32 %s1252_s27, 4  ;;  %s1172_s19 = sshll.u32 %s1254_s28, 2  ;;  %vm707_vm3 = vcmask 1043456   ;;  %vm752_vm4 = vcmask 60416  }
  0x10   : > { %968 = vmatprep.mubr.msk.bf16.mxu1 %vm1085_vm0, %v1084_v0  ;;  %960 = vmatprep.mubr.msk.bf16.mxu0 %vm1085_vm0, %v1084_v0  ;;  %s422_s15 = scalar_lea.vmem %s1236_s4, %s940_s12  ;;  %s414_s18 = scalar_lea.vmem %s1234_s2, %s940_s12 }
  0x11   : > { %v1034_v1 = vld [vmem:[%s422_s15 + $0x8] sm:$0xff]   ;;  %s405_s22 = scalar_lea.vmem %s1232_s0, %s1172_s19  ;;  %s409_s25 = scalar_lea.vmem %s1233_s1, %s1172_s19  ;;  %v1036_v3 = vld [vmem:[%s422_s15] sm:$0xff]  }
  0x12   : > { %v1035_v2 = vld [vmem:[%s414_s18 + $0x8] sm:$0xff]   ;;  %965 = vmatpush3.bf16.msra.mxu1 %v1034_v1  ;;  %s1185_s14 = scalar_lea.vmem %s1238_s6, %s940_s12  ;;  %v1037_v4 = vld [vmem:[%s414_s18] sm:$0xff]   ;;  %s425_s15 = scalar_lea.vmem %s1237_s5, %s1252_s27 }
  0x13   : > { %957 = vmatpush3.bf16.msra.mxu0 %v1035_v2  ;;  %966 = vmatprep.subr.bf16.mxu1 %v1084_v0  ;;  %v443_v5 = vld [vmem:[%s405_s22] sm:$0xf]  ;;  %s417_s18 = scalar_lea.vmem %s1235_s3, %s1252_s27  ;;  %v1038_v23 = vld [vmem:[%s1185_s14 + $0x8] sm:$0xff]   ;;  %s433_s22 = scalar_lea.vmem %s1239_s7, %s1252_s27 }
  0x14   : > { %958 = vmatprep.subr.bf16.mxu0 %v1084_v0  ;;  %v444_v6 = vld [vmem:[%s409_s25] sm:$0xf]  ;;  %s439_s23 = sadd.s32 %s1172_s19, %s1252_s27 }
  0x15   : > { %v445_v7 = vadd.bf16 %v444_v6, %v443_v5  ;;  %v928_v8 = vld [vmem:[%s425_s15] ss:$0 sm:$0xff]  ;;  %s923_s24 = sshll.u32 %s439_s23, 2 }
  0x16   : > { %967 = vmatpush3.bf16.msra.mxu1 %v1036_v3  ;;  %v924_v13 = vld [vmem:[%s417_s18] ss:$0 sm:$0xff]  ;;  %s441_s13 = scalar_lea.vmem %s1240_s8, %s923_s24 }
  0x17   : > { %959 = vmatpush3.bf16.msra.mxu0 %v1037_v4  ;;  %980 = vmatprep.subr.bf16.mxu1 %v1084_v0  ;;  %v1039_v24 = vld [vmem:[%s1185_s14] sm:$0xff]  }
  0x18   : > { %972 = vmatprep.subr.bf16.mxu0 %v1084_v0  ;;  %v932_v36 = vld [vmem:[%s433_s22] ss:$0 sm:$0xff] }
  0x19   : > { %969 = vmatmul.mubr.msk.bf16.vlgmr.msra.gmra.mxu1 %vm469_vm1, %v445_v7 }
  0x1a   : > { %961 = vmatmul.mubr.msk.bf16.vlgmr.msra.gmra.mxu0 %vm469_vm1, %v445_v7  ;;  %982 = vmatprep.mubr.msk.bf16.mxu1 %vm1085_vm0, %v1084_v0 }
  0x1b   : > { %976 = vmatprep.mubr.msk.bf16.mxu0 %vm1085_vm0, %v1084_v0  ;;  %973 = vmatpush3.bf16.msra.mxu0 %v1038_v23 }
  0x1c   : > { %974 = vmatprep.subr.bf16.mxu0 %v1084_v0 }
  0x1f   : > { %975 = vmatpush3.bf16.msra.mxu0 %v1039_v24 }
  0x20   : > { %986 = vmatprep.subr.bf16.mxu0 %v1084_v0 }
  0x22   : > { %977 = vmatmul.mubr.msk.bf16.vlgmr.msra.gmra.mxu0 %vm469_vm1, %v443_v5 }
  0x23   : > { %988 = vmatprep.mubr.msk.bf16.mxu0 %vm1085_vm0, %v1084_v0 }
  0xd9   : > { %v570_v9 = vpop.f32.mrf.mxu1 }
  0xda   : > { %v571_v10 = vadd.f32 %v928_v8, %v570_v9  ;;  %v507_v11 = vpop.f32.mrf.mxu0 }
  0xdb   : > { %v970_v12 = vpop.f32.mrf.mxu1  ;;  %v508_v18 = vadd.f32 %v924_v13, %v507_v11 }
  0xdc   : > { %v643_v14 = vpack.c.bf16 %v571_v10, %v571_v10  ;;  %v962_v15 = vpop.f32.mrf.mxu0 }
  0xdd   : > { %v573_v16 = vpop.f32.mrf.mxu1  ;;  %v642_v22 = vpack.c.bf16 %v508_v18, %v508_v18 }
  0xde   : > { %v649_v17 = vsel %vm644_vm2, %v643_v14, 0  ;;  %v510_v19 = vpop.f32.mrf.mxu0 }
  0xdf   : > { %v971_v20 = vpop.f32.mrf.mxu1  ;;  %981 = vmatpush3.bf16.xpose.msra.mxu1 %v649_v17 }
  0xe0   : > { %v963_v21 = vpop.f32.mrf.mxu0 }
  0xe2   : > { %v636_v35 = vpop.f32.mrf.mxu0 }
  0xe3   : > { %v637_v37 = vadd.f32 %v932_v36, %v636_v35 }
  0xe4   : > { %v978_v38 = vpop.f32.mrf.mxu0 }
  0xe5   : > { %v703_v39 = vpack.c.bf16 %v637_v37, %v637_v37 }
  0xe6   : > { %983 = vmatmul.mubr.msk.bf16.vlgmr.msra.gmra.mxu1 %vm644_vm2, %v642_v22  ;;  %v639_v40 = vpop.f32.mrf.mxu0 }
  0xe7   : > { %v709_v41 = vsel %vm707_vm3, %v703_v39, 0 }
  0xe8   : > { %v979_v42 = vpop.f32.mrf.mxu0  ;;  %987 = vmatpush3.bf16.msra.mxu0 %v709_v41 }
 0x1a6   : > { %v685_v25 = vpop.f32.mrf.mxu1 }
 0x1a7   : > { %v691_v26 = vsel %vm644_vm2, %v685_v25, -inf }
 0x1a8   : > { %692 = vmax.xlane.f32.xlu0 %v691_v26  ;;  %v984_v27 = vpop.f32.mrf.mxu1 }
 0x1aa   : > { %v688_v28 = vpop.f32.mrf.mxu1 }
 0x1ac   : > { %v985_v29 = vpop.f32.mrf.mxu1 }
 0x231   : > { %v693_v30 = vpop.xlane.xlu0 %692 }
 0x232   : > { %v694_v31 = vsub.f32 %v685_v25, %v693_v30 }
 0x234   : > { %v695_v32 = vmul.f32 1.442695, %v694_v31 }
 0x236   : > { %1040 = vpow2.f32 %v695_v32 }
 0x243   : > { %v1041_v33 = vpop.eup %1040 }
 0x244   : > { %v697_v34 = vsel %vm644_vm2, %v1041_v33, 0.0 }
 0x245   : > { %698 = vadd.xlane.f32.xlu0 %v697_v34 }
 0x2ce   : > { %v699_v43 = vpop.xlane.xlu0 %698 }
 0x2cf   : > { %1042 = vrcp.f32 %v699_v43 }
 0x2dc   : > { %v1043_v44 = vpop.eup %1042 }
 0x2dd   : > { %v701_v45 = vmul.f32 %v1043_v44, %v1041_v33 }
 0x2df   : > { %v702_v46 = vpack.c.bf16 %v701_v45, %v701_v45 }
 0x2e1   : > { %989 = vmatmul.mubr.msk.bf16.vlgmr.msra.gmra.mxu0 %vm644_vm2, %v702_v46 }
 0x3a1   : > { %v745_v47 = vpop.f32.mrf.mxu0 }
 0x3a2   : > { %v751_v48 = vpack.c.bf16 %v745_v47, %v745_v47 }
 0x3a3   : > { %v990_v49 = vpop.f32.mrf.mxu0 }
 0x3a4   : > { %753 = vst.msk [vmem:[%s441_s13] sm:$0xf] %vm752_vm4, %v751_v48 }
 0x3a5   : > { %v748_v50 = vpop.f32.mrf.mxu0 }
 0x3a7   : > { %v991_v51 = vpop.f32.mrf.mxu0 }
 0x3a8 PF: > { %s18_s9 = sadd.s32 1, %s1082_s9   ;;  %s1241_s27 = smov %s1074_s29 }
 0x3a9   : > { %p15_p7 = scmp.ge.s32.totalorder %s18_s9, 10   ;;  %s1242_s28 = smov %s1078_s30 }
 0x3aa   : > { %s1243_s29 = smov %s1246_s10  ;;  %s1244_s30 = smov %s1250_s11 }
 0x3ab   :  { %17 = sbr.rel (!%p15_p7) target bundleno = 3 (0x3), region = 103 }

// kernel: transformer_forward.23
= control target key start
LH: loop header
LB: loop body
LE: loop exit
PB: predicated region body
PF: predicated region fallthrough
CT: control target
= control target key end

     0   :  { %s795_s21 = smov 0   ;;  %s797_s22 = smov 0   ;;  %s868_s0 = inlined_call_operand.vmem [shape: bf16[2,4,8,8], index: 0, kind: input, shape index: {}]   ;;  %s869_s1 = inlined_call_operand.vmem [shape: bf16[2,8,32], index: 1, kind: input, shape index: {}]   ;;  %s870_s2 = inlined_call_operand.vmem [shape: bf16[4,8,32], index: 2, kind: input, shape index: {}]   ;;  %s871_s3 = inlined_call_operand.vmem [shape: f32[1,32], index: 3, kind: input, shape index: {}]   ;;  %s872_s4 = inlined_call_operand.vmem [shape: f32[1,32], index: 4, kind: input, shape index: {}]   ;;  %s873_s5 = inlined_call_operand.vmem [shape: f32[1,32], index: 5, kind: input, shape index: {}]   ;;  %s874_s6 = inlined_call_operand.vmem [shape: bf16[2,8,32], index: 6, kind: output, shape index: {}]  }
   0x1   :  { %s799_s23 = smov 0  }
   0x2 LB: > { %s28_s24 = sadd.s32 1, %s752_s22  ;;  %p653_p0 = scmp.ge.s32.totalorder %s756_s23, 1  ;;  %s756_s23 = sphi %s799_s23, %s16_s23   ;;  %s752_s22 = sphi %s797_s22, %s876_s22   ;;  %s748_s21 = sphi %s795_s21, %s875_s21  }
   0x3   : > { %p30_p1 = scmp.ge.s32.totalorder %s28_s24, 2  ;;  %p245_p2 = scmp.lt.s32.totalorder %s756_s23, 3 }
   0x5   : > { %s878_s24 = smov (%p30_p1, %s28_s24), 0  ;;  %p246_p3 = pnand %p653_p0, %p245_p2 }
   0x6   : > { %p287_p4 = scmp.lt.s32.totalorder (!%p246_p3), %s748_s21, 1 }
   0x7   : > { %249 = sbr.rel (%p246_p3) target bundleno = 537 (0x219), region = 44 }
   0xc   : > { %v659_v0 = vld [vmem:[%s870_s2 + $0x4] sm:$0xf]  ;;  %vm320_vm0 = vcmask 1043456   ;;  %v311_v1 = vld [vmem:[%s870_s2] sm:$0xf]  ;;  %v758_v2 = vmov 0.0  }
   0xd   : > { %682 = vmatprep.subr.bf16.mxu0 %v758_v2  ;;  %v322_v3 = vsel %vm320_vm0, %v659_v0, 0  ;;  %688 = vmatprep.subr.bf16.mxu1 %v758_v2  ;;  %v368_v4 = vsel %vm320_vm0, %v311_v1, 0  ;;  %vm759_vm1 = vmmov 0   ;;  %s880_s21 = smov (!%p287_p4, %s748_s21), 1  ;;  %v663_v5 = vld [vmem:[%s870_s2 + $0x8] sm:$0xf] }
   0xe   : > { %683 = vmatpush3.bf16.msra.mxu0 %v322_v3  ;;  %689 = vmatpush3.bf16.msra.mxu1 %v368_v4  ;;  %v666_v6 = vld [vmem:[%s870_s2 + $0xc] sm:$0xf]  ;;  %s673_s9 = sshll.u32 %s880_s21, 4  ;;  %vm316_vm2 = vcmask 64512   ;;  %v418_v7 = vsel %vm320_vm0, %v663_v5, 0  ;;  %s656_s13 = sshll.u32 %s880_s21, 2 }
   0xf   : > { %684 = vmatprep.mubr.msk.bf16.mxu0 %vm759_vm1, %v758_v2  ;;  %690 = vmatprep.mubr.msk.bf16.mxu1 %vm759_vm1, %v758_v2  ;;  %s294_s12 = scalar_lea.vmem %s868_s0, %s673_s9  ;;  %v469_v8 = vsel %vm320_vm0, %v666_v6, 0  ;;  %s301_s16 = scalar_lea.vmem %s869_s1, %s656_s13  ;;  %v668_v26 = vld [vmem:[%s871_s3] ss:$0 sm:$0xff]  ;;  %vm523_vm3 = vcmask 261120   ;;  %vm555_vm4 = vcmask 257024  }
  0x10   : > { %694 = vmatprep.subr.bf16.mxu0 %v758_v2  ;;  %700 = vmatprep.subr.bf16.mxu1 %v758_v2  ;;  %v658_v9 = vld [vmem:[%s294_s12 + $0x4] sm:$0xf]  ;;  %v310_v10 = vld [vmem:[%s294_s12] sm:$0xf]  ;;  %v662_v11 = vld [vmem:[%s294_s12 + $0x8] sm:$0xf]  ;;  %s308_s29 = scalar_lea.vmem %s874_s6, %s656_s13 }
  0x11   : > { %685 = vmatmul.mubr.msk.bf16.vlgmr.msra.gmra.mxu0 %vm316_vm2, %v658_v9  ;;  %691 = vmatmul.mubr.msk.bf16.vlgmr.msra.gmra.mxu1 %vm316_vm2, %v310_v10  ;;  %v665_v12 = vld [vmem:[%s294_s12 + $0xc] sm:$0xf]  ;;  %v520_v24 = vld [vmem:[%s301_s16] sm:$0xf] }
  0x12   : > { %695 = vmatpush3.bf16.msra.mxu0 %v418_v7  ;;  %701 = vmatpush3.bf16.msra.mxu1 %v469_v8  ;;  %v521_v30 = vunpack.c.l.bf16 %v520_v24  ;;  %v669_v47 = vld [vmem:[%s872_s4] ss:$0 sm:$0xff] }
  0x13   : > { %696 = vmatprep.mubr.msk.bf16.mxu0 %vm759_vm1, %v758_v2  ;;  %702 = vmatprep.mubr.msk.bf16.mxu1 %vm759_vm1, %v758_v2  ;;  %v670_v49 = vld [vmem:[%s873_s5] ss:$0 sm:$0xff] }
  0x19   : > { %697 = vmatmul.mubr.msk.bf16.vlgmr.msra.gmra.mxu0 %vm316_vm2, %v662_v11  ;;  %703 = vmatmul.mubr.msk.bf16.vlgmr.msra.gmra.mxu1 %vm316_vm2, %v665_v12 }
  0xd1   : > { %v358_v13 = vpop.f32.mrf.mxu0  ;;  %v404_v14 = vpop.f32.mrf.mxu1 }
  0xd2   : > { %v405_v21 = vadd.f32 %v404_v14, %v358_v13 }
  0xd3   : > { %v686_v15 = vpop.f32.mrf.mxu0  ;;  %v692_v16 = vpop.f32.mrf.mxu1 }
  0xd5   : > { %v361_v17 = vpop.f32.mrf.mxu0  ;;  %v407_v18 = vpop.f32.mrf.mxu1 }
  0xd7   : > { %v687_v19 = vpop.f32.mrf.mxu0  ;;  %v693_v20 = vpop.f32.mrf.mxu1 }
  0xd9   : > { %v454_v22 = vpop.f32.mrf.mxu0  ;;  %v505_v23 = vpop.f32.mrf.mxu1 }
  0xda   : > { %v460_v25 = vadd.f32 %v454_v22, %v405_v21 }
  0xdb   : > { %v698_v27 = vpop.f32.mrf.mxu0  ;;  %v704_v28 = vpop.f32.mrf.mxu1 }
  0xdc   : > { %v511_v29 = vadd.f32 %v505_v23, %v460_v25 }
  0xdd   : > { %v457_v31 = vpop.f32.mrf.mxu0  ;;  %v508_v32 = vpop.f32.mrf.mxu1 }
  0xde   : > { %v519_v33 = vadd.f32 %v668_v26, %v511_v29 }
  0xdf   : > { %v699_v34 = vpop.f32.mrf.mxu0  ;;  %v705_v35 = vpop.f32.mrf.mxu1 }
  0xe0   : > { %v522_v36 = vadd.f32 %v521_v30, %v519_v33 }
  0xe2   : > { %v524_v37 = vsel %vm523_vm3, %v522_v36, 0.0 }
  0xe3   : > { %525 = vadd.xlane.f32.xlu0 %v524_v37 }
 0x16c   : > { %v526_v38 = vpop.xlane.xlu0 %525 }
 0x16d   : > { %v528_v39 = vmul.f32 0.03125, %v526_v38 }
 0x16f   : > { %v529_v40 = vsub.f32 %v522_v36, %v528_v39 }
 0x171   : > { %v530_v41 = vmul.f32 %v529_v40, %v529_v40 }
 0x173   : > { %v531_v42 = vsel %vm523_vm3, %v530_v41, 0.0 }
 0x174   : > { %532 = vadd.xlane.f32.xlu0 %v531_v42 }
 0x1fd   : > { %v533_v43 = vpop.xlane.xlu0 %532 }
 0x1fe   : > { %v534_v44 = vmul.f32 0.03125, %v533_v43 }
 0x200   : > { %v535_v45 = vadd.f32 1e-05, %v534_v44 }
 0x202   : > { %732 = vrsqrt.f32 %v535_v45 }
 0x20f   : > { %v733_v46 = vpop.eup %732 }
 0x210   : > { %v537_v48 = vmul.f32 %v733_v46, %v529_v40 }
 0x212   : > { %v545_v50 = vmul.f32 %v669_v47, %v537_v48 }
 0x214   : > { %v553_v51 = vadd.f32 %v670_v49, %v545_v50 }
 0x216   : > { %v554_v52 = vpack.c.bf16 %v553_v51, %v553_v51 }
 0x218   : > { %556 = vst.msk [vmem:[%s308_s29] sm:$0xf] %vm555_vm4, %v554_v52 }
 0x219 PF: > { %s16_s23 = sadd.s32 1, %s756_s23   ;;  %s875_s21 = smov %s752_s22 }
 0x21a   : > { %p13_p5 = scmp.ge.s32.totalorder %s16_s23, 4   ;;  %s876_s22 = smov %s878_s24 }
 0x21c   :  { %15 = sbr.rel (!%p13_p5) target bundleno = 2 (0x2), region = 83 }

// kernel: transformer_forward.24
= control target key start
LH: loop header
LB: loop body
LE: loop exit
PB: predicated region body
PF: predicated region fallthrough
CT: control target
= control target key end

     0   :  { %s1286_s13 = smov 0   ;;  %s1288_s14 = smov 0   ;;  %s1404_s0 = inlined_call_operand.vmem [shape: bf16[2,8,32], index: 0, kind: input, shape index: {}]   ;;  %s1405_s1 = inlined_call_operand.vmem [shape: bf16[2,8,32], index: 1, kind: input, shape index: {}]   ;;  %s1406_s2 = inlined_call_operand.vmem [shape: bf16[2,16,32], index: 2, kind: input, shape index: {}]   ;;  %s1407_s3 = inlined_call_operand.vmem [shape: bf16[2,16,32], index: 3, kind: input, shape index: {}]   ;;  %s1408_s4 = inlined_call_operand.vmem [shape: bf16[4,32,8], index: 4, kind: input, shape index: {}]   ;;  %s1409_s5 = inlined_call_operand.vmem [shape: f32[4,1,8], index: 5, kind: input, shape index: {}]   ;;  %s1410_s6 = inlined_call_operand.vmem [shape: bf16[4,32,8], index: 6, kind: input, shape index: {}]   ;;  %s1411_s7 = inlined_call_operand.vmem [shape: f32[4,1,8], index: 7, kind: input, shape index: {}]   ;;  %s1412_s8 = inlined_call_operand.vmem [shape: bf16[4,32,8], index: 8, kind: input, shape index: {}]   ;;  %s1413_s9 = inlined_call_operand.vmem [shape: f32[4,1,8], index: 9, kind: input, shape index: {}]   ;;  %s1414_s10 = inlined_call_operand.vmem [shape: bf16[2,4,8,8], index: 10, kind: output, shape index: {}]  }
   0x1   :  { %s1290_s15 = smov 0   ;;  %s1292_s16 = smov 0  }
   0x2   :  { %s1294_s17 = smov 0  }
   0x3 LB: > { %s29_s18 = sadd.s32 1, %s1219_s15  ;;  %s32_s19 = sadd.s32 1, %s1223_s16  ;;  %s1227_s17 = sphi %s1294_s17, %s20_s17   ;;  %s1223_s16 = sphi %s1292_s16, %s1422_s16   ;;  %s1219_s15 = sphi %s1290_s15, %s1421_s15   ;;  %s1215_s14 = sphi %s1288_s14, %s1420_s14   ;;  %s1211_s13 = sphi %s1286_s13, %s1419_s13  }
   0x4   : > { %p30_p0 = scmp.ge.s32.totalorder %s29_s18, 4  ;;  %p1049_p1 = scmp.ge.s32.totalorder %s1227_s17, 1 }
   0x5   : > { %p408_p2 = scmp.lt.s32.totalorder %s1227_s17, 9 }
   0x6   : > { %s1424_s18 = smov (%p30_p0, %s29_s18), 0  ;;  %s1426_s19 = smov (!%p30_p0, %s32_s19), %s1223_s16 }
   0x7   : > { %1415 = sst [smem:[#allocation2_spill]] %s1424_s18  ;;  %p409_p3 = pnand %p1049_p1, %p408_p2 }
   0x8   : > { %p34_p4 = scmp.ge.s32.totalorder %s1426_s19, 2  ;;  %p504_p5 = scmp.lt.s32.totalorder (!%p409_p3), %s1211_s13, 3 }
   0x9   : > { %412 = sbr.rel (%p409_p3) target bundleno = 940 (0x3ac), region = 60  ;;  %p486_p6 = scmp.lt.s32.totalorder (!%p409_p3), %s1215_s14, 1 }
   0xa   : > { %s1428_s19 = smov (%p34_p4, %s1426_s19), 0 }
   0xb   : > { %1416 = sst [smem:[#allocation3_spill]] %s1428_s19 }
   0xe   : > { %v1229_v0 = vmov 0.0   ;;  %s1430_s13 = smov (!%p504_p5, %s1211_s13), 3  ;;  %vm1230_vm0 = vmmov 0   ;;  %s1432_s14 = smov (!%p486_p6, %s1215_s14), 1  ;;  %vm569_vm1 = vcmask 261120   ;;  %vm759_vm2 = vcmask 64512  }
   0xf   : > { %1108 = vmatprep.subr.bf16.mxu1 %v1229_v0  ;;  %1100 = vmatprep.subr.bf16.mxu0 %v1229_v0  ;;  %s1084_s20 = sshll.u32 %s1430_s13, 4  ;;  %s1082_s27 = sshll.u32 %s1432_s14, 3  ;;  %vm806_vm3 = vcmask 130048   ;;  %vm864_vm4 = vcmask 60416  }
  0x10   : > { %1112 = vmatprep.mubr.msk.bf16.mxu1 %vm1230_vm0, %v1229_v0  ;;  %1104 = vmatprep.mubr.msk.bf16.mxu0 %vm1230_vm0, %v1229_v0  ;;  %s516_s23 = scalar_lea.vmem %s1410_s6, %s1084_s20  ;;  %s508_s26 = scalar_lea.vmem %s1408_s4, %s1084_s20 }
  0x11   : > { %v1178_v1 = vld [vmem:[%s516_s23 + $0x8] sm:$0xff]   ;;  %v1179_v2 = vld [vmem:[%s516_s23] sm:$0xff]   ;;  %s498_s30 = scalar_lea.vmem %s1406_s2, %s1082_s27  ;;  %s503_s19 = scalar_lea.vmem %s1407_s3, %s1082_s27 }
  0x12   : > { %1109 = vmatpush3.bf16.msra.mxu1 %v1178_v1  ;;  %v1180_v3 = vld [vmem:[%s508_s26 + $0x8] sm:$0xff]   ;;  %s1337_s18 = sshll.u32 %s1432_s14, 2  ;;  %v540_v4 = vld [vmem:[%s498_s30] sm:$0xf]  ;;  %v541_v5 = vld [vmem:[%s498_s30 + $0x4] sm:$0xf]  ;;  %s1351_s29 = scalar_lea.vmem %s1412_s8, %s1084_s20 }
  0x13   : > { %1110 = vmatprep.subr.bf16.mxu1 %v1229_v0  ;;  %v542_v6 = vld [vmem:[%s503_s19] sm:$0xf]  ;;  %s489_s23 = scalar_lea.vmem %s1404_s0, %s1337_s18  ;;  %s493_s28 = scalar_lea.vmem %s1405_s1, %s1337_s18  ;;  %1101 = vmatpush3.bf16.msra.mxu0 %v1180_v3  ;;  %v543_v7 = vld [vmem:[%s503_s19 + $0x4] sm:$0xf]  ;;  %v1074_v9 = vcombine.low %v540_v4, %v541_v5  ;;  %v1183_v32 = vld [vmem:[%s1351_s29 + $0x8] sm:$0xff]  }
  0x14   : > { %v544_v8 = vadd.bf16 %v542_v6, %v540_v4  ;;  %v545_v10 = vadd.bf16 %v543_v7, %v541_v5  ;;  %1102 = vmatprep.subr.bf16.mxu0 %v1229_v0  ;;  %v1182_v11 = vld [vmem:[%s508_s26] sm:$0xff]   ;;  %s519_s26 = scalar_lea.vmem %s1411_s7, %s1430_s13  ;;  %s511_s12 = scalar_lea.vmem %s1409_s5, %s1430_s13 }
  0x15   : > { %v537_v12 = vld [vmem:[%s489_s23] sm:$0xf]  ;;  %s527_s23 = scalar_lea.vmem %s1413_s9, %s1430_s13  ;;  %s533_s24 = sadd.s32 %s1337_s18, %s1430_s13 }
  0x16   : > { %v538_v13 = vld [vmem:[%s493_s28] sm:$0xf]  ;;  %1111 = vmatpush3.bf16.msra.mxu1 %v1179_v2  ;;  %v1069_v14 = vcombine.low %v544_v8, %v545_v10  ;;  %s1063_s25 = sshll.u32 %s533_s24, 2 }
  0x17   : > { %v539_v15 = vadd.bf16 %v538_v13, %v537_v12  ;;  %1124 = vmatprep.subr.bf16.mxu1 %v1229_v0  ;;  %1103 = vmatpush3.bf16.msra.mxu0 %v1182_v11  ;;  %v1068_v17 = vld [vmem:[%s519_s26] ss:$0 sm:$0xff]  ;;  %s535_s27 = scalar_lea.vmem %s1414_s10, %s1063_s25 }
  0x18   : > { %1116 = vmatprep.subr.bf16.mxu0 %v1229_v0  ;;  %v1064_v25 = vld [vmem:[%s511_s12] ss:$0 sm:$0xff] }
  0x19   : > { %1113 = vmatmul.mubr.msk.bf16.vlgmr.msra.gmra.mxu1 %vm569_vm1, %v1069_v14  ;;  %v1184_v33 = vld [vmem:[%s1351_s29] sm:$0xff]  }
  0x1a   : > { %1126 = vmatprep.mubr.msk.bf16.mxu1 %vm1230_vm0, %v1229_v0  ;;  %1105 = vmatmul.mubr.msk.bf16.vlgmr.msra.gmra.mxu0 %vm569_vm1, %v539_v15  ;;  %v1073_v46 = vld [vmem:[%s527_s23] ss:$0 sm:$0xff] }
  0x1b   : > { %1120 = vmatprep.mubr.msk.bf16.mxu0 %vm1230_vm0, %v1229_v0  ;;  %1117 = vmatpush3.bf16.msra.mxu0 %v1183_v32 }
  0x1c   : > { %1118 = vmatprep.subr.bf16.mxu0 %v1229_v0 }
  0x1f   : > { %1119 = vmatpush3.bf16.msra.mxu0 %v1184_v33 }
  0x20   : > { %1130 = vmatprep.subr.bf16.mxu0 %v1229_v0 }
  0x22   : > { %1121 = vmatmul.mubr.msk.bf16.vlgmr.msra.gmra.mxu0 %vm569_vm1, %v1074_v9 }
  0x23   : > { %1132 = vmatprep.mubr.msk.bf16.mxu0 %vm1230_vm0, %v1229_v0 }
  0xd9   : > { %v678_v16 = vpop.f32.mrf.mxu1 }
  0xda   : > { %v607_v19 = vpop.f32.mrf.mxu0  ;;  %v679_v22 = vadd.f32 %v1068_v17, %v678_v16 }
  0xdb   : > { %v1114_v18 = vpop.f32.mrf.mxu1  ;;  %v608_v29 = vadd.f32 %v1064_v25, %v607_v19 }
  0xdc   : > { %v1106_v21 = vpop.f32.mrf.mxu0 }
  0xdd   : > { %v681_v20 = vpop.f32.mrf.mxu1  ;;  %v757_v31 = vpack.c.bf16 %v608_v29, %v608_v29 }
  0xde   : > { %v682_v23 = vadd.f32 %v1068_v17, %v681_v20  ;;  %v610_v26 = vpop.f32.mrf.mxu0 }
  0xdf   : > { %v1115_v24 = vpop.f32.mrf.mxu1 }
  0xe0   : > { %v758_v27 = vpack.c.bf16 %v682_v23, %v679_v22  ;;  %v1107_v28 = vpop.f32.mrf.mxu0 }
  0xe2   : > { %v764_v30 = vsel %vm759_vm2, %v758_v27, 0  ;;  %v750_v39 = vpop.f32.mrf.mxu0 }
  0xe3   : > { %1125 = vmatpush3.bf16.xpose.msra.mxu1 %v764_v30  ;;  %v751_v47 = vadd.f32 %v1073_v46, %v750_v39 }
  0xe4   : > { %v1122_v40 = vpop.f32.mrf.mxu0 }
  0xe6   : > { %v753_v48 = vpop.f32.mrf.mxu0 }
  0xe7   : > { %v754_v49 = vadd.f32 %v1073_v46, %v753_v48 }
  0xe8   : > { %v1123_v50 = vpop.f32.mrf.mxu0 }
  0xe9   : > { %v819_v51 = vpack.c.bf16 %v754_v49, %v751_v47 }
  0xea   : > { %1127 = vmatmul.mubr.msk.bf16.vlgmr.msra.gmra.mxu1 %vm759_vm2, %v757_v31 }
  0xeb   : > { %1131 = vmatpush3.bf16.msra.mxu0 %v819_v51 }
 0x1aa   : > { %v800_v34 = vpop.f32.mrf.mxu1 }
 0x1ab   : > { %v807_v35 = vsel %vm806_vm3, %v800_v34, -inf }
 0x1ac   : > { %808 = vmax.xlane.f32.xlu0 %v807_v35  ;;  %v1128_v36 = vpop.f32.mrf.mxu1 }
 0x1ae   : > { %v803_v37 = vpop.f32.mrf.mxu1 }
 0x1b0   : > { %v1129_v38 = vpop.f32.mrf.mxu1 }
 0x235   : > { %v809_v41 = vpop.xlane.xlu0 %808 }
 0x236   : > { %v810_v42 = vsub.f32 %v800_v34, %v809_v41 }
 0x238   : > { %v811_v43 = vmul.f32 1.442695, %v810_v42 }
 0x23a   : > { %1185 = vpow2.f32 %v811_v43 }
 0x247   : > { %v1186_v44 = vpop.eup %1185 }
 0x248   : > { %v813_v45 = vsel %vm806_vm3, %v1186_v44, 0.0 }
 0x249   : > { %814 = vadd.xlane.f32.xlu0 %v813_v45 }
 0x2d2   : > { %v815_v52 = vpop.xlane.xlu0 %814 }
 0x2d3   : > { %1187 = vrcp.f32 %v815_v52 }
 0x2e0   : > { %v1188_v53 = vpop.eup %1187 }
 0x2e1   : > { %v817_v54 = vmul.f32 %v1188_v53, %v1186_v44 }
 0x2e3   : > { %v818_v55 = vpack.c.bf16 %v817_v54, %v817_v54 }
 0x2e5   : > { %1133 = vmatmul.mubr.msk.bf16.vlgmr.msra.gmra.mxu0 %vm806_vm3, %v818_v55 }
 0x3a5   : > { %v857_v56 = vpop.f32.mrf.mxu0 }
 0x3a6   : > { %v863_v57 = vpack.c.bf16 %v857_v56, %v857_v56 }
 0x3a7   : > { %v1134_v58 = vpop.f32.mrf.mxu0 }
 0x3a8   : > { %865 = vst.msk [vmem:[%s535_s27] sm:$0xf] %vm864_vm4, %v863_v57 }
 0x3a9   : > { %v860_v59 = vpop.f32.mrf.mxu0 }
 0x3ab   : > { %v1135_v60 = vpop.f32.mrf.mxu0 }
 0x3ac PF: > { %s20_s17 = sadd.s32 1, %s1227_s17   ;;  %s1417_s29 = sld [smem:[#allocation2_spill]] }
 0x3ad   : > { %p17_p7 = scmp.ge.s32.totalorder %s20_s17, 10   ;;  %s1418_s18 = sld [smem:[#allocation3_spill]] }
 0x3ae   : > { %s1419_s13 = smov %s1219_s15  ;;  %s1420_s14 = smov %s1223_s16 }
 0x3af   :  { %19 = sbr.rel (!%p17_p7) target bundleno = 3 (0x3), region = 117 }
 0x3b2   : > { %s1421_s15 = smov %s1417_s29 }
 0x3b3   : > { %s1422_s16 = smov %s1418_s18 }

// kernel: transformer_forward.31
= control target key start
LH: loop header
LB: loop body
LE: loop exit
PB: predicated region body
PF: predicated region fallthrough
CT: control target
= control target key end

     0   :  { %s1049_s0 = inlined_call_operand.vmem [shape: bf16[16,32], index: 0, kind: input, shape index: {}]   ;;  %s1050_s1 = inlined_call_operand.vmem [shape: bf16[32,64], index: 1, kind: input, shape index: {}]   ;;  %s1051_s2 = inlined_call_operand.vmem [shape: f32[1,64], index: 2, kind: input, shape index: {}]   ;;  %s1052_s3 = inlined_call_operand.vmem [shape: bf16[64,32], index: 3, kind: input, shape index: {}]   ;;  %s1053_s4 = inlined_call_operand.vmem [shape: f32[1,32], index: 4, kind: input, shape index: {}]   ;;  %s1054_s5 = inlined_call_operand.vmem [shape: f32[1,32], index: 5, kind: input, shape index: {}]   ;;  %s1055_s6 = inlined_call_operand.vmem [shape: f32[1,32], index: 6, kind: input, shape index: {}]   ;;  %s1056_s7 = inlined_call_operand.vmem [shape: f32[1,32], index: 7, kind: input, shape index: {}]   ;;  %s1057_s8 = inlined_call_operand.vmem [shape: f32[1,32], index: 8, kind: input, shape index: {}]   ;;  %s1058_s9 = inlined_call_operand.hbm [shape: bf16[16,32], index: 9, kind: output, shape index: {0}]   ;;  %s1059_s10 = inlined_call_operand.vmem [shape: f32[16,32], index: 10, kind: output, shape index: {1}]  }
   0x1   :  { %1060 = sst [smem:[#allocation5_spill]] %s1049_s0 }
   0x2   :  { %1061 = sst [smem:[#allocation6_spill]] %s1050_s1 }
   0x3   :  { %16 = vsyncpa [#allocation3], 0 }
   0x4   :  { %18 = vsyncpa [#allocation3 + $0x1], 0  ;;  %s913_s13 = smov 0   ;;  %s915_s14 = smov 0  }
   0x5   :  { %s917_s15 = smov 0   ;;  %s919_s16 = smov 0  }
   0x6 LB: > { %s934_s17 = sadd.s32 4294967295, %s853_s16   ;;  %s689_s18 = sadd.s32 4294967294, %s853_s16   ;;  %s853_s16 = sphi %s919_s16, %s1069_s16   ;;  %s849_s15 = sphi %s917_s15, %s1068_s15   ;;  %s845_s14 = sphi %s915_s14, %s1067_s14   ;;  %s841_s13 = sphi %s913_s13, %s1066_s13  }
   0x7   : > { %s938_s19 = sadd.s32 1, %s853_s16   ;;  %s225_s20 = sadd.s32 1, %s849_s15 }
   0x8   : > { %s222_s21 = ssub.s32 %s853_s16, %s938_s19  ;;  %p235_p0 = scmp.ne.s32.totalorder %s849_s15, %s845_s14 }
   0x9   : > { %p223_p1 = scmp.eq.s32.totalorder %s222_s21, 0  ;;  %p236_p2 = scmp.eq.s32.totalorder %s934_s17, 1 }
   0xa   : > { %p241_p3 = scmp.ne.s32.totalorder %s845_s14, %s841_s13  ;;  %p242_p4 = scmp.eq.s32.totalorder %s689_s18, 1 }
   0xb   : > { %s949_s22 = scalar_select %p223_p1, %s849_s15, %s225_s20  }
   0xc   : > { %p951_p5 = por %p236_p2, %p235_p0  ;;  %p955_p6 = por %p242_p4, %p241_p3 }
   0xd   : > { %p692_p7 = scmp.ge.s32.totalorder %s853_s16, 1  ;;  %p317_p8 = scmp.lt.s32.totalorder %s853_s16, 3 }
   0xf   : > { %p318_p9 = pnand %p692_p7, %p317_p8 }
  0x10   : > { %s1064_s1 = sld [smem:[#allocation6_spill]] (!%p318_p9)  ;;  %p358_p10 = scmp.lt.s32.totalorder (!%p318_p9), %s934_s17, 1 }
  0x11   : > { %321 = sbr.rel (%p318_p9) target bundleno = 1044 (0x414), region = 56  ;;  %s1065_s0 = sld [smem:[#allocation5_spill]] (!%p318_p9) }
  0x12   : > { %s349_s27 = sand.u32 (!%p318_p9), 1, %s845_s14   ;;  %s711_s18 = sshll.u32 (!%p318_p9), %s934_s17, 6 }
  0x13   : > { %s693_s30 = sshll.u32 (!%p318_p9), %s349_s27, 2  ;;  %s586_s28 = scalar_lea.sflag (!%p318_p9), [#allocation3], %s349_s27 }
  0x14   : > { %s351_s12 = scalar_lea.vmem (!%p318_p9), [#allocation2], %s693_s30  ;;  %s857_s30 = smov (!%p318_p9), [#allocation2]  }
  0x16   : > { %v783_v0 = vld [vmem:[%s1064_s1 + $0x8] sm:$0xff]   ;;  %v855_v1 = vmov 0.0   ;;  %v784_v2 = vld [vmem:[%s1064_s1] sm:$0xff]   ;;  %vm856_vm0 = vmmov 0   ;;  %v785_v3 = vld [vmem:[%s1052_s3 + $0x18] sm:$0xff]   ;;  %s972_s11 = scalar_select %p358_p10, %s934_s17, 1 }
  0x17   : > { %722 = vmatprep.subr.bf16.mxu0 %v855_v1  ;;  %730 = vmatprep.subr.bf16.mxu1 %v855_v1  ;;  %v786_v4 = vld [vmem:[%s1052_s3 + $0x10] sm:$0xff]   ;;  %vm391_vm1 = vcmask 261120   ;;  %v787_v6 = vld [vmem:[%s1052_s3 + $0x8] sm:$0xff]   ;;  %v788_v7 = vld [vmem:[%s1052_s3] sm:$0xff]   ;;  %vm476_vm2 = vcmask 523264   ;;  %vm553_vm3 = vcmask 257024  }
  0x18   : > { %723 = vmatpush3.bf16.msra.mxu0 %v783_v0  ;;  %726 = vmatprep.mubr.msk.bf16.mxu0 %vm856_vm0, %v855_v1  ;;  %s694_s20 = sshll.u32 %s972_s11, 2  ;;  %v696_v8 = vld [vmem:[%s1051_s2] ss:$0 sm:$0xff] }
  0x19   : > { %724 = vmatprep.subr.bf16.mxu0 %v855_v1  ;;  %738 = vmatprep.mubr.msk.bf16.mxu1 %vm856_vm0, %v855_v1  ;;  %s361_s26 = scalar_lea.vmem %s1065_s0, %s694_s20  ;;  %v700_v16 = vld [vmem:[%s1053_s4] ss:$0 sm:$0xff]  ;;  %s603_s20 = sshll.u32 %s351_s12, 4  ;;  %s604_s20 = int_to_ptr.vmem [resolvable:$true] %s603_s20 }
  0x1a   : > { %731 = vmatpush3.bf16.msra.mxu1 %v785_v3  ;;  %v367_v5 = vld [vmem:[%s361_s26] sm:$0xf]  ;;  %s601_s26 = scalar_lea.hbm %s1058_s9, %s711_s18  ;;  %s793_s29 = scalar_lea.vmem %s604_s20, 64 }
  0x1b   : > { %732 = vmatprep.subr.bf16.mxu1 %v855_v1  ;;  %v520_v17 = vunpack.c.l.bf16 %v367_v5  ;;  %v706_v34 = vld [vmem:[%s1054_s5] ss:$0 sm:$0xff]  ;;  %p794_p11 = scmp.ne.s32.totalorder %s604_s20, %s793_s29  ;;  %s797_s0 = sshll.u32 %s857_s30, 4  ;;  %s798_s0 = int_to_ptr.vmem [resolvable:$false] %s797_s0 }
  0x1c   : > { %725 = vmatpush3.bf16.msra.mxu0 %v784_v2  ;;  %v707_v36 = vld [vmem:[%s1055_s6] ss:$0 sm:$0xff]  ;;  %s799_s1 = scalar_lea.vmem %s798_s0, 128  ;;  %p800_p0 = scmp.lt.s32.totalorder %s604_s20, %s798_s0 }
  0x1d   : > { %p795_p12 = pnand %p794_p11, %p951_p5  ;;  %p801_p1 = scmp.lt.s32.totalorder %s799_s1, %s793_s29 }
  0x1e   : > { %733 = vmatpush3.bf16.msra.mxu1 %v786_v4 }
  0x1f   : > { %727 = vmatmul.mubr.msk.bf16.vlgmr.msra.gmra.mxu0 %vm391_vm1, %v367_v5  ;;  %734 = vmatprep.subr.bf16.mxu1 %v855_v1  ;;  %p796_p13 = pneg %p795_p12  ;;  %p802_p2 = por %p801_p1, %p800_p0 }
  0x21   : > { %p803_p3 = pnand %p802_p2, %p796_p13 }
  0x22   : > { %735 = vmatpush3.bf16.msra.mxu1 %v787_v6 }
  0x23   : > { %736 = vmatprep.subr.bf16.mxu1 %v855_v1 }
  0x26   : > { %737 = vmatpush3.bf16.msra.mxu1 %v788_v7 }
  0xdf   : > { %v429_v9 = vpop.f32.mrf.mxu0 }
  0xe0   : > { %v430_v10 = vadd.f32 %v696_v8, %v429_v9 }
  0xe1   : > { %v728_v11 = vpop.f32.mrf.mxu0 }
  0xe2   : > { %v435_v12 = vmax.f32 %v430_v10, 0.0 }
  0xe3   : > { %v432_v13 = vpop.f32.mrf.mxu0 }
  0xe4   : > { %v436_v14 = vpack.c.bf16 %v435_v12, %v435_v12 }
  0xe5   : > { %v729_v15 = vpop.f32.mrf.mxu0 }
  0xe6   : > { %739 = vmatmul.mubr.msk.bf16.vlgmr.msra.gmra.mxu1 %vm476_vm2, %v436_v14 }
 0x1a6   : > { %v514_v18 = vpop.f32.mrf.mxu1 }
 0x1a7   : > { %v515_v19 = vadd.f32 %v700_v16, %v514_v18 }
 0x1a8   : > { %v740_v20 = vpop.f32.mrf.mxu1 }
 0x1a9   : > { %v521_v21 = vadd.f32 %v520_v17, %v515_v19 }
 0x1aa   : > { %v517_v22 = vpop.f32.mrf.mxu1 }
 0x1ab   : > { %v522_v23 = vsel %vm391_vm1, %v521_v21, 0.0 }
 0x1ac   : > { %523 = vadd.xlane.f32.xlu0 %v522_v23  ;;  %v741_v24 = vpop.f32.mrf.mxu1 }
 0x235   : > { %v524_v25 = vpop.xlane.xlu0 %523 }
 0x236   : > { %v526_v26 = vmul.f32 0.03125, %v524_v25 }
 0x238   : > { %v527_v27 = vsub.f32 %v521_v21, %v526_v26 }
 0x23a   : > { %v528_v28 = vmul.f32 %v527_v27, %v527_v27 }
 0x23c   : > { %v529_v29 = vsel %vm391_vm1, %v528_v28, 0.0 }
 0x23d   : > { %530 = vadd.xlane.f32.xlu0 %v529_v29 }
 0x2c6   : > { %v531_v30 = vpop.xlane.xlu0 %530 }
 0x2c7   : > { %v532_v31 = vmul.f32 0.03125, %v531_v30 }
 0x2c9   : > { %v533_v32 = vadd.f32 1e-05, %v532_v31 }
 0x2cb   : > { %789 = vrsqrt.f32 %v533_v32 }
 0x2d8   : > { %v790_v33 = vpop.eup %789 }
 0x2d9   : > { %v535_v35 = vmul.f32 %v790_v33, %v527_v27 }
 0x2db   : > { %v543_v37 = vmul.f32 %v706_v34, %v535_v35 }
 0x2dd   : > { %v551_v38 = vadd.f32 %v707_v36, %v543_v37 }
 0x2df   : > { %v555_v39 = vsel %vm391_vm1, %v551_v38, 0.0  ;;  %v552_v40 = vpack.c.bf16 %v551_v38, %v551_v38 }
 0x2e0   : > { %556 = vadd.xlane.f32.xlu1 %v555_v39 }
 0x2e1   : > { %554 = vst.msk [vmem:[%s351_s12] sm:$0xf] %vm553_vm3, %v552_v40 }
 0x369   : > { %v557_v41 = vpop.xlane.xlu1 %556 }
 0x36a   : > { %v558_v42 = vmul.f32 0.03125, %v557_v41 }
 0x36c   : > { %v559_v43 = vsub.f32 %v551_v38, %v558_v42 }
 0x36e   : > { %v560_v44 = vmul.f32 %v559_v43, %v559_v43 }
 0x370   : > { %v561_v45 = vsel %vm391_vm1, %v560_v44, 0.0 }
 0x371   : > { %562 = vadd.xlane.f32.xlu1 %v561_v45 }
 0x372   : > { %806 = shalt.err (!%p803_p3)
}
 0x373   : > { %s807_s17 = scalar_lea.hbm %s601_s26, 64  ;;  %s811_s18 = scalar_lea.hbm %s1058_s9, 128 }
 0x374   : > { %p808_p4 = scmp.ne.s32.totalorder %s601_s26, %s807_s17  ;;  %p812_p9 = scmp.lt.s32.totalorder %s601_s26, %s1058_s9 }
 0x375   : > { %p813_p10 = scmp.lt.s32.totalorder %s811_s18, %s807_s17 }
 0x376   : > { %p809_p7 = pnand %p808_p4, %p951_p5 }
 0x377   : > { %p814_p11 = por %p813_p10, %p812_p9 }
 0x378   : > { %p810_p8 = pneg %p809_p7 }
 0x37a   : > { %p815_p12 = pnand %p814_p11, %p810_p8 }
 0x37c   : > { %818 = shalt.err (!%p815_p12)
}
 0x37d   : > { %742 = dma.vmem_to_hbm [thread:$0]  (%p951_p5), %s604_s20, 64, %s601_s26, %s586_s28   ;;  %v708_v50 = vld [vmem:[%s1056_s7] ss:$0 sm:$0xff] }
 0x37e   : > { %s695_s29 = sshll.u32 %s972_s11, 3  ;;  %v709_v52 = vld [vmem:[%s1057_s8] ss:$0 sm:$0xff] }
 0x37f   : > { %s365_s20 = scalar_lea.vmem %s1059_s10, %s695_s29 }
 0x3fa   : > { %v563_v46 = vpop.xlane.xlu1 %562 }
 0x3fb   : > { %v564_v47 = vmul.f32 0.03125, %v563_v46 }
 0x3fd   : > { %v565_v48 = vadd.f32 1e-05, %v564_v47 }
 0x3ff   : > { %791 = vrsqrt.f32 %v565_v48 }
 0x40c   : > { %v792_v49 = vpop.eup %791 }
 0x40d   : > { %v567_v51 = vmul.f32 %v792_v49, %v559_v43 }
 0x40f   : > { %v575_v53 = vmul.f32 %v708_v50, %v567_v51 }
 0x411   : > { %v583_v54 = vadd.f32 %v709_v52, %v575_v53 }
 0x413   : > { %584 = vst.msk [vmem:[%s365_s20] sm:$0xff] %vm391_vm1, %v583_v54 }
 0x414 PF: > { %p748_p5 = scmp.ge.s32.totalorder %s853_s16, 2  ;;  %s618_s26 = sand.u32 1, %s841_s13  }
 0x415   : > { %s619_s11 = scalar_lea.sflag [#allocation3], %s618_s26 }
 0x416   : > { %p745_p13 = pnand %p748_p5, %p955_p6 }
 0x418   : > { %p746_p0 = pneg %p745_p13 }
 0x41a   : > { %836 = dma.done.wait (%p746_p0), %s619_s11, 64  }
 0x41b   : > { %838 = vsyncadd (%p746_p0), %s619_s11, 4294967232  ;;  %p21_p1 = scmp.ge.s32.totalorder %s938_s19, 4   ;;  %s1066_s13 = smov %s845_s14 }
 0x41c   : > { %s1067_s14 = smov %s849_s15  ;;  %s1068_s15 = smov %s949_s22 }
 0x41d   : > { %s1069_s16 = smov %s938_s19  ;;  %23 = sbr.rel (!%p21_p1) target bundleno = 6 (0x6), region = 103 }
 0x422   :  { %631 = vsyncpa [#allocation3], 1 }
 0x423   :  { %633 = vsyncpa [#allocation3 + $0x1], 1 }

// kernel: transformer_forward.26
= control target key start
LH: loop header
LB: loop body
LE: loop exit
PB: predicated region body
PF: predicated region fallthrough
CT: control target
= control target key end

     0   :  { %s806_s13 = smov 0   ;;  %s876_s0 = inlined_call_operand.vmem [shape: bf16[16,32], index: 0, kind: input, shape index: {}]   ;;  %s877_s1 = inlined_call_operand.vmem [shape: bf16[32,64], index: 1, kind: input, shape index: {}]   ;;  %s878_s2 = inlined_call_operand.vmem [shape: f32[1,64], index: 2, kind: input, shape index: {}]   ;;  %s879_s3 = inlined_call_operand.vmem [shape: bf16[64,32], index: 3, kind: input, shape index: {}]   ;;  %s880_s4 = inlined_call_operand.vmem [shape: f32[1,32], index: 4, kind: input, shape index: {}]   ;;  %s881_s5 = inlined_call_operand.vmem [shape: f32[1,32], index: 5, kind: input, shape index: {}]   ;;  %s882_s6 = inlined_call_operand.vmem [shape: f32[1,32], index: 6, kind: input, shape index: {}]   ;;  %s883_s7 = inlined_call_operand.vmem [shape: f32[1,32], index: 7, kind: input, shape index: {}]   ;;  %s884_s8 = inlined_call_operand.vmem [shape: f32[1,32], index: 8, kind: input, shape index: {}]   ;;  %s885_s9 = inlined_call_operand.vmem [shape: bf16[16,32], index: 9, kind: output, shape index: {0}]   ;;  %s886_s10 = inlined_call_operand.vmem [shape: f32[16,32], index: 10, kind: output, shape index: {1}]  }
   0x1 LB: > { %s669_s14 = sadd.s32 4294967295, %s747_s13   ;;  %p673_p0 = scmp.ge.s32.totalorder %s747_s13, 1  ;;  %s747_s13 = sphi %s806_s13, %s21_s13  }
   0x2   : > { %p314_p1 = scmp.lt.s32.totalorder %s747_s13, 3 }
   0x4   : > { %p315_p2 = pnand %p673_p0, %p314_p1 }
   0x5   : > { %p354_p3 = scmp.lt.s32.totalorder (!%p315_p2), %s669_s14, 1 }
   0x6   : > { %318 = sbr.rel (%p315_p2) target bundleno = 1033 (0x409), region = 56 }
   0xb   : > { %v731_v0 = vld [vmem:[%s877_s1 + $0x8] sm:$0xff]   ;;  %v749_v1 = vmov 0.0   ;;  %v732_v2 = vld [vmem:[%s877_s1] sm:$0xff]   ;;  %vm750_vm0 = vmmov 0   ;;  %v733_v3 = vld [vmem:[%s879_s3 + $0x18] sm:$0xff]   ;;  %s888_s14 = smov (!%p354_p3, %s669_s14), 1 }
   0xc   : > { %701 = vmatprep.subr.bf16.mxu0 %v749_v1  ;;  %709 = vmatprep.subr.bf16.mxu1 %v749_v1  ;;  %v734_v4 = vld [vmem:[%s879_s3 + $0x10] sm:$0xff]   ;;  %s674_s23 = sshll.u32 %s888_s14, 2  ;;  %vm391_vm1 = vcmask 261120   ;;  %v735_v6 = vld [vmem:[%s879_s3 + $0x8] sm:$0xff]   ;;  %v736_v7 = vld [vmem:[%s879_s3] sm:$0xff]   ;;  %vm476_vm2 = vcmask 523264  }
   0xd   : > { %702 = vmatpush3.bf16.msra.mxu0 %v731_v0  ;;  %705 = vmatprep.mubr.msk.bf16.mxu0 %vm750_vm0, %v749_v1  ;;  %s357_s26 = scalar_lea.vmem %s876_s0, %s674_s23  ;;  %v677_v8 = vld [vmem:[%s878_s2] ss:$0 sm:$0xff]  ;;  %s361_s24 = scalar_lea.vmem %s885_s9, %s674_s23  ;;  %vm553_vm3 = vcmask 257024  }
   0xe   : > { %703 = vmatprep.subr.bf16.mxu0 %v749_v1  ;;  %717 = vmatprep.mubr.msk.bf16.mxu1 %vm750_vm0, %v749_v1  ;;  %v367_v5 = vld [vmem:[%s357_s26] sm:$0xf]  ;;  %s676_s26 = sshll.u32 %s888_s14, 3 }
   0xf   : > { %710 = vmatpush3.bf16.msra.mxu1 %v733_v3  ;;  %v681_v16 = vld [vmem:[%s880_s4] ss:$0 sm:$0xff]  ;;  %v520_v17 = vunpack.c.l.bf16 %v367_v5  ;;  %s365_s11 = scalar_lea.vmem %s886_s10, %s676_s26 }
  0x10   : > { %711 = vmatprep.subr.bf16.mxu1 %v749_v1  ;;  %v687_v34 = vld [vmem:[%s881_s5] ss:$0 sm:$0xff] }
  0x11   : > { %704 = vmatpush3.bf16.msra.mxu0 %v732_v2  ;;  %v688_v36 = vld [vmem:[%s882_s6] ss:$0 sm:$0xff] }
  0x12   : > { %v689_v50 = vld [vmem:[%s883_s7] ss:$0 sm:$0xff] }
  0x13   : > { %712 = vmatpush3.bf16.msra.mxu1 %v734_v4  ;;  %v690_v52 = vld [vmem:[%s884_s8] ss:$0 sm:$0xff] }
  0x14   : > { %706 = vmatmul.mubr.msk.bf16.vlgmr.msra.gmra.mxu0 %vm391_vm1, %v367_v5  ;;  %713 = vmatprep.subr.bf16.mxu1 %v749_v1 }
  0x17   : > { %714 = vmatpush3.bf16.msra.mxu1 %v735_v6 }
  0x18   : > { %715 = vmatprep.subr.bf16.mxu1 %v749_v1 }
  0x1b   : > { %716 = vmatpush3.bf16.msra.mxu1 %v736_v7 }
  0xd4   : > { %v429_v9 = vpop.f32.mrf.mxu0 }
  0xd5   : > { %v430_v10 = vadd.f32 %v677_v8, %v429_v9 }
  0xd6   : > { %v707_v11 = vpop.f32.mrf.mxu0 }
  0xd7   : > { %v435_v12 = vmax.f32 %v430_v10, 0.0 }
  0xd8   : > { %v432_v13 = vpop.f32.mrf.mxu0 }
  0xd9   : > { %v436_v14 = vpack.c.bf16 %v435_v12, %v435_v12 }
  0xda   : > { %v708_v15 = vpop.f32.mrf.mxu0 }
  0xdb   : > { %718 = vmatmul.mubr.msk.bf16.vlgmr.msra.gmra.mxu1 %vm476_vm2, %v436_v14 }
 0x19b   : > { %v514_v18 = vpop.f32.mrf.mxu1 }
 0x19c   : > { %v515_v19 = vadd.f32 %v681_v16, %v514_v18 }
 0x19d   : > { %v719_v20 = vpop.f32.mrf.mxu1 }
 0x19e   : > { %v521_v21 = vadd.f32 %v520_v17, %v515_v19 }
 0x19f   : > { %v517_v22 = vpop.f32.mrf.mxu1 }
 0x1a0   : > { %v522_v23 = vsel %vm391_vm1, %v521_v21, 0.0 }
 0x1a1   : > { %523 = vadd.xlane.f32.xlu0 %v522_v23  ;;  %v720_v24 = vpop.f32.mrf.mxu1 }
 0x22a   : > { %v524_v25 = vpop.xlane.xlu0 %523 }
 0x22b   : > { %v526_v26 = vmul.f32 0.03125, %v524_v25 }
 0x22d   : > { %v527_v27 = vsub.f32 %v521_v21, %v526_v26 }
 0x22f   : > { %v528_v28 = vmul.f32 %v527_v27, %v527_v27 }
 0x231   : > { %v529_v29 = vsel %vm391_vm1, %v528_v28, 0.0 }
 0x232   : > { %530 = vadd.xlane.f32.xlu0 %v529_v29 }
 0x2bb   : > { %v531_v30 = vpop.xlane.xlu0 %530 }
 0x2bc   : > { %v532_v31 = vmul.f32 0.03125, %v531_v30 }
 0x2be   : > { %v533_v32 = vadd.f32 1e-05, %v532_v31 }
 0x2c0   : > { %737 = vrsqrt.f32 %v533_v32 }
 0x2cd   : > { %v738_v33 = vpop.eup %737 }
 0x2ce   : > { %v535_v35 = vmul.f32 %v738_v33, %v527_v27 }
 0x2d0   : > { %v543_v37 = vmul.f32 %v687_v34, %v535_v35 }
 0x2d2   : > { %v551_v38 = vadd.f32 %v688_v36, %v543_v37 }
 0x2d4   : > { %v555_v39 = vsel %vm391_vm1, %v551_v38, 0.0  ;;  %v552_v40 = vpack.c.bf16 %v551_v38, %v551_v38 }
 0x2d5   : > { %556 = vadd.xlane.f32.xlu1 %v555_v39 }
 0x2d6   : > { %554 = vst.msk [vmem:[%s361_s24] sm:$0xf] %vm553_vm3, %v552_v40 }
 0x35e   : > { %v557_v41 = vpop.xlane.xlu1 %556 }
 0x35f   : > { %v558_v42 = vmul.f32 0.03125, %v557_v41 }
 0x361   : > { %v559_v43 = vsub.f32 %v551_v38, %v558_v42 }
 0x363   : > { %v560_v44 = vmul.f32 %v559_v43, %v559_v43 }
 0x365   : > { %v561_v45 = vsel %vm391_vm1, %v560_v44, 0.0 }
 0x366   : > { %562 = vadd.xlane.f32.xlu1 %v561_v45 }
 0x3ef   : > { %v563_v46 = vpop.xlane.xlu1 %562 }
 0x3f0   : > { %v564_v47 = vmul.f32 0.03125, %v563_v46 }
 0x3f2   : > { %v565_v48 = vadd.f32 1e-05, %v564_v47 }
 0x3f4   : > { %739 = vrsqrt.f32 %v565_v48 }
 0x401   : > { %v740_v49 = vpop.eup %739 }
 0x402   : > { %v567_v51 = vmul.f32 %v740_v49, %v559_v43 }
 0x404   : > { %v575_v53 = vmul.f32 %v689_v50, %v567_v51 }
 0x406   : > { %v583_v54 = vadd.f32 %v690_v52, %v575_v53 }
 0x408   : > { %584 = vst.msk [vmem:[%s365_s11] sm:$0xff] %vm391_vm1, %v583_v54 }
 0x409 PF: > { %s21_s13 = sadd.s32 1, %s747_s13  }
 0x40a   : > { %p18_p4 = scmp.ge.s32.totalorder %s21_s13, 4  }
 0x40c   :  { %20 = sbr.rel (!%p18_p4) target bundleno = 1 (0x1), region = 98 }

</bundles_post_ra>
